<compile_context>
chip_gen: v7x
topology: tpu7x:2x2x1
jax: 0.10.0
libtpu: 0.0.40
codegen_flags: <defaults>
</compile_context>

<pallas_src>
import functools

import jax
import jax.numpy as jnp
from jax import lax
from jax.experimental import pallas as pl
from jax.experimental.pallas import tpu as pltpu

LANE = 128


def _round_up(x, m):
    return (x + m - 1) // m * m


def make_textcnn_kernel(kernel_sizes, num_filters):
    """Fused one-hot gather + conv (all branches) matmul + tree max-pool + FC."""

    def kernel(ids_ref, mw_ref, convb_ref, fcw_ref, fcb_ref, out_ref):
        tb, seq_len = ids_ref.shape
        k_total, _ = mw_ref.shape
        vocab_pad = k_total // seq_len
        f = num_filters
        mm_dtype = mw_ref.dtype

        ids = ids_ref[...]                                   # (TB, L) int32

        # One-hot(ids) over the flattened (time, vocab_pad) axis.  vocab_pad is
        # a multiple of 128, so each token contributes a whole lane tile and
        # the concat is whole-tile packing; K = L*vocab_pad is 128-aligned.
        # NOTE: ids outside [0, vocab) silently select a zero embedding row
        # (PyTorch's nn.Embedding would raise) — benign for valid inputs.
        lane_iota = lax.broadcasted_iota(jnp.int32, (tb, vocab_pad), 1)
        pieces = [(ids[:, t:t + 1] == lane_iota).astype(mm_dtype)
                  for t in range(seq_len)]
        onehot = jnp.concatenate(pieces, axis=1)             # (TB, L*Vp)

        # ONE MXU matmul = embedding gather + every conv branch (all taps, all
        # time positions), accumulated in f32.
        conv = jnp.dot(onehot, mw_ref[...],
                       preferred_element_type=jnp.float32)   # (TB, n_pad)

        # Global max-pool over time per branch, balanced pairwise tree.
        # Padded columns (>= sum l_out*F) are never touched, so pooling before
        # bias+ReLU is exact.
        pooled = []
        off = 0
        for ks in kernel_sizes:
            l_out = seq_len - ks + 1
            slices = [conv[:, off + t * f: off + (t + 1) * f]
                      for t in range(l_out)]
            while len(slices) > 1:
                nxt = [jnp.maximum(a, b)
                       for a, b in zip(slices[0::2], slices[1::2])]
                if len(slices) % 2:
                    nxt.append(slices[-1])
                slices = nxt
            pooled.append(slices[0])
            off += l_out * f
        cat = jnp.concatenate(pooled, axis=1)                # (TB, n*F) f32

        # Bias + ReLU after the pool (valid: ReLU monotone, bias constant over
        # time -> max_t relu(x_t + b) == relu(max_t x_t + b)).  Kept in f32.
        act = jnp.maximum(cat + convb_ref[...], 0.0)

        # FC into a lane-dense (TB, 128) slab; bias added in f32.
        out = jnp.dot(act.astype(fcw_ref.dtype), fcw_ref[...],
                      preferred_element_type=jnp.float32) + fcb_ref[...]
        out_ref[...] = out

    return kernel


def prepare_kernel_params(params, kernel_sizes, seq_len, *, out_pad=LANE,
                          param_dtype=jnp.float32):
    """One-time host-side fold/re-layout of PyTorch-style params.

    Folds the embedding table into a block-Toeplitz conv matrix so the kernel
    computes every conv branch (all taps, all time positions) with a single
    matmul against a one-hot id matrix:
        M[t*Vp + v, tau*F + j] = sum_e table[v, e] * w_branch[j, e, t - tau].
    """
    table = params["embedding"].astype(jnp.float32)          # (vocab, E)
    vocab, emb_dim = table.shape
    vocab_pad = _round_up(vocab, LANE)
    output_dim = params["fc_b"].shape[0]
    assert output_dim <= out_pad

    num_filters = params["conv_w"][0].shape[0]
    n_cols = sum((seq_len - ks + 1) * num_filters for ks in kernel_sizes)
    n_pad = _round_up(n_cols, LANE)

    # TODO(synk): for realistic vocab sizes (>~2K) the folded (L*vocab_pad,
    # n_pad) matrix and the in-kernel one-hot grow linearly in vocab; switch
    # the embedding to a DMA row gather (PrefetchScalarGridSpec + pl.Element
    # row BlockSpec) instead of growing the one-hot.
    mw = jnp.zeros((seq_len * vocab_pad, n_pad), jnp.float32)
    col_off = 0
    for w, ks in zip(params["conv_w"], kernel_sizes):         # w: (F, E, ks)
        w = w.astype(jnp.float32)
        f, e, ks_w = w.shape
        assert ks_w == ks and e == emb_dim and f == num_filters
        l_out = seq_len - ks + 1
        taps = [table @ w[:, :, k].T for k in range(ks)]      # (vocab, F) each
        for tau in range(l_out):
            for k in range(ks):
                r0 = (tau + k) * vocab_pad
                c0 = col_off + tau * f
                mw = mw.at[r0:r0 + vocab, c0:c0 + f].set(taps[k])
        col_off += l_out * f

    conv_b = jnp.concatenate(
        [b.astype(jnp.float32) for b in params["conv_b"]]).reshape(1, -1)

    fc_w_t = jnp.transpose(params["fc_w"]).astype(jnp.float32)   # (n*F, out)
    fc_w = jnp.zeros((fc_w_t.shape[0], out_pad),
                     jnp.float32).at[:, :output_dim].set(fc_w_t)
    fc_b = jnp.zeros((1, out_pad), jnp.float32).at[0, :output_dim].set(
        params["fc_b"].astype(jnp.float32))

    return {"mw": mw.astype(param_dtype), "conv_b": conv_b,
            "fc_w": fc_w.astype(param_dtype), "fc_b": fc_b}


def pick_batch_block(batch):
    """Per-generation batch tile: fill the MXU M dim without idling cores."""
    kind = ""
    try:
        kind = jax.devices()[0].device_kind.lower()
    except Exception:
        pass
    if batch >= 512:
        return 256                # grid still >= 2 even on 2-TC chips
    if batch >= 256 and "v6" in kind:
        return 256                # v6e: single TC, 2x256x256 MXU -> fill M
    return 128                    # v7x: grid >= 2 (both TCs); v5e: 128-row MXU


@functools.partial(jax.jit,
                   static_argnames=("kernel_sizes", "output_dim", "batch_block"))
def tudui_forward_batch(texts, kparams, *, kernel_sizes, output_dim,
                        batch_block=128):
    """Batched forward: texts (B, L) int -> (B, output_dim) float32."""
    mw = kparams["mw"]
    conv_b = kparams["conv_b"]
    fc_w = kparams["fc_w"]
    fc_b = kparams["fc_b"]

    batch, seq_len = texts.shape
    assert mw.shape[0] % seq_len == 0, "seq_len mismatch with folded conv matrix"
    out_pad = fc_w.shape[1]
    num_filters = conv_b.shape[1] // len(kernel_sizes)

    tb = min(batch_block, _round_up(batch, 8))
    b_pad = _round_up(batch, tb)
    ids = jnp.zeros((b_pad, seq_len), jnp.int32).at[:batch].set(
        texts.astype(jnp.int32))

    kernel = make_textcnn_kernel(tuple(kernel_sizes), num_filters)

    out = pl.pallas_call(
        kernel,
        out_shape=jax.ShapeDtypeStruct((b_pad, out_pad), jnp.float32),
        grid=(b_pad // tb,),
        in_specs=[
            pl.BlockSpec((tb, seq_len), lambda i: (i, 0)),
            pl.BlockSpec(mw.shape, lambda i: (0, 0)),
            pl.BlockSpec(conv_b.shape, lambda i: (0, 0)),
            pl.BlockSpec(fc_w.shape, lambda i: (0, 0)),
            pl.BlockSpec(fc_b.shape, lambda i: (0, 0)),
        ],
        out_specs=pl.BlockSpec((tb, out_pad), lambda i: (i, 0)),
        compiler_params=pltpu.CompilerParams(
            dimension_semantics=("parallel",)),
    )(ids, mw, conv_b, fc_w, fc_b)

    return out[:batch, :output_dim]


def tudui_forward(text, kparams, kernel_sizes, output_dim):
    """Single-sequence forward matching the PyTorch module: (L,) -> (1, out)."""
    # TODO(synk): nn.Dropout is identity at inference; training-mode dropout
    # masking is not implemented here.
    return tudui_forward_batch(text[None, :], kparams,
                               kernel_sizes=tuple(kernel_sizes),
                               output_dim=output_dim)


def reference_forward_batch(texts, params, kernel_sizes):
    """Pure-JAX reference of the PyTorch forward (inference mode), batched."""
    emb = params["embedding"][texts]                       # (B, L, E)
    pooled = []
    for w, b in zip(params["conv_w"], params["conv_b"]):   # w: (F, E, ks)
        ks = w.shape[2]
        l_out = emb.shape[1] - ks + 1
        acc = jnp.zeros((emb.shape[0], l_out, w.shape[0]), jnp.float32)
        for k in range(ks):
            acc += jnp.einsum("ble,fe->blf", emb[:, k:k + l_out, :], w[:, :, k])
        acc = jnp.maximum(acc + b[None, None, :], 0.0)
        pooled.append(jnp.max(acc, axis=1))
    cat = jnp.concatenate(pooled, axis=1)                  # (B, n*F)
    return cat @ params["fc_w"].T + params["fc_b"][None, :]


def init_params(key, vocab_size, embedding_dim, num_filters, kernel_sizes,
                output_dim):
    keys = jax.random.split(key, 3 + 2 * len(kernel_sizes))
    params = {
        "embedding": 0.1 * jax.random.normal(
            keys[0], (vocab_size, embedding_dim), jnp.float32),
        "conv_w": [],
        "conv_b": [],
    }
    for i, ks in enumerate(kernel_sizes):
        params["conv_w"].append(0.1 * jax.random.normal(
            keys[1 + 2 * i], (num_filters, embedding_dim, ks), jnp.float32))
        params["conv_b"].append(0.05 * jax.random.normal(
            keys[2 + 2 * i], (num_filters,), jnp.float32))
    params["fc_w"] = 0.1 * jax.random.normal(
        keys[-2], (output_dim, len(kernel_sizes) * num_filters), jnp.float32)
    params["fc_b"] = 0.05 * jax.random.normal(
        keys[-1], (output_dim,), jnp.float32)
    return params


if __name__ == "__main__":
    vocab_size = 50
    embedding_dim = 32
    num_filters = 16
    kernel_sizes = (3, 4, 5)
    output_dim = 4
    seq_len = 8
    batch = 256

    key = jax.random.PRNGKey(0)
    pkey, tkey = jax.random.split(key)
    params = init_params(pkey, vocab_size, embedding_dim, num_filters,
                         kernel_sizes, output_dim)
    texts = jax.random.randint(tkey, (batch, seq_len), 0, vocab_size,
                               dtype=jnp.int32)

    ref_b = reference_forward_batch(texts, params, kernel_sizes)
    batch_block = pick_batch_block(batch)

    # f32 parameter path (tight-tolerance correctness check).
    kparams_f32 = prepare_kernel_params(params, kernel_sizes, seq_len,
                                        param_dtype=jnp.float32)
    out_f32 = jax.block_until_ready(
        tudui_forward_batch(texts, kparams_f32, kernel_sizes=kernel_sizes,
                            output_dim=output_dim, batch_block=batch_block))
    assert out_f32.shape == (batch, output_dim)
    assert jnp.allclose(out_f32, ref_b, rtol=1e-4, atol=1e-4), (
        float(jnp.max(jnp.abs(out_f32 - ref_b))))

    # bf16 parameter path (MXU-native on v6e/v7x; f32 accumulation -> looser
    # tolerance against the f32 reference).
    kparams_bf16 = prepare_kernel_params(params, kernel_sizes, seq_len,
                                         param_dtype=jnp.bfloat16)
    out_bf16 = jax.block_until_ready(
        tudui_forward_batch(texts, kparams_bf16, kernel_sizes=kernel_sizes,
                            output_dim=output_dim, batch_block=batch_block))
    assert out_bf16.shape == (batch, output_dim)
    assert jnp.allclose(out_bf16, ref_b, rtol=3e-2, atol=3e-2), (
        float(jnp.max(jnp.abs(out_bf16 - ref_b))))

    # Single-sequence path, matching the PyTorch module's unbatched forward.
    out_1 = jax.block_until_ready(
        tudui_forward(texts[0], kparams_f32, kernel_sizes, output_dim))
    assert out_1.shape == (1, output_dim)
    assert jnp.allclose(out_1, ref_b[0:1], rtol=1e-4, atol=1e-4)

    print("KERNEL_OK")
</pallas_src>

<mosaic_0001>
module attributes {stable_mosaic.version = 11 : i64} {
  func.func @kernel(%arg0: i32, %arg1: memref<128x8xi32, #tpu.memory_space<vmem>>, %arg2: memref<1024x256xf32, #tpu.memory_space<vmem>>, %arg3: memref<1x48xf32, #tpu.memory_space<vmem>>, %arg4: memref<48x128xf32, #tpu.memory_space<vmem>>, %arg5: memref<1x128xf32, #tpu.memory_space<vmem>>, %arg6: memref<128x128xf32, #tpu.memory_space<vmem>>) attributes {dimension_semantics = [#tpu.dimension_semantics<parallel>], iteration_bounds = array<i64: 2>, scalar_prefetch = 0 : i64, scratch_operands = 0 : i64, tpu.core_type = #tpu.core_type<tc>, window_params = [{transform_indices = @transform_0, window_bounds = array<i64: 128, 8>}, {pipeline_mode = #tpu.pipeline_mode<synchronous>, transform_indices = @transform_1, window_bounds = array<i64: 1024, 256>}, {pipeline_mode = #tpu.pipeline_mode<synchronous>, transform_indices = @transform_2, window_bounds = array<i64: 1, 48>}, {pipeline_mode = #tpu.pipeline_mode<synchronous>, transform_indices = @transform_3, window_bounds = array<i64: 48, 128>}, {pipeline_mode = #tpu.pipeline_mode<synchronous>, transform_indices = @transform_4, window_bounds = array<i64: 1, 128>}, {transform_indices = @transform_5, window_bounds = array<i64: 128, 128>}]} {
    %c0 = arith.constant 0 : index
    %c0_0 = arith.constant 0 : index
    %0 = vector.load %arg1[%c0, %c0_0] : memref<128x8xi32, #tpu.memory_space<vmem>>, vector<128x8xi32>
    %1 = tpu.iota {dimensions = array<i32: 1>} : vector<128x128xi32>
    %2 = vector.extract_strided_slice %0 {offsets = [0, 0], sizes = [128, 1], strides = [1, 1]} : vector<128x8xi32> to vector<128x1xi32>
    %3 = vector.broadcast %2 : vector<128x1xi32> to vector<128x128xi32>
    %4 = arith.cmpi eq, %3, %1 : vector<128x128xi32>
    %5 = arith.extui %4 : vector<128x128xi1> to vector<128x128xi32>
    %6 = arith.sitofp %5 : vector<128x128xi32> to vector<128x128xf32>
    %7 = vector.extract_strided_slice %0 {offsets = [0, 1], sizes = [128, 1], strides = [1, 1]} : vector<128x8xi32> to vector<128x1xi32>
    %8 = vector.broadcast %7 : vector<128x1xi32> to vector<128x128xi32>
    %9 = arith.cmpi eq, %8, %1 : vector<128x128xi32>
    %10 = arith.extui %9 : vector<128x128xi1> to vector<128x128xi32>
    %11 = arith.sitofp %10 : vector<128x128xi32> to vector<128x128xf32>
    %12 = vector.extract_strided_slice %0 {offsets = [0, 2], sizes = [128, 1], strides = [1, 1]} : vector<128x8xi32> to vector<128x1xi32>
    %13 = vector.broadcast %12 : vector<128x1xi32> to vector<128x128xi32>
    %14 = arith.cmpi eq, %13, %1 : vector<128x128xi32>
    %15 = arith.extui %14 : vector<128x128xi1> to vector<128x128xi32>
    %16 = arith.sitofp %15 : vector<128x128xi32> to vector<128x128xf32>
    %17 = vector.extract_strided_slice %0 {offsets = [0, 3], sizes = [128, 1], strides = [1, 1]} : vector<128x8xi32> to vector<128x1xi32>
    %18 = vector.broadcast %17 : vector<128x1xi32> to vector<128x128xi32>
    %19 = arith.cmpi eq, %18, %1 : vector<128x128xi32>
    %20 = arith.extui %19 : vector<128x128xi1> to vector<128x128xi32>
    %21 = arith.sitofp %20 : vector<128x128xi32> to vector<128x128xf32>
    %22 = vector.extract_strided_slice %0 {offsets = [0, 4], sizes = [128, 1], strides = [1, 1]} : vector<128x8xi32> to vector<128x1xi32>
    %23 = vector.broadcast %22 : vector<128x1xi32> to vector<128x128xi32>
    %24 = arith.cmpi eq, %23, %1 : vector<128x128xi32>
    %25 = arith.extui %24 : vector<128x128xi1> to vector<128x128xi32>
    %26 = arith.sitofp %25 : vector<128x128xi32> to vector<128x128xf32>
    %27 = vector.extract_strided_slice %0 {offsets = [0, 5], sizes = [128, 1], strides = [1, 1]} : vector<128x8xi32> to vector<128x1xi32>
    %28 = vector.broadcast %27 : vector<128x1xi32> to vector<128x128xi32>
    %29 = arith.cmpi eq, %28, %1 : vector<128x128xi32>
    %30 = arith.extui %29 : vector<128x128xi1> to vector<128x128xi32>
    %31 = arith.sitofp %30 : vector<128x128xi32> to vector<128x128xf32>
    %32 = vector.extract_strided_slice %0 {offsets = [0, 6], sizes = [128, 1], strides = [1, 1]} : vector<128x8xi32> to vector<128x1xi32>
    %33 = vector.broadcast %32 : vector<128x1xi32> to vector<128x128xi32>
    %34 = arith.cmpi eq, %33, %1 : vector<128x128xi32>
    %35 = arith.extui %34 : vector<128x128xi1> to vector<128x128xi32>
    %36 = arith.sitofp %35 : vector<128x128xi32> to vector<128x128xf32>
    %37 = vector.extract_strided_slice %0 {offsets = [0, 7], sizes = [128, 1], strides = [1, 1]} : vector<128x8xi32> to vector<128x1xi32>
    %38 = vector.broadcast %37 : vector<128x1xi32> to vector<128x128xi32>
    %39 = arith.cmpi eq, %38, %1 : vector<128x128xi32>
    %40 = arith.extui %39 : vector<128x128xi1> to vector<128x128xi32>
    %41 = arith.sitofp %40 : vector<128x128xi32> to vector<128x128xf32>
    %42 = tpu.concatenate %6, %11, %16, %21, %26, %31, %36, %41 in 1 : vector<128x128xf32>, vector<128x128xf32>, vector<128x128xf32>, vector<128x128xf32>, vector<128x128xf32>, vector<128x128xf32>, vector<128x128xf32>, vector<128x128xf32> -> vector<128x1024xf32>
    %c0_1 = arith.constant 0 : index
    %c0_2 = arith.constant 0 : index
    %43 = vector.load %arg2[%c0_1, %c0_2] : memref<1024x256xf32, #tpu.memory_space<vmem>>, vector<1024x256xf32>
    %cst = arith.constant dense<0.000000e+00> : vector<128x256xf32>
    %44 = tpu.matmul %42, %43, %cst {dimension_numbers = #tpu.dot_dimension_numbers<[1], [0], [0], [1], [0, 0, 1, 1], [], []>} : vector<128x1024xf32>, vector<1024x256xf32>, vector<128x256xf32> -> vector<128x256xf32>
    %45 = vector.extract_strided_slice %44 {offsets = [0, 0], sizes = [128, 16], strides = [1, 1]} : vector<128x256xf32> to vector<128x16xf32>
    %46 = vector.extract_strided_slice %44 {offsets = [0, 16], sizes = [128, 16], strides = [1, 1]} : vector<128x256xf32> to vector<128x16xf32>
    %47 = vector.extract_strided_slice %44 {offsets = [0, 32], sizes = [128, 16], strides = [1, 1]} : vector<128x256xf32> to vector<128x16xf32>
    %48 = vector.extract_strided_slice %44 {offsets = [0, 48], sizes = [128, 16], strides = [1, 1]} : vector<128x256xf32> to vector<128x16xf32>
    %49 = vector.extract_strided_slice %44 {offsets = [0, 64], sizes = [128, 16], strides = [1, 1]} : vector<128x256xf32> to vector<128x16xf32>
    %50 = vector.extract_strided_slice %44 {offsets = [0, 80], sizes = [128, 16], strides = [1, 1]} : vector<128x256xf32> to vector<128x16xf32>
    %51 = arith.maximumf %45, %46 : vector<128x16xf32>
    %52 = arith.maximumf %47, %48 : vector<128x16xf32>
    %53 = arith.maximumf %49, %50 : vector<128x16xf32>
    %54 = arith.maximumf %51, %52 : vector<128x16xf32>
    %55 = arith.maximumf %54, %53 : vector<128x16xf32>
    %56 = vector.extract_strided_slice %44 {offsets = [0, 96], sizes = [128, 16], strides = [1, 1]} : vector<128x256xf32> to vector<128x16xf32>
    %57 = vector.extract_strided_slice %44 {offsets = [0, 112], sizes = [128, 16], strides = [1, 1]} : vector<128x256xf32> to vector<128x16xf32>
    %58 = vector.extract_strided_slice %44 {offsets = [0, 128], sizes = [128, 16], strides = [1, 1]} : vector<128x256xf32> to vector<128x16xf32>
    %59 = vector.extract_strided_slice %44 {offsets = [0, 144], sizes = [128, 16], strides = [1, 1]} : vector<128x256xf32> to vector<128x16xf32>
    %60 = vector.extract_strided_slice %44 {offsets = [0, 160], sizes = [128, 16], strides = [1, 1]} : vector<128x256xf32> to vector<128x16xf32>
    %61 = arith.maximumf %56, %57 : vector<128x16xf32>
    %62 = arith.maximumf %58, %59 : vector<128x16xf32>
    %63 = arith.maximumf %61, %62 : vector<128x16xf32>
    %64 = arith.maximumf %63, %60 : vector<128x16xf32>
    %65 = vector.extract_strided_slice %44 {offsets = [0, 176], sizes = [128, 16], strides = [1, 1]} : vector<128x256xf32> to vector<128x16xf32>
    %66 = vector.extract_strided_slice %44 {offsets = [0, 192], sizes = [128, 16], strides = [1, 1]} : vector<128x256xf32> to vector<128x16xf32>
    %67 = vector.extract_strided_slice %44 {offsets = [0, 208], sizes = [128, 16], strides = [1, 1]} : vector<128x256xf32> to vector<128x16xf32>
    %68 = vector.extract_strided_slice %44 {offsets = [0, 224], sizes = [128, 16], strides = [1, 1]} : vector<128x256xf32> to vector<128x16xf32>
    %69 = arith.maximumf %65, %66 : vector<128x16xf32>
    %70 = arith.maximumf %67, %68 : vector<128x16xf32>
    %71 = arith.maximumf %69, %70 : vector<128x16xf32>
    %72 = tpu.concatenate %55, %64, %71 in 1 : vector<128x16xf32>, vector<128x16xf32>, vector<128x16xf32> -> vector<128x48xf32>
    %c0_3 = arith.constant 0 : index
    %c0_4 = arith.constant 0 : index
    %73 = vector.load %arg3[%c0_3, %c0_4] : memref<1x48xf32, #tpu.memory_space<vmem>>, vector<1x48xf32>
    %74 = vector.broadcast %73 : vector<1x48xf32> to vector<128x48xf32>
    %75 = arith.addf %72, %74 : vector<128x48xf32>
    %cst_5 = arith.constant 0.000000e+00 : f32
    %76 = vector.broadcast %cst_5 : f32 to vector<128x48xf32>
    %77 = arith.maximumf %75, %76 : vector<128x48xf32>
    %c0_6 = arith.constant 0 : index
    %c0_7 = arith.constant 0 : index
    %78 = vector.load %arg4[%c0_6, %c0_7] : memref<48x128xf32, #tpu.memory_space<vmem>>, vector<48x128xf32>
    %cst_8 = arith.constant dense<0.000000e+00> : vector<128x128xf32>
    %79 = tpu.matmul %77, %78, %cst_8 {dimension_numbers = #tpu.dot_dimension_numbers<[1], [0], [0], [1], [0, 0, 1, 1], [], []>} : vector<128x48xf32>, vector<48x128xf32>, vector<128x128xf32> -> vector<128x128xf32>
    %c0_9 = arith.constant 0 : index
    %c0_10 = arith.constant 0 : index
    %80 = vector.load %arg5[%c0_9, %c0_10] : memref<1x128xf32, #tpu.memory_space<vmem>>, vector<1x128xf32>
    %81 = vector.broadcast %80 : vector<1x128xf32> to vector<128x128xf32>
    %82 = arith.addf %79, %81 : vector<128x128xf32>
    %c0_11 = arith.constant 0 : index
    %c0_12 = arith.constant 0 : index
    %83 = vector.load %arg6[%c0_11, %c0_12] : memref<128x128xf32, #tpu.memory_space<vmem>>, vector<128x128xf32>
    tpu.vector_store %arg6[%c0_11, %c0_12], %82 {strides = array<i32>} : memref<128x128xf32, #tpu.memory_space<vmem>>, vector<128x128xf32>,
    return
  }
  func.func @transform_0(%arg0: i32) -> (i32, i32) {
    %c0_i32 = arith.constant 0 : i32
    %c0_i32_0 = arith.constant 0 : i32
    return %arg0, %c0_i32 : i32, i32
  }
  func.func @transform_1(%arg0: i32) -> (i32, i32) {
    %c0_i32 = arith.constant 0 : i32
    %c0_i32_0 = arith.constant 0 : i32
    %c0_i32_1 = arith.constant 0 : i32
    return %c0_i32, %c0_i32_0 : i32, i32
  }
  func.func @transform_2(%arg0: i32) -> (i32, i32) {
    %c0_i32 = arith.constant 0 : i32
    %c0_i32_0 = arith.constant 0 : i32
    %c0_i32_1 = arith.constant 0 : i32
    return %c0_i32, %c0_i32_0 : i32, i32
  }
  func.func @transform_3(%arg0: i32) -> (i32, i32) {
    %c0_i32 = arith.constant 0 : i32
    %c0_i32_0 = arith.constant 0 : i32
    %c0_i32_1 = arith.constant 0 : i32
    return %c0_i32, %c0_i32_0 : i32, i32
  }
  func.func @transform_4(%arg0: i32) -> (i32, i32) {
    %c0_i32 = arith.constant 0 : i32
    %c0_i32_0 = arith.constant 0 : i32
    %c0_i32_1 = arith.constant 0 : i32
    return %c0_i32, %c0_i32_0 : i32, i32
  }
  func.func @transform_5(%arg0: i32) -> (i32, i32) {
    %c0_i32 = arith.constant 0 : i32
    %c0_i32_0 = arith.constant 0 : i32
    return %arg0, %c0_i32 : i32, i32
  }
}

</mosaic_0001>

<bundles_post_ra>
// kernel: tudui_forward_batch.1
= control target key start
LH: loop header
LB: loop body
LE: loop exit
PB: predicated region body
PF: predicated region fallthrough
CT: control target
= control target key end

     0   :  { %10 = vsyncpa [#allocation3], 0  ;;  %s3830_s18 = smov 0   ;;  %s5224_s0 = inlined_call_operand.vmem [shape: s32[256,8], index: 0, kind: input, shape index: {}]   ;;  %s5225_s1 = inlined_call_operand.hbm [shape: f32[1024,256], index: 1, kind: input, shape index: {}]   ;;  %s5226_s2 = inlined_call_operand.vmem [shape: f32[1,48], index: 2, kind: input, shape index: {}]   ;;  %s5227_s3 = inlined_call_operand.vmem [shape: f32[48,128], index: 3, kind: input, shape index: {}]   ;;  %s5228_s4 = inlined_call_operand.vmem [shape: f32[1,128], index: 4, kind: input, shape index: {}]   ;;  %s5229_s5 = inlined_call_operand.vmem [shape: f32[256,128], index: 5, kind: output, shape index: {}]  }
   0x1 LB: > { %s2885_s19 = sadd.s32 4294967295, %s3782_s18   ;;  %p2887_p0 = scmp.ge.s32.totalorder %s3782_s18, 1  ;;  %s3782_s18 = sphi %s3830_s18, %s16_s18  }
   0x2   : > { %p157_p1 = scmp.lt.s32.totalorder %s3782_s18, 3  ;;  %s3784_s20 = smov [#allocation2]  }
   0x3   : > { %s169_s21 = sshll.u32 %s3784_s20, 4  ;;  %p3844_p3 = scmp.eq.s32.totalorder %s2885_s19, 0  ;;  %s170_s21 = int_to_ptr.vmem [resolvable:$true] %s169_s21 }
   0x4   : > { %p3838_p2 = pnand %p2887_p0, %p157_p1  ;;  %s3744_s27 = scalar_lea.hbm %s5225_s1, 32768 }
   0x5   : > { %s5234_s23 = scalar_select %p3844_p3, 1, 0 }
   0x6   : > { %s5233_s22 = scalar_select %p3838_p2, 1, 0 }
   0x7   : > { %p3630_p4 = pneg %p3838_p2  ;;  %p3745_p6 = scmp.ne.s32.totalorder %s5225_s1, %s3744_s27 }
   0x8   : > { %p3751_p10 = scmp.lt.u32.totalorder %s3744_s27, %s5225_s1 }
   0x9   : > { %p3852_p5 = pnand %p3844_p3, %p3630_p4 }
   0xb   : > { %p3746_p7 = pneg %p3852_p5 }
   0xd   : > { %p3747_p8 = pnand %p3746_p7, %p3745_p6 }
   0xf   : > { %p3748_p9 = pneg %p3747_p8 }
  0x11   : > { %p3753_p11 = pnand %p3751_p10, %p3748_p9 }
  0x13   : > { %3756 = shalt.err (!%p3753_p11)
}
  0x14   : > { %s3757_s7 = scalar_lea.vmem %s170_s21, 32768  ;;  %p3765_p1 = scmp.lt.s32.totalorder %s170_s21, %s170_s21 }
  0x15   : > { %p3758_p12 = scmp.ne.s32.totalorder %s170_s21, %s3757_s7  ;;  %p3766_p4 = scmp.lt.s32.totalorder %s3757_s7, %s3757_s7 }
  0x17   : > { %p3760_p13 = pnand %p3758_p12, %p3746_p7  ;;  %p3767_p3 = por %p3766_p4, %p3765_p1 }
  0x19   : > { %p3761_p0 = pneg %p3760_p13 }
  0x1b   : > { %p3768_p2 = pnand %p3767_p3, %p3761_p0 }
  0x1d   : > { %3771 = shalt.err (!%p3768_p2)
}
  0x1e   : > { %s3785_s8 = smov 256   ;;  %s3786_s9 = smov 16  }
  0x1f   : > { %3633 = dma.hbm_to_vmem [thread:$0]  (!%p3852_p5), %s5225_s1, 32768, %s170_s21, [#allocation3], %s3785_s8, %s3785_s8, %s3786_s9  }
  0x20   : > { %p5236_p6 = scmp.ne.s32.totalorder %s5233_s22, 0 }
  0x21   : > { %p5237_p8 = scmp.ne.s32.totalorder (!%p5236_p6), %s5234_s23, 0 }
  0x22   : > { %203 = sbr.rel (%p5236_p6) target bundleno = 1399 (0x577), region = 40 }
  0x29   : > { %3777 = dma.done.wait (%p5237_p8), [#allocation3], 32768  }
  0x2a   : > { %3779 = vsyncadd (%p5237_p8), [#allocation3], 4294934528  ;;  %s2892_s12 = sshll.u32 %s2885_s19, 4  ;;  %v3787_v0 = vmov 3   ;;  %v3788_v4 = vmov 2   ;;  %v1094_v5 = vld [vmem:[#allocation2 + $0x208] sm:$0xff] }
  0x2b   : > { %3661 = vset.pattern.permute.xlu1 %v3787_v0  ;;  %3660 = vset.pattern.permute.xlu0 %v3787_v0  ;;  %p232_p2 = scmp.lt.s32.totalorder %s2892_s12, 31  ;;  %v1096_v6 = vld [vmem:[#allocation2 + $0x218] sm:$0xff]  ;;  %v1093_v8 = vld [vmem:[#allocation2 + $0x200] sm:$0xff]  ;;  %v1095_v9 = vld [vmem:[#allocation2 + $0x210] sm:$0xff]  ;;  %s3796_s17 = smov 112  }
  0x2c   : > { %v3294_v7 = vpack.c.bf16 %v1096_v6, %v1094_v5  ;;  %v1098_v10 = vld [vmem:[#allocation2 + $0x228] sm:$0xff]  ;;  %v3296_v11 = vpack.c.bf16 %v1095_v9, %v1093_v8  ;;  %v1100_v12 = vld [vmem:[#allocation2 + $0x238] sm:$0xff]  ;;  %v1097_v13 = vld [vmem:[#allocation2 + $0x220] sm:$0xff]  ;;  %s3797_s19 = smov 64   ;;  %s3798_s20 = smov 96  }
  0x2d   : > { %s5239_s12 = smov (!%p232_p2, %s2892_s12), 31  ;;  %v1099_v14 = vld [vmem:[#allocation2 + $0x230] sm:$0xff]  ;;  %v3298_v16 = vpack.c.bf16 %v1100_v12, %v1098_v10  ;;  %v1102_v17 = vld [vmem:[#allocation2 + $0x248] sm:$0xff]  ;;  %v1104_v18 = vld [vmem:[#allocation2 + $0x258] sm:$0xff]  ;;  %s3799_s21 = smov 48  }
  0x2e   : > { %s2893_s13 = sshll.u32 %s5239_s12, 3  ;;  %3295 = vmatprep.subr.bf16.mxu0 %v3294_v7  ;;  %v3300_v19 = vpack.c.bf16 %v1099_v14, %v1097_v13  ;;  %v3302_v20 = vpack.c.bf16 %v1104_v18, %v1102_v17  ;;  %v1101_v21 = vld [vmem:[#allocation2 + $0x240] sm:$0xff]  ;;  %v1103_v22 = vld [vmem:[#allocation2 + $0x250] sm:$0xff]  ;;  %v1106_v23 = vld [vmem:[#allocation2 + $0x268] sm:$0xff] }
  0x2f   : > { %s3890_s16 = scalar_lea.vmem %s5224_s0, %s2893_s13  ;;  %3297 = vmatpush1.bf16.msra.mxu0 %v3296_v11  ;;  %v1108_v24 = vld [vmem:[#allocation2 + $0x278] sm:$0xff]  ;;  %v3304_v26 = vpack.c.bf16 %v1103_v22, %v1101_v21  ;;  %v1105_v28 = vld [vmem:[#allocation2 + $0x260] sm:$0xff]  ;;  %v1107_v29 = vld [vmem:[#allocation2 + $0x270] sm:$0xff] }
  0x30   : > { %v3893_v1 = vld [vmem:[%s3890_s16 + $0x8] sm:$0xff]  ;;  %v3896_v2 = vld [vmem:[%s3890_s16] sm:$0xff]  ;;  %v3901_v3 = vld [vmem:[%s3890_s16 + $0x70] sm:$0xff]  ;;  %3299 = vmatprep.subr.bf16.mxu0 %v3298_v16  ;;  %v3306_v27 = vpack.c.bf16 %v1108_v24, %v1106_v23  ;;  %v3308_v33 = vpack.c.bf16 %v1107_v29, %v1105_v28 }
  0x31   : > { %553 = vperm.xlu1 %3661, %v3893_v1   ;;  %550 = vperm.xlu0 %3660, %v3896_v2   ;;  %v3907_v15 = vld [vmem:[%s3890_s16 + $0x10] sm:$0xff]  ;;  %v3914_v25 = vld [vmem:[%s3890_s16 + $0x18] sm:$0xff]  ;;  %v1110_v30 = vld [vmem:[#allocation2 + $0x288] sm:$0xff] }
  0x32   : > { %v1112_v31 = vld [vmem:[#allocation2 + $0x298] sm:$0xff]  ;;  %v3919_v32 = vld [vmem:[%s3890_s16 + $0x20] sm:$0xff]  ;;  %v1111_v36 = vld [vmem:[#allocation2 + $0x290] sm:$0xff] }
  0x33   : > { %3301 = vmatpush1.bf16.msra.mxu0 %v3300_v19  ;;  %v3310_v34 = vpack.c.bf16 %v1112_v31, %v1110_v30  ;;  %v1109_v35 = vld [vmem:[#allocation2 + $0x280] sm:$0xff]  ;;  %v1114_v37 = vld [vmem:[#allocation2 + $0x2a8] sm:$0xff]  ;;  %v1116_v38 = vld [vmem:[#allocation2 + $0x2b8] sm:$0xff] }
  0x34   : > { %3303 = vmatprep.subr.bf16.mxu0 %v3302_v20  ;;  %v3924_v39 = vld [vmem:[%s3890_s16 + $0x28] sm:$0xff]  ;;  %v3312_v40 = vpack.c.bf16 %v1111_v36, %v1109_v35  ;;  %v3314_v41 = vpack.c.bf16 %v1116_v38, %v1114_v37  ;;  %v1113_v42 = vld [vmem:[#allocation2 + $0x2a0] sm:$0xff]  ;;  %v1115_v43 = vld [vmem:[#allocation2 + $0x2b0] sm:$0xff] }
  0x35   : > { %3662 = vset.pattern.permute.xlu1 %v3788_v4  ;;  %592 = vperm.xlu0 %3660, %v3901_v3   ;;  %v3929_v44 = vld [vmem:[%s3890_s16 + $0x30] sm:$0xff]  ;;  %v1118_v45 = vld [vmem:[#allocation2 + $0x2c8] sm:$0xff]  ;;  %v1120_v46 = vld [vmem:[#allocation2 + $0x2d8] sm:$0xff]  ;;  %v3316_v50 = vpack.c.bf16 %v1115_v43, %v1113_v42 }
  0x36   : > { %457 = vperm.xlu1 %3662, %v3893_v1   ;;  %v1030_v47 = vld [vmem:[#allocation2 + $0x8] sm:$0xff]  ;;  %v1032_v48 = vld [vmem:[#allocation2 + $0x18] sm:$0xff]  ;;  %v1029_v49 = vld [vmem:[#allocation2] sm:$0xff]  ;;  %v3318_v55 = vpack.c.bf16 %v1120_v46, %v1118_v45 }
  0x37   : > { %3305 = vmatpush1.bf16.msra.mxu0 %v3304_v26  ;;  %v1117_v51 = vld [vmem:[#allocation2 + $0x2c0] sm:$0xff]  ;;  %v1119_v52 = vld [vmem:[#allocation2 + $0x2d0] sm:$0xff]  ;;  %v3230_v53 = vpack.c.bf16 %v1032_v48, %v1030_v47  ;;  %v1122_v56 = vld [vmem:[#allocation2 + $0x2e8] sm:$0xff] }
  0x38   : > { %3307 = vmatprep.subr.bf16.mxu0 %v3306_v27  ;;  %v1031_v54 = vld [vmem:[#allocation2 + $0x10] sm:$0xff]  ;;  %v1124_v57 = vld [vmem:[#allocation2 + $0x2f8] sm:$0xff]  ;;  %v1034_v59 = vld [vmem:[#allocation2 + $0x28] sm:$0xff]  ;;  %v3320_v8 = vpack.c.bf16 %v1119_v52, %v1117_v51 }
  0x39   : > { %3665 = vset.pattern.permute.xlu0 %v3788_v4  ;;  %v3232_v58 = vpack.c.bf16 %v1031_v54, %v1029_v49  ;;  %3231 = vmatprep.subr.bf16.mxu1 %v3230_v53  ;;  %v1036_v60 = vld [vmem:[#allocation2 + $0x38] sm:$0xff]  ;;  %v1033_v61 = vld [vmem:[#allocation2 + $0x20] sm:$0xff]  ;;  %v1035_v62 = vld [vmem:[#allocation2 + $0x30] sm:$0xff]  ;;  %v3322_v12 = vpack.c.bf16 %v1124_v57, %v1122_v56 }
  0x3a   : > { %3663 = vset.pattern.permute.xlu1 %v3787_v0  ;;  %454 = vperm.xlu0 %3665, %v3896_v2   ;;  %v3934_v63 = vld [vmem:[%s3890_s16 + $0x38] sm:$0xff]  ;;  %v1121_v5 = vld [vmem:[#allocation2 + $0x2e0] sm:$0xff]  ;;  %v3234_v6 = vpack.c.bf16 %v1036_v60, %v1034_v59  ;;  %v3236_v7 = vpack.c.bf16 %v1035_v62, %v1033_v61  ;;  %v1123_v9 = vld [vmem:[#allocation2 + $0x2f0] sm:$0xff] }
  0x3b   : > { %556 = vperm.xlu1 %3663, %v3907_v15   ;;  %3309 = vmatpush1.bf16.msra.mxu0 %v3308_v33  ;;  %v1038_v10 = vld [vmem:[#allocation2 + $0x48] sm:$0xff]  ;;  %v1040_v11 = vld [vmem:[#allocation2 + $0x58] sm:$0xff]  ;;  %v1037_v14 = vld [vmem:[#allocation2 + $0x40] sm:$0xff]  ;;  %v3324_v23 = vpack.c.bf16 %v1123_v9, %v1121_v5 }
  0x3c   : > { %3311 = vmatprep.subr.bf16.mxu0 %v3310_v34  ;;  %3233 = vmatpush1.bf16.msra.mxu1 %v3232_v58  ;;  %v3238_v13 = vpack.c.bf16 %v1040_v11, %v1038_v10  ;;  %v1039_v16 = vld [vmem:[#allocation2 + $0x50] sm:$0xff]  ;;  %v1042_v17 = vld [vmem:[#allocation2 + $0x68] sm:$0xff]  ;;  %v1128_v19 = vld [vmem:[#allocation2 + $0x318] sm:$0xff] }
  0x3d   : > { %v1126_v18 = vld [vmem:[#allocation2 + $0x308] sm:$0xff]  ;;  %3235 = vmatprep.subr.bf16.mxu1 %v3234_v6  ;;  %v1044_v20 = vld [vmem:[#allocation2 + $0x78] sm:$0xff]  ;;  %v3939_v21 = vld [vmem:[%s3890_s16 + $0x40] sm:$0xff]  ;;  %v3240_v22 = vpack.c.bf16 %v1039_v16, %v1037_v14 }
  0x3e   : > { %460 = vperm.xlu0 %3665, %v3907_v15   ;;  %v1125_v24 = vld [vmem:[#allocation2 + $0x300] sm:$0xff]  ;;  %v3242_v26 = vpack.c.bf16 %v1044_v20, %v1042_v17  ;;  %v1043_v28 = vld [vmem:[#allocation2 + $0x70] sm:$0xff]  ;;  %v3326_v29 = vpack.c.bf16 %v1128_v19, %v1126_v18  ;;  %v1046_v31 = vld [vmem:[#allocation2 + $0x88] sm:$0xff] }
  0x3f   : > { %559 = vperm.xlu1 %3663, %v3914_v25   ;;  %3313 = vmatpush1.bf16.msra.mxu0 %v3312_v40  ;;  %v1041_v27 = vld [vmem:[#allocation2 + $0x60] sm:$0xff]  ;;  %v1127_v30 = vld [vmem:[#allocation2 + $0x310] sm:$0xff]  ;;  %v1048_v33 = vld [vmem:[#allocation2 + $0x98] sm:$0xff] }
  0x40   : > { %3315 = vmatprep.subr.bf16.mxu0 %v3314_v41  ;;  %3237 = vmatpush1.bf16.msra.mxu1 %v3236_v7  ;;  %v1130_v34 = vld [vmem:[#allocation2 + $0x328] sm:$0xff]  ;;  %v1132_v35 = vld [vmem:[#allocation2 + $0x338] sm:$0xff]  ;;  %v3244_v37 = vpack.c.bf16 %v1043_v28, %v1041_v27  ;;  %v3328_v38 = vpack.c.bf16 %v1127_v30, %v1125_v24  ;;  %v1129_v40 = vld [vmem:[#allocation2 + $0x320] sm:$0xff]  ;;  %v3246_v41 = vpack.c.bf16 %v1048_v33, %v1046_v31 }
  0x41   : > { %3239 = vmatprep.subr.bf16.mxu1 %v3238_v13  ;;  %v3944_v36 = vld [vmem:[%s3890_s16 + $0x48] sm:$0xff]  ;;  %v1045_v42 = vld [vmem:[#allocation2 + $0x80] sm:$0xff]  ;;  %v1047_v43 = vld [vmem:[#allocation2 + $0x90] sm:$0xff]  ;;  %v3330_v45 = vpack.c.bf16 %v1132_v35, %v1130_v34 }
  0x42   : > { %463 = vperm.xlu0 %3665, %v3914_v25   ;;  %v1131_v46 = vld [vmem:[#allocation2 + $0x330] sm:$0xff]  ;;  %v1050_v47 = vld [vmem:[#allocation2 + $0xa8] sm:$0xff]  ;;  %v1052_v48 = vld [vmem:[#allocation2 + $0xb8] sm:$0xff]  ;;  %v3248_v52 = vpack.c.bf16 %v1047_v43, %v1045_v42 }
  0x43   : > { %562 = vperm.xlu1 %3663, %v3919_v32   ;;  %3317 = vmatpush1.bf16.msra.mxu0 %v3316_v50  ;;  %v1134_v49 = vld [vmem:[#allocation2 + $0x348] sm:$0xff]  ;;  %v1136_v50 = vld [vmem:[#allocation2 + $0x358] sm:$0xff]  ;;  %v3949_v51 = vld [vmem:[%s3890_s16 + $0x50] sm:$0xff]  ;;  %v3332_v53 = vpack.c.bf16 %v1131_v46, %v1129_v40 }
  0x44   : > { %3319 = vmatprep.subr.bf16.mxu0 %v3318_v55  ;;  %3241 = vmatpush1.bf16.msra.mxu1 %v3240_v22  ;;  %v1133_v54 = vld [vmem:[#allocation2 + $0x340] sm:$0xff]  ;;  %v3250_v55 = vpack.c.bf16 %v1052_v48, %v1050_v47  ;;  %v1051_v57 = vld [vmem:[#allocation2 + $0xb0] sm:$0xff]  ;;  %v3334_v58 = vpack.c.bf16 %v1136_v50, %v1134_v49  ;;  %v1054_v60 = vld [vmem:[#allocation2 + $0xc8] sm:$0xff] }
  0x45   : > { %3243 = vmatprep.subr.bf16.mxu1 %v3242_v26  ;;  %v1049_v56 = vld [vmem:[#allocation2 + $0xa0] sm:$0xff]  ;;  %v1135_v59 = vld [vmem:[#allocation2 + $0x350] sm:$0xff]  ;;  %v1056_v61 = vld [vmem:[#allocation2 + $0xd8] sm:$0xff] }
  0x46   : > { %466 = vperm.xlu0 %3665, %v3919_v32   ;;  %v1138_v62 = vld [vmem:[#allocation2 + $0x368] sm:$0xff]  ;;  %v1140_v5 = vld [vmem:[#allocation2 + $0x378] sm:$0xff]  ;;  %v3252_v7 = vpack.c.bf16 %v1051_v57, %v1049_v56  ;;  %v1137_v9 = vld [vmem:[#allocation2 + $0x360] sm:$0xff]  ;;  %v3254_v10 = vpack.c.bf16 %v1056_v61, %v1054_v60  ;;  %v3789_v61 = vmov 1  }
  0x47   : > { %565 = vperm.xlu1 %3663, %v3924_v39   ;;  %3321 = vmatpush1.bf16.msra.mxu0 %v3320_v8  ;;  %v3954_v6 = vld [vmem:[%s3890_s16 + $0x58] sm:$0xff]  ;;  %v3336_v8 = vpack.c.bf16 %v1135_v59, %v1133_v54  ;;  %v1053_v11 = vld [vmem:[#allocation2 + $0xc0] sm:$0xff]  ;;  %v3338_v13 = vpack.c.bf16 %v1140_v5, %v1138_v62  ;;  %v1139_v14 = vld [vmem:[#allocation2 + $0x370] sm:$0xff] }
  0x48   : > { %3323 = vmatprep.subr.bf16.mxu0 %v3322_v12  ;;  %3245 = vmatpush1.bf16.msra.mxu1 %v3244_v37  ;;  %v1055_v12 = vld [vmem:[#allocation2 + $0xd0] sm:$0xff]  ;;  %v1058_v16 = vld [vmem:[#allocation2 + $0xe8] sm:$0xff]  ;;  %v1060_v17 = vld [vmem:[#allocation2 + $0xf8] sm:$0xff] }
  0x49   : > { %3247 = vmatprep.subr.bf16.mxu1 %v3246_v41  ;;  %v1142_v18 = vld [vmem:[#allocation2 + $0x388] sm:$0xff]  ;;  %v1144_v19 = vld [vmem:[#allocation2 + $0x398] sm:$0xff]  ;;  %v3959_v20 = vld [vmem:[%s3890_s16 + $0x60] sm:$0xff]  ;;  %v3256_v22 = vpack.c.bf16 %v1055_v12, %v1053_v11  ;;  %v3258_v26 = vpack.c.bf16 %v1060_v17, %v1058_v16 }
  0x4a   : > { %469 = vperm.xlu0 %3665, %v3924_v39   ;;  %v1141_v24 = vld [vmem:[#allocation2 + $0x380] sm:$0xff]  ;;  %v1059_v28 = vld [vmem:[#allocation2 + $0xf0] sm:$0xff]  ;;  %v1062_v31 = vld [vmem:[#allocation2 + $0x108] sm:$0xff] }
  0x4b   : > { %568 = vperm.xlu1 %3663, %v3929_v44   ;;  %3325 = vmatpush1.bf16.msra.mxu0 %v3324_v23  ;;  %v3340_v23 = vpack.c.bf16 %v1139_v14, %v1137_v9  ;;  %v1057_v27 = vld [vmem:[#allocation2 + $0xe0] sm:$0xff]  ;;  %v1143_v30 = vld [vmem:[#allocation2 + $0x390] sm:$0xff]  ;;  %v1064_v33 = vld [vmem:[#allocation2 + $0x118] sm:$0xff] }
  0x4c   : > { %3327 = vmatprep.subr.bf16.mxu0 %v3326_v29  ;;  %3249 = vmatpush1.bf16.msra.mxu1 %v3248_v52  ;;  %v3342_v29 = vpack.c.bf16 %v1144_v19, %v1142_v18  ;;  %v1146_v34 = vld [vmem:[#allocation2 + $0x3a8] sm:$0xff]  ;;  %v1148_v35 = vld [vmem:[#allocation2 + $0x3b8] sm:$0xff]  ;;  %v3344_v40 = vpack.c.bf16 %v1143_v30, %v1141_v24  ;;  %v1145_v41 = vld [vmem:[#allocation2 + $0x3a0] sm:$0xff]  ;;  %v3262_v42 = vpack.c.bf16 %v1064_v33, %v1062_v31  ;;  %v3791_v31 = vmov 4  }
  0x4d   : > { %3251 = vmatprep.subr.bf16.mxu1 %v3250_v55  ;;  %v3964_v37 = vld [vmem:[%s3890_s16 + $0x68] sm:$0xff]  ;;  %v1061_v43 = vld [vmem:[#allocation2 + $0x100] sm:$0xff]  ;;  %v3346_v46 = vpack.c.bf16 %v1148_v35, %v1146_v34  ;;  %v1147_v47 = vld [vmem:[#allocation2 + $0x3b0] sm:$0xff] }
  0x4e   : > { %472 = vperm.xlu0 %3665, %v3929_v44   ;;  %v1066_v48 = vld [vmem:[#allocation2 + $0x128] sm:$0xff]  ;;  %v1068_v49 = vld [vmem:[#allocation2 + $0x138] sm:$0xff]  ;;  %v3348_v54 = vpack.c.bf16 %v1147_v47, %v1145_v41  ;;  %v1065_v56 = vld [vmem:[#allocation2 + $0x120] sm:$0xff] }
  0x4f   : > { %571 = vperm.xlu1 %3663, %v3934_v63   ;;  %3329 = vmatpush1.bf16.msra.mxu0 %v3328_v38  ;;  %v3260_v38 = vpack.c.bf16 %v1059_v28, %v1057_v27  ;;  %v1150_v50 = vld [vmem:[#allocation2 + $0x3c8] sm:$0xff]  ;;  %v1152_v52 = vld [vmem:[#allocation2 + $0x3d8] sm:$0xff]  ;;  %v3266_v55 = vpack.c.bf16 %v1068_v49, %v1066_v48  ;;  %v1067_v57 = vld [vmem:[#allocation2 + $0x130] sm:$0xff] }
  0x50   : > { %3331 = vmatprep.subr.bf16.mxu0 %v3330_v45  ;;  %3253 = vmatpush1.bf16.msra.mxu1 %v3252_v7  ;;  %v1063_v45 = vld [vmem:[#allocation2 + $0x110] sm:$0xff]  ;;  %v1149_v59 = vld [vmem:[#allocation2 + $0x3c0] sm:$0xff]  ;;  %v3971_v62 = vld [vmem:[%s3890_s16 + $0x78] sm:$0xff] }
  0x51   : > { %3255 = vmatprep.subr.bf16.mxu1 %v3254_v10  ;;  %v1151_v60 = vld [vmem:[#allocation2 + $0x3d0] sm:$0xff]  ;;  %v1154_v5 = vld [vmem:[#allocation2 + $0x3e8] sm:$0xff]  ;;  %v1156_v7 = vld [vmem:[#allocation2 + $0x3f8] sm:$0xff] }
  0x52   : > { %475 = vperm.xlu0 %3665, %v3934_v63   ;;  %v1070_v9 = vld [vmem:[#allocation2 + $0x148] sm:$0xff]  ;;  %v1072_v10 = vld [vmem:[#allocation2 + $0x158] sm:$0xff]  ;;  %v3352_v11 = vpack.c.bf16 %v1151_v60, %v1149_v59  ;;  %v1069_v12 = vld [vmem:[#allocation2 + $0x140] sm:$0xff]  ;;  %v3354_v14 = vpack.c.bf16 %v1156_v7, %v1154_v5 }
  0x53   : > { %574 = vperm.xlu1 %3663, %v3939_v21   ;;  %3333 = vmatpush1.bf16.msra.mxu0 %v3332_v53  ;;  %v3264_v53 = vpack.c.bf16 %v1063_v45, %v1061_v43  ;;  %v1153_v16 = vld [vmem:[#allocation2 + $0x3e0] sm:$0xff]  ;;  %v1155_v17 = vld [vmem:[#allocation2 + $0x3f0] sm:$0xff]  ;;  %v1158_v18 = vld [vmem:[#allocation2 + $0x408] sm:$0xff] }
  0x54   : > { %3335 = vmatprep.subr.bf16.mxu0 %v3334_v58  ;;  %3257 = vmatpush1.bf16.msra.mxu1 %v3256_v22  ;;  %v3350_v58 = vpack.c.bf16 %v1152_v52, %v1150_v50  ;;  %v1160_v19 = vld [vmem:[#allocation2 + $0x418] sm:$0xff]  ;;  %v3270_v22 = vpack.c.bf16 %v1072_v10, %v1070_v9  ;;  %v3356_v28 = vpack.c.bf16 %v1155_v17, %v1153_v16  ;;  %v1075_v30 = vld [vmem:[#allocation2 + $0x170] sm:$0xff]  ;;  %v1078_v34 = vld [vmem:[#allocation2 + $0x188] sm:$0xff]  ;;  %v259_v9 = vlaneseq }
  0x55   : > { %3259 = vmatprep.subr.bf16.mxu1 %v3258_v26  ;;  %v1074_v26 = vld [vmem:[#allocation2 + $0x168] sm:$0xff]  ;;  %v1076_v27 = vld [vmem:[#allocation2 + $0x178] sm:$0xff]  ;;  %v3358_v33 = vpack.c.bf16 %v1160_v19, %v1158_v18  ;;  %v1079_v43 = vld [vmem:[#allocation2 + $0x190] sm:$0xff] }
  0x56   : > { %478 = vperm.xlu0 %3665, %v3939_v21   ;;  %v1080_v35 = vld [vmem:[#allocation2 + $0x198] sm:$0xff]  ;;  %v1082_v45 = vld [vmem:[#allocation2 + $0x1a8] sm:$0xff]  ;;  %v1081_v49 = vld [vmem:[#allocation2 + $0x1a0] sm:$0xff]  ;;  %v4020_v10 = vand.u32 127, %v259_v9 }
  0x57   : > { %577 = vperm.xlu1 %3663, %v3944_v36   ;;  %3337 = vmatpush1.bf16.msra.mxu0 %v3336_v8  ;;  %v3268_v8 = vpack.c.bf16 %v1067_v57, %v1065_v56  ;;  %v3278_v41 = vpack.c.bf16 %v1080_v35, %v1078_v34  ;;  %v1086_v50 = vld [vmem:[#allocation2 + $0x1c8] sm:$0xff]  ;;  %v1088_v52 = vld [vmem:[#allocation2 + $0x1d8] sm:$0xff]  ;;  %v1087_v56 = vld [vmem:[#allocation2 + $0x1d0] sm:$0xff] }
  0x58   : > { %3339 = vmatprep.subr.bf16.mxu0 %v3338_v13  ;;  %3261 = vmatpush1.bf16.msra.mxu1 %v3260_v38  ;;  %v1071_v13 = vld [vmem:[#allocation2 + $0x150] sm:$0xff]  ;;  %v3274_v38 = vpack.c.bf16 %v1076_v27, %v1074_v26  ;;  %v1090_v57 = vld [vmem:[#allocation2 + $0x1e8] sm:$0xff]  ;;  %v1089_v60 = vld [vmem:[#allocation2 + $0x1e0] sm:$0xff] }
  0x59   : > { %3263 = vmatprep.subr.bf16.mxu1 %v3262_v42  ;;  %v3272_v24 = vpack.c.bf16 %v1071_v13, %v1069_v12  ;;  %v1077_v42 = vld [vmem:[#allocation2 + $0x180] sm:$0xff]  ;;  %v1091_v5 = vld [vmem:[#allocation2 + $0x1f0] sm:$0xff]  ;;  %v1162_v18 = vld [vmem:[#allocation2 + $0x428] sm:$0xff] }
  0x5a   : > { %481 = vperm.xlu0 %3665, %v3944_v36   ;;  %v3280_v47 = vpack.c.bf16 %v1079_v43, %v1077_v42  ;;  %v3292_v7 = vpack.c.bf16 %v1091_v5, %v1089_v60  ;;  %v1157_v16 = vld [vmem:[#allocation2 + $0x400] sm:$0xff]  ;;  %v1159_v17 = vld [vmem:[#allocation2 + $0x410] sm:$0xff]  ;;  %v1164_v19 = vld [vmem:[#allocation2 + $0x438] sm:$0xff] }
  0x5b   : > { %580 = vperm.xlu1 %3663, %v3949_v51   ;;  %3341 = vmatpush1.bf16.msra.mxu0 %v3340_v23  ;;  %v3790_v23 = vmov 0   ;;  %v3362_v27 = vpack.c.bf16 %v1164_v19, %v1162_v18  ;;  %v1170_v42 = vld [vmem:[#allocation2 + $0x468] sm:$0xff]  ;;  %v1172_v43 = vld [vmem:[#allocation2 + $0x478] sm:$0xff]  ;;  %v1177_v9 = vld [vmem:[#allocation2 + $0x4a0] sm:$0xff] }
  0x5c   : > { %3343 = vmatprep.subr.bf16.mxu0 %v3342_v29  ;;  %3265 = vmatpush1.bf16.msra.mxu1 %v3264_v53  ;;  %v1073_v29 = vld [vmem:[#allocation2 + $0x160] sm:$0xff] }
  0x5d   : > { %3267 = vmatprep.subr.bf16.mxu1 %v3266_v55  ;;  %v1085_v55 = vld [vmem:[#allocation2 + $0x1c0] sm:$0xff] }
  0x5e   : > { %484 = vperm.xlu0 %3665, %v3949_v51  }
  0x5f   : > { %583 = vperm.xlu1 %3663, %v3954_v6   ;;  %3345 = vmatpush1.bf16.msra.mxu0 %v3344_v40  ;;  %v3276_v40 = vpack.c.bf16 %v1075_v30, %v1073_v29  ;;  %v1163_v29 = vld [vmem:[#allocation2 + $0x430] sm:$0xff]  ;;  %v1166_v30 = vld [vmem:[#allocation2 + $0x448] sm:$0xff] }
  0x60   : > { %3347 = vmatprep.subr.bf16.mxu0 %v3346_v46  ;;  %3269 = vmatpush1.bf16.msra.mxu1 %v3268_v8  ;;  %v1084_v46 = vld [vmem:[#allocation2 + $0x1b8] sm:$0xff]  ;;  %v3792_v8 = vmov 5  }
  0x61   : > { %3271 = vmatprep.subr.bf16.mxu1 %v3270_v22  ;;  %v3282_v48 = vpack.c.bf16 %v1084_v46, %v1082_v45 }
  0x62   : > { %487 = vperm.xlu0 %3665, %v3954_v6  }
  0x63   : > { %586 = vperm.xlu1 %3663, %v3959_v20   ;;  %3349 = vmatpush1.bf16.msra.mxu0 %v3348_v54  ;;  %v3286_v54 = vpack.c.bf16 %v1088_v52, %v1086_v50  ;;  %v1174_v50 = vld [vmem:[#allocation2 + $0x488] sm:$0xff]  ;;  %v1176_v52 = vld [vmem:[#allocation2 + $0x498] sm:$0xff] }
  0x64   : > { %3351 = vmatprep.subr.bf16.mxu0 %v3350_v58  ;;  %3273 = vmatpush1.bf16.msra.mxu1 %v3272_v24  ;;  %v3288_v58 = vpack.c.bf16 %v1087_v56, %v1085_v55  ;;  %v3360_v24 = vpack.c.bf16 %v1159_v17, %v1157_v16  ;;  %v3374_v56 = vpack.c.bf16 %v1176_v52, %v1174_v50  ;;  %v1193_v50 = vld [vmem:[#allocation2 + $0x520] sm:$0xff]  ;;  %v1195_v52 = vld [vmem:[#allocation2 + $0x530] sm:$0xff] }
  0x65   : > { %3275 = vmatprep.subr.bf16.mxu1 %v3274_v38 }
  0x66   : > { %490 = vperm.xlu0 %3665, %v3959_v20  }
  0x67   : > { %589 = vperm.xlu1 %3663, %v3964_v37   ;;  %3353 = vmatpush1.bf16.msra.mxu0 %v3352_v11 }
  0x68   : > { %3355 = vmatprep.subr.bf16.mxu0 %v3354_v14  ;;  %3277 = vmatpush1.bf16.msra.mxu1 %v3276_v40  ;;  %v1165_v40 = vld [vmem:[#allocation2 + $0x440] sm:$0xff] }
  0x69   : > { %3279 = vmatprep.subr.bf16.mxu1 %v3278_v41  ;;  %v1167_v41 = vld [vmem:[#allocation2 + $0x450] sm:$0xff] }
  0x6a   : > { %493 = vperm.xlu0 %3665, %v3964_v37   ;;  %v3368_v46 = vpack.c.bf16 %v1167_v41, %v1165_v40 }
  0x6b   : > { %3664 = vset.pattern.permute.xlu1 %v3789_v61  ;;  %3357 = vmatpush1.bf16.msra.mxu0 %v3356_v28  ;;  %v1161_v28 = vld [vmem:[#allocation2 + $0x420] sm:$0xff] }
  0x6c   : > { %358 = vperm.xlu1 %3664, %v3896_v2   ;;  %3359 = vmatprep.subr.bf16.mxu0 %v3358_v33  ;;  %v3364_v34 = vpack.c.bf16 %v1163_v29, %v1161_v28  ;;  %v3794_v29 = vmov 6  }
  0x6d   : > { %3281 = vmatpush1.bf16.msra.mxu1 %v3280_v47 }
  0x6e   : > { %499 = vperm.xlu0 %3665, %v3971_v62   ;;  %3283 = vmatprep.subr.bf16.mxu1 %v3282_v48  ;;  %v3370_v48 = vpack.c.bf16 %v1172_v43, %v1170_v42  ;;  %v1189_v43 = vld [vmem:[#allocation2 + $0x500] sm:$0xff] }
  0x70   : > { %3666 = vset.pattern.permute.xlu1 %v3790_v23 }
  0x71   : > { %262 = vperm.xlu1 %3666, %v3896_v2  }
  0x72   : > { %3678 = vset.pattern.permute.xlu0 %v3791_v31 }
  0x73   : > { %652 = vperm.xlu0 %3678, %v3907_v15  }
  0x75   : > { %3667 = vset.pattern.permute.xlu1 %v3788_v4  ;;  %v1083_v4 = vld [vmem:[#allocation2 + $0x1b0] sm:$0xff] }
  0x76   : > { %496 = vperm.xlu1 %3667, %v3901_v3   ;;  %v3284_v53 = vpack.c.bf16 %v1083_v4, %v1081_v49  ;;  %v1169_v49 = vld [vmem:[#allocation2 + $0x460] sm:$0xff]  ;;  %v1171_v4 = vld [vmem:[#allocation2 + $0x470] sm:$0xff] }
  0x77   : > { %661 = vperm.xlu0 %3678, %v3924_v39  }
  0x78   : > { %3285 = vmatpush1.bf16.msra.mxu1 %v3284_v53 }
  0x79   : > { %3287 = vmatprep.subr.bf16.mxu1 %v3286_v54  ;;  %v3372_v54 = vpack.c.bf16 %v1171_v4, %v1169_v49 }
  0x7a   : > { %3668 = vset.pattern.permute.xlu1 %v3787_v0  ;;  %v1092_v0 = vld [vmem:[#allocation2 + $0x1f8] sm:$0xff] }
  0x7b   : > { %595 = vperm.xlu1 %3668, %v3971_v62   ;;  %3687 = vset.pattern.permute.xlu0 %v3789_v61  ;;  %v3290_v59 = vpack.c.bf16 %v1092_v0, %v1090_v57  ;;  %v1173_v57 = vld [vmem:[#allocation2 + $0x480] sm:$0xff]  ;;  %v1175_v0 = vld [vmem:[#allocation2 + $0x490] sm:$0xff] }
  0x7c   : > { %361 = vperm.xlu0 %3687, %v3893_v1   ;;  %3289 = vmatpush1.bf16.msra.mxu1 %v3288_v58  ;;  %v1178_v58 = vld [vmem:[#allocation2 + $0x4a8] sm:$0xff]  ;;  %v3376_v5 = vpack.c.bf16 %v1175_v0, %v1173_v57  ;;  %v3396_v57 = vpack.c.bf16 %v1195_v52, %v1193_v50  ;;  %v1217_v52 = vld [vmem:[#allocation2 + $0x5e0] sm:$0xff] }
  0x7d   : > { %3291 = vmatprep.subr.bf16.mxu1 %v3290_v59  ;;  %v1180_v59 = vld [vmem:[#allocation2 + $0x4b8] sm:$0xff] }
  0x7f   : > { %3669 = vset.pattern.permute.xlu1 %v3790_v23 }
  0x80   : > { %265 = vperm.xlu1 %3669, %v3893_v1   ;;  %370 = vperm.xlu0 %3687, %v3919_v32  }
  0x81   : > { %3293 = vmatpush1.bf16.msra.mxu1 %v3292_v7  ;;  %v3378_v7 = vpack.c.bf16 %v1180_v59, %v1178_v58  ;;  %v1197_v59 = vld [vmem:[#allocation2 + $0x540] sm:$0xff] }
  0x84   : > { %3670 = vset.pattern.permute.xlu1 %v3789_v61  ;;  %379 = vperm.xlu0 %3687, %v3934_v63  }
  0x85   : > { %364 = vperm.xlu1 %3670, %v3907_v15  }
  0x88   : > { %388 = vperm.xlu0 %3687, %v3949_v51  }
  0x89   : > { %3671 = vset.pattern.permute.xlu1 %v3792_v8 }
  0x8a   : > { %742 = vperm.xlu1 %3671, %v3896_v2  }
  0x8c   : > { %397 = vperm.xlu0 %3687, %v3964_v37  }
  0x8e   : > { %3672 = vset.pattern.permute.xlu1 %v3791_v31 }
  0x8f   : > { %646 = vperm.xlu1 %3672, %v3896_v2  }
  0x90   : > { %3702 = vset.pattern.permute.xlu0 %v3790_v23 }
  0x91   : > { %268 = vperm.xlu0 %3702, %v3907_v15  }
  0x93   : > { %3673 = vset.pattern.permute.xlu1 %v3789_v61 }
  0x94   : > { %367 = vperm.xlu1 %3673, %v3914_v25  }
  0x95   : > { %277 = vperm.xlu0 %3702, %v3924_v39  }
  0x98   : > { %3674 = vset.pattern.permute.xlu1 %v3790_v23 }
  0x99   : > { %271 = vperm.xlu1 %3674, %v3914_v25   ;;  %286 = vperm.xlu0 %3702, %v3939_v21  }
  0x9d   : > { %3675 = vset.pattern.permute.xlu1 %v3791_v31  ;;  %295 = vperm.xlu0 %3702, %v3954_v6  }
  0x9e   : > { %649 = vperm.xlu1 %3675, %v3893_v1  }
  0xa1   : > { %304 = vperm.xlu0 %3702, %v3901_v3  }
  0xa2   : > { %3676 = vset.pattern.permute.xlu1 %v3792_v8 }
  0xa3   : > { %748 = vperm.xlu1 %3676, %v3907_v15  }
  0xa5   : > { %3707 = vset.pattern.permute.xlu0 %v3792_v8 }
  0xa6   : > { %745 = vperm.xlu0 %3707, %v3893_v1   ;;  %v3793_v1 = vmov 1.0  }
  0xa7   : > { %3677 = vset.pattern.permute.xlu1 %v3790_v23 }
  0xa8   : > { %274 = vperm.xlu1 %3677, %v3919_v32  }
  0xaa   : > { %754 = vperm.xlu0 %3707, %v3919_v32  }
  0xac   : > { %3679 = vset.pattern.permute.xlu1 %v3789_v61 }
  0xad   : > { %373 = vperm.xlu1 %3679, %v3924_v39  }
  0xae   : > { %763 = vperm.xlu0 %3707, %v3934_v63  }
  0xb0   : > { %v554_v11 = vpop.permute.xlu1 %553  ;;  %v551_v12 = vpop.permute.xlu0 %550 }
  0xb1   : > { %3680 = vset.pattern.permute.xlu1 %v3792_v8  ;;  %vm597_vm0 = vcmp.eq.s32.totalorder %v551_v12, %v4020_v10  ;;  %vm598_vm2 = vcmp.eq.s32.totalorder %v554_v11, %v4020_v10  ;;  %v1179_v11 = vld [vmem:[#allocation2 + $0x4b0] sm:$0xff]  ;;  %v1182_v12 = vld [vmem:[#allocation2 + $0x4c8] sm:$0xff] }
  0xb2   : > { %751 = vperm.xlu1 %3680, %v3914_v25   ;;  %3056 = vmatprep.mubr.msk.f32.mxu0 %vm597_vm0, %v3793_v1  ;;  %v3380_v17 = vpack.c.bf16 %v1179_v11, %v1177_v9 }
  0xb3   : > { %772 = vperm.xlu0 %3707, %v3949_v51  }
  0xb4   : > { %v4027_v13 = vpop.permute.xlu0 %592 }
  0xb5   : > { %v458_v14 = vpop.permute.xlu1 %457 }
  0xb6   : > { %3681 = vset.pattern.permute.xlu1 %v3791_v31  ;;  %vm502_vm3 = vcmp.eq.s32.totalorder %v458_v14, %v4020_v10  ;;  %v1184_v14 = vld [vmem:[#allocation2 + $0x4d8] sm:$0xff] }
  0xb7   : > { %655 = vperm.xlu1 %3681, %v3914_v25   ;;  %781 = vperm.xlu0 %3707, %v3964_v37   ;;  %v1168_v25 = vld [vmem:[#allocation2 + $0x458] sm:$0xff]  ;;  %v3382_v19 = vpack.c.bf16 %v1184_v14, %v1182_v12  ;;  %v1201_v14 = vld [vmem:[#allocation2 + $0x560] sm:$0xff] }
  0xb8   : > { %v3366_v38 = vpack.c.bf16 %v1168_v25, %v1166_v30 }
  0xb9   : > { %v455_v22 = vpop.permute.xlu0 %454 }
  0xba   : > { %vm501_vm1 = vcmp.eq.s32.totalorder %v455_v22, %v4020_v10  ;;  %v557_v26 = vpop.permute.xlu1 %556  ;;  %v1181_v22 = vld [vmem:[#allocation2 + $0x4c0] sm:$0xff] }
  0xbb   : > { %3682 = vset.pattern.permute.xlu1 %v3789_v61  ;;  %3057 = vmatmul.mubr.msk.f32.vlgmr.msra.gmra.mrb[0].mxu0 %vm501_vm1, %v3793_v1  ;;  %vm599_vm4 = vcmp.eq.s32.totalorder %v557_v26, %v4020_v10  ;;  %v1186_v26 = vld [vmem:[#allocation2 + $0x4e8] sm:$0xff] }
  0xbc   : > { %376 = vperm.xlu1 %3682, %v3929_v44   ;;  %3058 = vmatprep.mubr.msk.f32.mxu0 %vm598_vm2, %v3793_v1 }
  0xbd   : > { %v461_v33 = vpop.permute.xlu0 %460  ;;  %3361 = vmatpush1.bf16.msra.mxu0 %v3360_v24  ;;  %784 = vperm.xlu0 %3707, %v3901_v3   ;;  %v1183_v24 = vld [vmem:[#allocation2 + $0x4d0] sm:$0xff] }
  0xbe   : > { %v560_v35 = vpop.permute.xlu1 %559  ;;  %3363 = vmatprep.subr.bf16.mxu0 %v3362_v27  ;;  %vm503_vm5 = vcmp.eq.s32.totalorder %v461_v33, %v4020_v10  ;;  %v1188_v27 = vld [vmem:[#allocation2 + $0x4f8] sm:$0xff]  ;;  %v3384_v28 = vpack.c.bf16 %v1183_v24, %v1181_v22  ;;  %v1185_v33 = vld [vmem:[#allocation2 + $0x4e0] sm:$0xff] }
  0xbf   : > { %3059 = vmatmul.mubr.msk.f32.gmra.mrb[2].mxu0 %vm502_vm3, %v3793_v1  ;;  %vm600_vm6 = vcmp.eq.s32.totalorder %v560_v35, %v4020_v10  ;;  %v3386_v25 = vpack.c.bf16 %v1188_v27, %v1186_v26  ;;  %v1190_v35 = vld [vmem:[#allocation2 + $0x508] sm:$0xff]  ;;  %v1205_v26 = vld [vmem:[#allocation2 + $0x580] sm:$0xff]  ;;  %v1207_v27 = vld [vmem:[#allocation2 + $0x590] sm:$0xff] }
  0xc0   : > { %3683 = vset.pattern.permute.xlu1 %v3790_v23  ;;  %3060 = vmatprep.mubr.msk.f32.mxu0 %vm599_vm4, %v3793_v1 }
  0xc1   : > { %280 = vperm.xlu1 %3683, %v3929_v44   ;;  %v464_v45 = vpop.permute.xlu0 %463  ;;  %3365 = vmatpush1.bf16.msra.mxu0 %v3364_v34  ;;  %v1187_v34 = vld [vmem:[#allocation2 + $0x4f0] sm:$0xff] }
  0xc2   : > { %v563_v47 = vpop.permute.xlu1 %562  ;;  %3367 = vmatprep.subr.bf16.mxu0 %v3366_v38  ;;  %3712 = vset.pattern.permute.xlu0 %v3791_v31  ;;  %vm504_vm7 = vcmp.eq.s32.totalorder %v464_v45, %v4020_v10  ;;  %v1192_v38 = vld [vmem:[#allocation2 + $0x518] sm:$0xff]  ;;  %v3388_v41 = vpack.c.bf16 %v1187_v34, %v1185_v33  ;;  %v1191_v45 = vld [vmem:[#allocation2 + $0x510] sm:$0xff] }
  0xc3   : > { %3061 = vmatmul.mubr.msk.f32.gmra.mrb[4].mxu0 %vm503_vm5, %v3793_v1  ;;  %670 = vperm.xlu0 %3712, %v3939_v21   ;;  %vm601_vm8 = vcmp.eq.s32.totalorder %v563_v47, %v4020_v10  ;;  %v1196_v47 = vld [vmem:[#allocation2 + $0x538] sm:$0xff]  ;;  %v3392_v49 = vpack.c.bf16 %v1191_v45, %v1189_v43  ;;  %v3729_v33 = vld [vmem:[%s3890_s16 + $0x10] sm:$0xff] }
  0xc4   : > { %3062 = vmatprep.mubr.msk.f32.mxu0 %vm600_vm6, %v3793_v1 }
  0xc5   : > { %3684 = vset.pattern.permute.xlu1 %v3791_v31  ;;  %v467_v53 = vpop.permute.xlu0 %466  ;;  %3369 = vmatpush1.bf16.msra.mxu0 %v3368_v46  ;;  %v1194_v46 = vld [vmem:[#allocation2 + $0x528] sm:$0xff] }
  0xc6   : > { %v566_v55 = vpop.permute.xlu1 %565  ;;  %658 = vperm.xlu1 %3684, %v3919_v32   ;;  %3371 = vmatprep.subr.bf16.mxu0 %v3370_v48  ;;  %vm505_vm9 = vcmp.eq.s32.totalorder %v467_v53, %v4020_v10  ;;  %v1198_v53 = vld [vmem:[#allocation2 + $0x548] sm:$0xff] }
  0xc7   : > { %3063 = vmatmul.mubr.msk.f32.gmra.mrb[6].mxu0 %vm504_vm7, %v3793_v1  ;;  %679 = vperm.xlu0 %3712, %v3954_v6   ;;  %vm602_vm10 = vcmp.eq.s32.totalorder %v566_v55, %v4020_v10  ;;  %v3795_v55 = vmov 7  }
  0xc8   : > { %3064 = vmatprep.mubr.msk.f32.mxu0 %vm601_vm8, %v3793_v1 }
  0xc9   : > { %v470_v60 = vpop.permute.xlu0 %469  ;;  %3373 = vmatpush1.bf16.msra.mxu0 %v3372_v54  ;;  %v1200_v54 = vld [vmem:[#allocation2 + $0x558] sm:$0xff] }
  0xca   : > { %v569_v32 = vpop.permute.xlu1 %568  ;;  %3685 = vset.pattern.permute.xlu1 %v3792_v8  ;;  %3375 = vmatprep.subr.bf16.mxu0 %v3374_v56  ;;  %vm506_vm11 = vcmp.eq.s32.totalorder %v470_v60, %v4020_v10  ;;  %v3398_v58 = vpack.c.bf16 %v1200_v54, %v1198_v53  ;;  %v1199_v60 = vld [vmem:[#allocation2 + $0x550] sm:$0xff] }
  0xcb   : > { %757 = vperm.xlu1 %3685, %v3924_v39   ;;  %3065 = vmatmul.mubr.msk.f32.gmra.mrb[8].mxu0 %vm505_vm9, %v3793_v1  ;;  %vm603_vm12 = vcmp.eq.s32.totalorder %v569_v32, %v4020_v10  ;;  %v1204_v32 = vld [vmem:[#allocation2 + $0x578] sm:$0xff]  ;;  %v3400_v9 = vpack.c.bf16 %v1199_v60, %v1197_v59  ;;  %v4169_v60 = vld [vmem:[%s3890_s16 + $0x70] sm:$0xff] }
  0xcc   : > { %3066 = vmatprep.mubr.msk.f32.mxu0 %vm602_vm10, %v3793_v1  ;;  %688 = vperm.xlu0 %3712, %v3901_v3  }
  0xcd   : > { %v473_v16 = vpop.permute.xlu0 %472  ;;  %3377 = vmatpush1.bf16.msra.mxu0 %v3376_v5  ;;  %v1202_v5 = vld [vmem:[#allocation2 + $0x568] sm:$0xff] }
  0xce   : > { %v572_v18 = vpop.permute.xlu1 %571  ;;  %3379 = vmatprep.subr.bf16.mxu0 %v3378_v7  ;;  %vm507_vm13 = vcmp.eq.s32.totalorder %v473_v16, %v4020_v10  ;;  %v3402_v12 = vpack.c.bf16 %v1204_v32, %v1202_v5  ;;  %v1203_v16 = vld [vmem:[#allocation2 + $0x570] sm:$0xff]  ;;  %v1222_v5 = vld [vmem:[#allocation2 + $0x608] sm:$0xff]  ;;  %v1224_v32 = vld [vmem:[#allocation2 + $0x618] sm:$0xff] }
  0xcf   : > { %3686 = vset.pattern.permute.xlu1 %v3790_v23  ;;  %3067 = vmatmul.mubr.msk.f32.gmra.mrb[10].mxu0 %vm506_vm11, %v3793_v1  ;;  %vm604_vm14 = vcmp.eq.s32.totalorder %v572_v18, %v4020_v10 }
  0xd0   : > { %283 = vperm.xlu1 %3686, %v3934_v63   ;;  %3068 = vmatprep.mubr.msk.f32.mxu0 %vm603_vm12, %v3793_v1 }
  0xd1   : > { %v476_v3 = vpop.permute.xlu0 %475  ;;  %3381 = vmatpush1.bf16.msra.mxu0 %v3380_v17  ;;  %3719 = vset.pattern.permute.xlu0 %v3794_v29  ;;  %v1208_v17 = vld [vmem:[#allocation2 + $0x598] sm:$0xff] }
  0xd2   : > { %v575_v30 = vpop.permute.xlu1 %574  ;;  %3383 = vmatprep.subr.bf16.mxu0 %v3382_v19  ;;  %838 = vperm.xlu0 %3719, %v3896_v2   ;;  %vm508_vm15 = vcmp.eq.s32.totalorder %v476_v3, %v4020_v10  ;;  %v3390_v2 = vpack.c.bf16 %v1192_v38, %v1190_v35  ;;  %v3404_v19 = vpack.c.bf16 %v1203_v16, %v1201_v14  ;;  %v1210_v3 = vld [vmem:[#allocation2 + $0x5a8] sm:$0xff]  ;;  %v1209_v38 = vld [vmem:[#allocation2 + $0x5a0] sm:$0xff]  ;;  %v1228_v16 = vld [vmem:[#allocation2 + $0x638] sm:$0xff] }
  0xd3   : > { %3069 = vmatmul.mubr.msk.f32.gmra.mrb[12].mxu0 %vm507_vm13, %v3793_v1  ;;  %vm605_vm0 = vcmp.eq.s32.totalorder %v575_v30, %v4020_v10  ;;  %vm611_vm13 = vcmp.eq.s32.totalorder %v4027_v13, %v4020_v10  ;;  %v1213_v13 = vld [vmem:[#allocation2 + $0x5c0] sm:$0xff]  ;;  %v1226_v14 = vld [vmem:[#allocation2 + $0x628] sm:$0xff] }
  0xd4   : > { %3688 = vset.pattern.permute.xlu1 %v3789_v61  ;;  %3070 = vmatprep.mubr.msk.f32.mxu0 %vm604_vm14, %v3793_v1 }
  0xd5   : > { %382 = vperm.xlu1 %3688, %v3939_v21   ;;  %v479_v40 = vpop.permute.xlu0 %478  ;;  %3385 = vmatpush1.bf16.msra.mxu0 %v3384_v28  ;;  %v1212_v28 = vld [vmem:[#allocation2 + $0x5b8] sm:$0xff] }
  0xd6   : > { %v578_v42 = vpop.permute.xlu1 %577  ;;  %3387 = vmatprep.subr.bf16.mxu0 %v3386_v25  ;;  %844 = vperm.xlu0 %3719, %v3907_v15   ;;  %vm509_vm1 = vcmp.eq.s32.totalorder %v479_v40, %v4020_v10  ;;  %v3394_v15 = vpack.c.bf16 %v1196_v47, %v1194_v46  ;;  %v3408_v25 = vpack.c.bf16 %v1207_v27, %v1205_v26  ;;  %v1211_v40 = vld [vmem:[#allocation2 + $0x5b0] sm:$0xff]  ;;  %v1232_v26 = vld [vmem:[#allocation2 + $0x658] sm:$0xff] }
  0xd7   : > { %3071 = vmatmul.mubr.msk.f32.gmra.mrb[14].mxu0 %vm508_vm15, %v3793_v1  ;;  %vm606_vm2 = vcmp.eq.s32.totalorder %v578_v42, %v4020_v10  ;;  %v3410_v35 = vpack.c.bf16 %v1212_v28, %v1210_v3  ;;  %v1214_v42 = vld [vmem:[#allocation2 + $0x5c8] sm:$0xff]  ;;  %v3412_v43 = vpack.c.bf16 %v1211_v40, %v1209_v38  ;;  %v1215_v47 = vld [vmem:[#allocation2 + $0x5d0] sm:$0xff]  ;;  %v1229_v28 = vld [vmem:[#allocation2 + $0x640] sm:$0xff] }
  0xd8   : > { %3072 = vmatprep.mubr.msk.f32.mxu0 %vm605_vm0, %v3793_v1  ;;  %v1235_v40 = vld [vmem:[#allocation2 + $0x670] sm:$0xff] }
  0xd9   : > { %3689 = vset.pattern.permute.xlu1 %v3792_v8  ;;  %v482_v48 = vpop.permute.xlu0 %481  ;;  %3389 = vmatpush1.bf16.msra.mxu0 %v3388_v41 }
  0xda   : > { %v581_v4 = vpop.permute.xlu1 %580  ;;  %760 = vperm.xlu1 %3689, %v3929_v44   ;;  %3391 = vmatprep.subr.bf16.mxu0 %v3390_v2  ;;  %vm510_vm3 = vcmp.eq.s32.totalorder %v482_v48, %v4020_v10  ;;  %v1216_v2 = vld [vmem:[#allocation2 + $0x5d8] sm:$0xff]  ;;  %v1218_v48 = vld [vmem:[#allocation2 + $0x5e8] sm:$0xff] }
  0xdb   : > { %3073 = vmatmul.mubr.msk.f32.gmra.mrb[16].mxu0 %vm509_vm1, %v3793_v1  ;;  %3724 = vset.pattern.permute.xlu0 %v3795_v55  ;;  %vm607_vm4 = vcmp.eq.s32.totalorder %v581_v4, %v4020_v10  ;;  %v3414_v46 = vpack.c.bf16 %v1216_v2, %v1214_v42  ;;  %v3416_v4 = vpack.c.bf16 %v1215_v47, %v1213_v13  ;;  %v1238_v42 = vld [vmem:[#allocation2 + $0x688] sm:$0xff]  ;;  %v1240_v2 = vld [vmem:[#allocation2 + $0x698] sm:$0xff]  ;;  %v1237_v47 = vld [vmem:[#allocation2 + $0x680] sm:$0xff] }
  0xdc   : > { %3074 = vmatprep.mubr.msk.f32.mxu0 %vm606_vm2, %v3793_v1  ;;  %949 = vperm.xlu0 %3724, %v3924_v39   ;;  %v3728_v39 = vld [vmem:[%s3890_s16] sm:$0xff]  ;;  %v3438_v13 = vpack.c.bf16 %v1240_v2, %v1238_v42  ;;  %v1259_v42 = vld [vmem:[#allocation2 + $0x730] sm:$0xff] }
  0xdd   : > { %v485_v56 = vpop.permute.xlu0 %484  ;;  %3393 = vmatpush1.bf16.msra.mxu0 %v3392_v49  ;;  %v1220_v49 = vld [vmem:[#allocation2 + $0x5f8] sm:$0xff] }
  0xde   : > { %v584_v0 = vpop.permute.xlu1 %583  ;;  %3690 = vset.pattern.permute.xlu1 %v3791_v31  ;;  %3395 = vmatprep.subr.bf16.mxu0 %v3394_v15  ;;  %vm511_vm5 = vcmp.eq.s32.totalorder %v485_v56, %v4020_v10  ;;  %v3418_v15 = vpack.c.bf16 %v1220_v49, %v1218_v48  ;;  %v1239_v48 = vld [vmem:[#allocation2 + $0x690] sm:$0xff]  ;;  %v4202_v49 = vld [vmem:[%s3890_s16 + $0x58] sm:$0xff] }
  0xdf   : > { %664 = vperm.xlu1 %3690, %v3929_v44   ;;  %3075 = vmatmul.mubr.msk.f32.gmra.mrb[18].mxu0 %vm510_vm3, %v3793_v1  ;;  %vm608_vm6 = vcmp.eq.s32.totalorder %v584_v0, %v4020_v10  ;;  %v1206_v44 = vld [vmem:[#allocation2 + $0x588] sm:$0xff] }
  0xe0   : > { %3076 = vmatprep.mubr.msk.f32.mxu0 %vm607_vm4, %v3793_v1  ;;  %934 = vperm.xlu0 %3724, %v3728_v39   ;;  %v3406_v24 = vpack.c.bf16 %v1208_v17, %v1206_v44  ;;  %v4156_v0 = vld [vmem:[%s3890_s16 + $0x48] sm:$0xff]  ;;  %v1221_v39 = vld [vmem:[#allocation2 + $0x600] sm:$0xff]  ;;  %v3426_v44 = vpack.c.bf16 %v1228_v16, %v1226_v14  ;;  %v1252_v16 = vld [vmem:[#allocation2 + $0x6f8] sm:$0xff] }
  0xe1   : > { %v488_v7 = vpop.permute.xlu0 %487  ;;  %3397 = vmatpush1.bf16.msra.mxu0 %v3396_v57  ;;  %v1225_v17 = vld [vmem:[#allocation2 + $0x620] sm:$0xff]  ;;  %v1250_v14 = vld [vmem:[#allocation2 + $0x6e8] sm:$0xff] }
  0xe2   : > { %v587_v11 = vpop.permute.xlu1 %586  ;;  %3399 = vmatprep.subr.bf16.mxu0 %v3398_v58  ;;  %vm512_vm7 = vcmp.eq.s32.totalorder %v488_v7, %v4020_v10  ;;  %v1223_v7 = vld [vmem:[#allocation2 + $0x610] sm:$0xff] }
  0xe3   : > { %3691 = vset.pattern.permute.xlu1 %v3789_v61  ;;  %3077 = vmatmul.mubr.msk.f32.gmra.mrb[20].mxu0 %vm511_vm5, %v3793_v1  ;;  %vm609_vm8 = vcmp.eq.s32.totalorder %v587_v11, %v4020_v10  ;;  %v3424_v11 = vpack.c.bf16 %v1223_v7, %v1221_v39  ;;  %v1245_v39 = vld [vmem:[#allocation2 + $0x6c0] sm:$0xff]  ;;  %v1247_v7 = vld [vmem:[#allocation2 + $0x6d0] sm:$0xff] }
  0xe4   : > { %385 = vperm.xlu1 %3691, %v3944_v36   ;;  %3078 = vmatprep.mubr.msk.f32.mxu0 %vm608_vm6, %v3793_v1 }
  0xe5   : > { %v491_v18 = vpop.permute.xlu0 %490  ;;  %3401 = vmatpush1.bf16.msra.mxu0 %v3400_v9  ;;  %955 = vperm.xlu0 %3724, %v3934_v63  }
  0xe6   : > { %v590_v22 = vpop.permute.xlu1 %589  ;;  %3403 = vmatprep.subr.bf16.mxu0 %v3402_v12  ;;  %vm513_vm9 = vcmp.eq.s32.totalorder %v491_v18, %v4020_v10  ;;  %v1227_v18 = vld [vmem:[#allocation2 + $0x630] sm:$0xff] }
  0xe7   : > { %3079 = vmatmul.mubr.msk.f32.gmra.mrb[22].mxu0 %vm512_vm7, %v3793_v1  ;;  %vm610_vm10 = vcmp.eq.s32.totalorder %v590_v22, %v4020_v10 }
  0xe8   : > { %3692 = vset.pattern.permute.xlu1 %v3790_v23  ;;  %3080 = vmatprep.mubr.msk.f32.mxu0 %vm609_vm8, %v3793_v1 }
  0xe9   : > { %289 = vperm.xlu1 %3692, %v3944_v36   ;;  %v494_v30 = vpop.permute.xlu0 %493  ;;  %3405 = vmatpush1.bf16.msra.mxu0 %v3404_v19  ;;  %v3428_v19 = vpack.c.bf16 %v1227_v18, %v1225_v17  ;;  %v1249_v17 = vld [vmem:[#allocation2 + $0x6e0] sm:$0xff]  ;;  %v1251_v18 = vld [vmem:[#allocation2 + $0x6f0] sm:$0xff] }
  0xea   : > { %3407 = vmatprep.subr.bf16.mxu0 %v3406_v24  ;;  %940 = vperm.xlu0 %3724, %v3729_v33   ;;  %vm514_vm12 = vcmp.eq.s32.totalorder %v494_v30, %v4020_v10  ;;  %v1230_v24 = vld [vmem:[#allocation2 + $0x648] sm:$0xff]  ;;  %v1231_v30 = vld [vmem:[#allocation2 + $0x650] sm:$0xff] }
  0xeb   : > { %v359_v34 = vpop.permute.xlu1 %358  ;;  %3081 = vmatmul.mubr.msk.f32.gmra.mrb[24].mxu0 %vm513_vm9, %v3793_v1  ;;  %v3430_v3 = vpack.c.bf16 %v1232_v26, %v1230_v24  ;;  %v1234_v33 = vld [vmem:[#allocation2 + $0x668] sm:$0xff]  ;;  %v3450_v26 = vpack.c.bf16 %v1252_v16, %v1250_v14 }
  0xec   : > { %3082 = vmatprep.mubr.msk.f32.mxu0 %vm610_vm10, %v3793_v1  ;;  %vm405_vm11 = vcmp.eq.s32.totalorder %v359_v34, %v4020_v10  ;;  %v1236_v34 = vld [vmem:[#allocation2 + $0x678] sm:$0xff] }
  0xed   : > { %3693 = vset.pattern.permute.xlu1 %v3791_v31  ;;  %3024 = vmatprep.mubr.msk.f32.mxu1 %vm405_vm11, %v3793_v1  ;;  %v500_v41 = vpop.permute.xlu0 %499  ;;  %v3434_v38 = vpack.c.bf16 %v1236_v34, %v1234_v33  ;;  %v1260_v33 = vld [vmem:[#allocation2 + $0x738] sm:$0xff] }
  0xee   : > { %667 = vperm.xlu1 %3693, %v3934_v63   ;;  %3409 = vmatpush1.bf16.msra.mxu0 %v3408_v25  ;;  %vm516_vm0 = vcmp.eq.s32.totalorder %v500_v41, %v4020_v10  ;;  %v4191_v41 = vld [vmem:[%s3890_s16 + $0x50] sm:$0xff] }
  0xef   : > { %3083 = vmatmul.mubr.msk.f32.gmra.mrb[26].mxu0 %vm514_vm12, %v3793_v1  ;;  %3411 = vmatprep.subr.bf16.mxu0 %v3410_v35 }
  0xf0   : > { %v263_v45 = vpop.permute.xlu1 %262  ;;  %3084 = vmatprep.mubr.msk.f32.mxu0 %vm611_vm13, %v3793_v1  ;;  %961 = vperm.xlu0 %3724, %v3944_v36  }
  0xf1   : > { %vm309_vm14 = vcmp.eq.s32.totalorder %v263_v45, %v4020_v10 }
  0xf2   : > { %3694 = vset.pattern.permute.xlu1 %v3792_v8  ;;  %3025 = vmatmul.mubr.msk.f32.vlgmr.msra.gmra.mrb[0].mxu1 %vm309_vm14, %v3793_v1  ;;  %v4130_v63 = vpop.permute.xlu0 %652 }
  0xf3   : > { %766 = vperm.xlu1 %3694, %v3939_v21   ;;  %3413 = vmatpush1.bf16.msra.mxu0 %v3412_v43  ;;  %v1219_v21 = vld [vmem:[#allocation2 + $0x5f0] sm:$0xff]  ;;  %vm695_vm14 = vcmp.eq.s32.totalorder %v4130_v63, %v4020_v10  ;;  %v1262_v63 = vld [vmem:[#allocation2 + $0x748] sm:$0xff] }
  0xf4   : > { %3415 = vmatprep.subr.bf16.mxu0 %v3414_v46  ;;  %964 = vperm.xlu0 %3724, %v3949_v51   ;;  %v3420_v56 = vpack.c.bf16 %v1219_v21, %v1217_v52  ;;  %v3440_v52 = vpack.c.bf16 %v1239_v48, %v1237_v47  ;;  %v1261_v47 = vld [vmem:[#allocation2 + $0x740] sm:$0xff]  ;;  %v1263_v48 = vld [vmem:[#allocation2 + $0x750] sm:$0xff] }
  0xf5   : > { %v497_v36 = vpop.permute.xlu1 %496 }
  0xf6   : > { %vm515_vm15 = vcmp.eq.s32.totalorder %v497_v36, %v4020_v10  ;;  %v4135_v50 = vpop.permute.xlu0 %661  ;;  %v1244_v36 = vld [vmem:[#allocation2 + $0x6b8] sm:$0xff] }
  0xf7   : > { %3695 = vset.pattern.permute.xlu1 %v3790_v23  ;;  %3085 = vmatmul.mubr.msk.f32.gmra.mrb[28].mxu0 %vm515_vm15, %v3793_v1 }
  0xf8   : > { %292 = vperm.xlu1 %3695, %v3949_v51   ;;  %3417 = vmatpush1.bf16.msra.mxu0 %v3416_v4  ;;  %v1242_v4 = vld [vmem:[#allocation2 + $0x6a8] sm:$0xff] }
  0xf9   : > { %3419 = vmatprep.subr.bf16.mxu0 %v3418_v15  ;;  %967 = vperm.xlu0 %3724, %v3954_v6  }
  0xfa   : > { %v596_v53 = vpop.permute.xlu1 %595 }
  0xfb   : > { %vm612_vm1 = vcmp.eq.s32.totalorder %v596_v53, %v4020_v10  ;;  %v362_v54 = vpop.permute.xlu0 %361  ;;  %v3442_v53 = vpack.c.bf16 %v1244_v36, %v1242_v4  ;;  %v4247_v4 = vld [vmem:[%s3890_s16 + $0x78] sm:$0xff]  ;;  %v1266_v36 = vld [vmem:[#allocation2 + $0x768] sm:$0xff] }
  0xfc   : > { %3696 = vset.pattern.permute.xlu1 %v3789_v61  ;;  %3086 = vmatprep.mubr.msk.f32.mxu0 %vm612_vm1, %v3793_v1  ;;  %vm406_vm2 = vcmp.eq.s32.totalorder %v362_v54, %v4020_v10  ;;  %v1241_v54 = vld [vmem:[#allocation2 + $0x6a0] sm:$0xff] }
  0xfd   : > { %391 = vperm.xlu1 %3696, %v3954_v6   ;;  %3026 = vmatprep.mubr.msk.f32.mxu1 %vm406_vm2, %v3793_v1 }
  0xfe   : > { %3087 = vmatmul.mubr.msk.f32.gmra.mrb[30].mxu0 %vm516_vm0, %v3793_v1  ;;  %970 = vperm.xlu0 %3724, %v3959_v20  }
  0xff   : > { %v266_v51 = vpop.permute.xlu1 %265  ;;  %v4150_v57 = vpop.permute.xlu0 %370  ;;  %3421 = vmatpush1.bf16.msra.mxu0 %v3420_v56  ;;  %v1243_v56 = vld [vmem:[#allocation2 + $0x6b0] sm:$0xff] }
 0x100   : > { %vm310_vm3 = vcmp.eq.s32.totalorder %v266_v51, %v4020_v10  ;;  %vm409_vm9 = vcmp.eq.s32.totalorder %v4150_v57, %v4020_v10  ;;  %v1246_v51 = vld [vmem:[#allocation2 + $0x6c8] sm:$0xff]  ;;  %v1248_v57 = vld [vmem:[#allocation2 + $0x6d8] sm:$0xff] }
 0x101   : > { %3697 = vset.pattern.permute.xlu1 %v3792_v8  ;;  %3027 = vmatmul.mubr.msk.f32.gmra.mrb[2].mxu1 %vm310_vm3, %v3793_v1 }
 0x102   : > { %769 = vperm.xlu1 %3697, %v4156_v0   ;;  %973 = vperm.xlu0 %3724, %v3964_v37   ;;  %v3422_v37 = vpack.c.bf16 %v1224_v32, %v1222_v5  ;;  %v3444_v32 = vpack.c.bf16 %v1243_v56, %v1241_v54  ;;  %v1265_v54 = vld [vmem:[#allocation2 + $0x760] sm:$0xff]  ;;  %v1267_v56 = vld [vmem:[#allocation2 + $0x770] sm:$0xff] }
 0x103   : > { %v4160_v6 = vpop.permute.xlu0 %379 }
 0x104   : > { %v365_v58 = vpop.permute.xlu1 %364  ;;  %3498 = vmatprep.subr.bf16.mxu1 %v3422_v37  ;;  %3423 = vmatprep.subr.bf16.mxu0 %v3422_v37  ;;  %v3446_v37 = vpack.c.bf16 %v1248_v57, %v1246_v51  ;;  %v1270_v51 = vld [vmem:[#allocation2 + $0x788] sm:$0xff]  ;;  %v1272_v57 = vld [vmem:[#allocation2 + $0x798] sm:$0xff] }
 0x105   : > { %vm407_vm4 = vcmp.eq.s32.totalorder %v365_v58, %v4020_v10  ;;  %3514 = vmatpush1.bf16.msra.mxu1 %v3424_v11  ;;  %v4210_v58 = vld [vmem:[%s3890_s16 + $0x68] sm:$0xff] }
 0x106   : > { %3698 = vset.pattern.permute.xlu1 %v3791_v31  ;;  %3028 = vmatprep.mubr.msk.f32.mxu1 %vm407_vm4, %v3793_v1 }
 0x107   : > { %673 = vperm.xlu1 %3698, %v4156_v0   ;;  %v4166_v59 = vpop.permute.xlu0 %388  ;;  %976 = vperm.xlu0 %3724, %v4169_v60  }
 0x108   : > { %3499 = vmatprep.subr.bf16.mxu1 %v3426_v44 }
 0x109   : > { %v743_v9 = vpop.permute.xlu1 %742  ;;  %3515 = vmatpush1.bf16.msra.mxu1 %v3428_v19 }
 0x10a   : > { %vm789_vm5 = vcmp.eq.s32.totalorder %v743_v9, %v4020_v10  ;;  %3500 = vmatprep.subr.bf16.mxu1 %v3430_v3 }
 0x10b   : > { %3699 = vset.pattern.permute.xlu1 %v3789_v61  ;;  %3088 = vmatprep.mubr.msk.f32.mxu0 %vm789_vm5, %v3793_v1  ;;  %v4175_v12 = vpop.permute.xlu0 %397 }
 0x10c   : > { %394 = vperm.xlu1 %3699, %v3959_v20   ;;  %979 = vperm.xlu0 %3724, %v3971_v62   ;;  %v3432_v62 = vpack.c.bf16 %v1231_v30, %v1229_v28  ;;  %v1253_v28 = vld [vmem:[#allocation2 + $0x700] sm:$0xff]  ;;  %v1255_v30 = vld [vmem:[#allocation2 + $0x710] sm:$0xff] }
 0x10e   : > { %v647_v22 = vpop.permute.xlu1 %646  ;;  %3516 = vmatpush1.bf16.msra.mxu1 %v3432_v62 }
 0x10f   : > { %vm693_vm6 = vcmp.eq.s32.totalorder %v647_v22, %v4020_v10  ;;  %3501 = vmatprep.subr.bf16.mxu1 %v3434_v38  ;;  %v1256_v22 = vld [vmem:[#allocation2 + $0x718] sm:$0xff] }
 0x110   : > { %3700 = vset.pattern.permute.xlu1 %v3790_v23  ;;  %3089 = vmatmul.mubr.msk.f32.vlgmr.msra.gmra.mrb[0].mxu0 %vm693_vm6, %v3793_v1  ;;  %v269_v27 = vpop.permute.xlu0 %268  ;;  %vm412_vm6 = vcmp.eq.s32.totalorder %v4160_v6, %v4020_v10 }
 0x111   : > { %298 = vperm.xlu1 %3700, %v3959_v20   ;;  %vm311_vm7 = vcmp.eq.s32.totalorder %v269_v27, %v4020_v10  ;;  %3425 = vmatpush1.bf16.msra.mxu0 %v3424_v11  ;;  %v1233_v20 = vld [vmem:[#allocation2 + $0x660] sm:$0xff]  ;;  %v3448_v11 = vpack.c.bf16 %v1247_v7, %v1245_v39  ;;  %v3452_v27 = vpack.c.bf16 %v1251_v18, %v1249_v17  ;;  %v1271_v7 = vld [vmem:[#allocation2 + $0x790] sm:$0xff] }
 0x112   : > { %3029 = vmatmul.mubr.msk.f32.gmra.mrb[4].mxu1 %vm311_vm7, %v3793_v1  ;;  %3427 = vmatprep.subr.bf16.mxu0 %v3426_v44  ;;  %v3436_v46 = vpack.c.bf16 %v1235_v40, %v1233_v20  ;;  %v1257_v40 = vld [vmem:[#allocation2 + $0x720] sm:$0xff]  ;;  %v3470_v39 = vpack.c.bf16 %v1272_v57, %v1270_v51  ;;  %v1275_v18 = vld [vmem:[#allocation2 + $0x7b0] sm:$0xff]  ;;  %v3743_v51 = vld [vmem:[%s3890_s16 + $0x18] sm:$0xff] }
 0x113   : > { %v368_v25 = vpop.permute.xlu1 %367  ;;  %v3460_v2 = vpack.c.bf16 %v1259_v42, %v1257_v40  ;;  %v1273_v17 = vld [vmem:[#allocation2 + $0x7a0] sm:$0xff]  ;;  %v1283_v40 = vld [vmem:[#allocation2 + $0x7f0] sm:$0xff] }
 0x114   : > { %vm408_vm8 = vcmp.eq.s32.totalorder %v368_v25, %v4020_v10  ;;  %v4186_v35 = vpop.permute.xlu0 %277  ;;  %3517 = vmatpush1.bf16.msra.mxu1 %v3436_v46  ;;  %v1258_v25 = vld [vmem:[#allocation2 + $0x728] sm:$0xff]  ;;  %v3476_v6 = vpack.c.bf16 %v1275_v18, %v1273_v17 }
 0x115   : > { %3701 = vset.pattern.permute.xlu1 %v3791_v31  ;;  %3030 = vmatprep.mubr.msk.f32.mxu1 %vm408_vm8, %v3793_v1  ;;  %vm314_vm0 = vcmp.eq.s32.totalorder %v4186_v35, %v4020_v10  ;;  %v3458_v20 = vpack.c.bf16 %v1260_v33, %v1258_v25  ;;  %v1264_v35 = vld [vmem:[#allocation2 + $0x758] sm:$0xff] }
 0x116   : > { %676 = vperm.xlu1 %3701, %v4191_v41   ;;  %3429 = vmatpush1.bf16.msra.mxu0 %v3428_v19  ;;  %v1254_v19 = vld [vmem:[#allocation2 + $0x708] sm:$0xff]  ;;  %v1284_v25 = vld [vmem:[#allocation2 + $0x7f8] sm:$0xff] }
 0x117   : > { %3431 = vmatprep.subr.bf16.mxu0 %v3430_v3  ;;  %3502 = vmatprep.subr.bf16.mxu1 %v3438_v13  ;;  %v3454_v3 = vpack.c.bf16 %v1256_v22, %v1254_v19  ;;  %v1278_v19 = vld [vmem:[#allocation2 + $0x7c8] sm:$0xff]  ;;  %v1280_v22 = vld [vmem:[#allocation2 + $0x7d8] sm:$0xff] }
 0x118   : > { %v272_v43 = vpop.permute.xlu1 %271  ;;  %v4196_v45 = vpop.permute.xlu0 %286  ;;  %3518 = vmatpush1.bf16.msra.mxu1 %v3440_v52 }
 0x119   : > { %vm312_vm10 = vcmp.eq.s32.totalorder %v272_v43, %v4020_v10  ;;  %3503 = vmatprep.subr.bf16.mxu1 %v3442_v53 }
 0x11a   : > { %3703 = vset.pattern.permute.xlu1 %v3792_v8  ;;  %3031 = vmatmul.mubr.msk.f32.gmra.mrb[6].mxu1 %vm312_vm10, %v3793_v1 }
 0x11b   : > { %775 = vperm.xlu1 %3703, %v4202_v49   ;;  %3032 = vmatprep.mubr.msk.f32.mxu1 %vm409_vm9, %v3793_v1  ;;  %vm698_vm9 = vcmp.eq.s32.totalorder %v4135_v50, %v4020_v10 }
 0x11c   : > { %v4206_v15 = vpop.permute.xlu0 %295  ;;  %3433 = vmatpush1.bf16.msra.mxu0 %v3432_v62  ;;  %3519 = vmatpush1.bf16.msra.mxu1 %v3444_v32  ;;  %v4229_v62 = vld [vmem:[%s3890_s16 + $0x60] sm:$0xff] }
 0x11d   : > { %v650_v21 = vpop.permute.xlu1 %649  ;;  %3435 = vmatprep.subr.bf16.mxu0 %v3434_v38  ;;  %3504 = vmatprep.subr.bf16.mxu1 %v3446_v37  ;;  %v3456_v38 = vpack.c.bf16 %v1255_v30, %v1253_v28  ;;  %v1279_v28 = vld [vmem:[#allocation2 + $0x7d0] sm:$0xff]  ;;  %v1282_v30 = vld [vmem:[#allocation2 + $0x7e8] sm:$0xff] }
 0x11e   : > { %vm694_vm12 = vcmp.eq.s32.totalorder %v650_v21, %v4020_v10 }
 0x11f   : > { %3704 = vset.pattern.permute.xlu1 %v3790_v23 }
 0x120   : > { %301 = vperm.xlu1 %3704, %v4210_v58   ;;  %v4213_v5 = vpop.permute.xlu0 %304  ;;  %3437 = vmatpush1.bf16.msra.mxu0 %v3436_v46  ;;  %v3462_v46 = vpack.c.bf16 %v1264_v35, %v1262_v63  ;;  %v3738_v63 = vld [vmem:[%s3890_s16 + $0x28] sm:$0xff] }
 0x121   : > { %3439 = vmatprep.subr.bf16.mxu0 %v3438_v13  ;;  %3520 = vmatpush1.bf16.msra.mxu1 %v3448_v11 }
 0x122   : > { %v749_v9 = vpop.permute.xlu1 %748  ;;  %3505 = vmatprep.subr.bf16.mxu1 %v3450_v26 }
 0x123   : > { %vm791_vm15 = vcmp.eq.s32.totalorder %v749_v9, %v4020_v10  ;;  %v1274_v9 = vld [vmem:[#allocation2 + $0x7a8] sm:$0xff] }
 0x124   : > { %3705 = vset.pattern.permute.xlu1 %v3789_v61  ;;  %3441 = vmatpush1.bf16.msra.mxu0 %v3440_v52  ;;  %v1268_v52 = vld [vmem:[#allocation2 + $0x778] sm:$0xff] }
 0x125   : > { %400 = vperm.xlu1 %3705, %v4169_v60   ;;  %v746_v44 = vpop.permute.xlu0 %745  ;;  %3443 = vmatprep.subr.bf16.mxu0 %v3442_v53  ;;  %v3464_v53 = vpack.c.bf16 %v1263_v48, %v1261_v47  ;;  %v3740_v47 = vld [vmem:[%s3890_s16 + $0x8] sm:$0xff] }
 0x126   : > { %vm790_vm11 = vcmp.eq.s32.totalorder %v746_v44, %v4020_v10  ;;  %3521 = vmatpush1.bf16.msra.mxu1 %v3452_v27 }
 0x127   : > { %v275_v24 = vpop.permute.xlu1 %274  ;;  %3090 = vmatprep.mubr.msk.f32.mxu0 %vm790_vm11, %v3793_v1  ;;  %3506 = vmatprep.subr.bf16.mxu1 %v3454_v3 }
 0x128   : > { %vm313_vm13 = vcmp.eq.s32.totalorder %v275_v24, %v4020_v10  ;;  %3091 = vmatmul.mubr.msk.f32.gmra.mrb[2].mxu0 %vm694_vm12, %v3793_v1  ;;  %v3737_v24 = vld [vmem:[%s3890_s16 + $0x20] sm:$0xff]  ;;  %vm317_vm12 = vcmp.eq.s32.totalorder %v4196_v45, %v4020_v10  ;;  %v3739_v45 = vld [vmem:[%s3890_s16 + $0x30] sm:$0xff] }
 0x129   : > { %3706 = vset.pattern.permute.xlu1 %v3792_v8  ;;  %3033 = vmatmul.mubr.msk.f32.gmra.mrb[8].mxu1 %vm313_vm13, %v3793_v1  ;;  %v755_v13 = vpop.permute.xlu0 %754 }
 0x12a   : > { %3092 = vmatprep.mubr.msk.f32.mxu0 %vm791_vm15, %v3793_v1  ;;  %778 = vperm.xlu1 %3706, %v4229_v62   ;;  %vm793_vm3 = vcmp.eq.s32.totalorder %v755_v13, %v4020_v10 }
 0x12b   : > { %3445 = vmatpush1.bf16.msra.mxu0 %v3444_v32  ;;  %3522 = vmatpush1.bf16.msra.mxu1 %v3456_v38  ;;  %v3468_v32 = vpack.c.bf16 %v1267_v56, %v1265_v54 }
 0x12c   : > { %v374_v34 = vpop.permute.xlu1 %373  ;;  %3093 = vmatmul.mubr.msk.f32.gmra.mrb[4].mxu0 %vm695_vm14, %v3793_v1  ;;  %3447 = vmatprep.subr.bf16.mxu0 %v3446_v37 }
 0x12d   : > { %vm410_vm1 = vcmp.eq.s32.totalorder %v374_v34, %v4020_v10  ;;  %3507 = vmatprep.subr.bf16.mxu1 %v3458_v20 }
 0x12e   : > { %3708 = vset.pattern.permute.xlu1 %v3791_v31  ;;  %3034 = vmatprep.mubr.msk.f32.mxu1 %vm410_vm1, %v3793_v1 }
 0x12f   : > { %682 = vperm.xlu1 %3708, %v4229_v62   ;;  %3035 = vmatmul.mubr.msk.f32.gmra.mrb[10].mxu1 %vm314_vm0, %v3793_v1 }
 0x130   : > { %3449 = vmatpush1.bf16.msra.mxu0 %v3448_v11  ;;  %3523 = vmatpush1.bf16.msra.mxu1 %v3460_v2  ;;  %v1276_v11 = vld [vmem:[#allocation2 + $0x7b8] sm:$0xff] }
 0x131   : > { %v752_v43 = vpop.permute.xlu1 %751  ;;  %3451 = vmatprep.subr.bf16.mxu0 %v3450_v26  ;;  %3508 = vmatprep.subr.bf16.mxu1 %v3462_v46  ;;  %v3474_v44 = vpack.c.bf16 %v1276_v11, %v1274_v9 }
 0x132   : > { %vm792_vm2 = vcmp.eq.s32.totalorder %v752_v43, %v4020_v10 }
 0x133   : > { %3709 = vset.pattern.permute.xlu1 %v3789_v61  ;;  %3094 = vmatprep.mubr.msk.f32.mxu0 %vm792_vm2, %v3793_v1  ;;  %v3466_v61 = vpack.c.bf16 %v1268_v52, %v1266_v36  ;;  %vm415_vm2 = vcmp.eq.s32.totalorder %v4166_v59, %v4020_v10 }
 0x134   : > { %403 = vperm.xlu1 %3709, %v4247_v4   ;;  %3453 = vmatpush1.bf16.msra.mxu0 %v3452_v27  ;;  %v3478_v27 = vpack.c.bf16 %v1280_v22, %v1278_v19 }
 0x135   : > { %3455 = vmatprep.subr.bf16.mxu0 %v3454_v3  ;;  %3524 = vmatpush1.bf16.msra.mxu1 %v3464_v53  ;;  %v1277_v3 = vld [vmem:[#allocation2 + $0x7c0] sm:$0xff] }
 0x136   : > { %v656_v21 = vpop.permute.xlu1 %655  ;;  %3509 = vmatprep.subr.bf16.mxu1 %v3466_v61  ;;  %v3480_v34 = vpack.c.bf16 %v1279_v28, %v1277_v3 }
 0x137   : > { %vm696_vm4 = vcmp.eq.s32.totalorder %v656_v21, %v4020_v10  ;;  %v3741_v21 = vld [vmem:[%s3890_s16 + $0x38] sm:$0xff] }
 0x138   : > { %3710 = vset.pattern.permute.xlu1 %v3790_v23  ;;  %3095 = vmatmul.mubr.msk.f32.gmra.mrb[6].mxu0 %vm696_vm4, %v3793_v1  ;;  %v1269_v23 = vld [vmem:[#allocation2 + $0x780] sm:$0xff] }
 0x139   : > { %307 = vperm.xlu1 %3710, %v4247_v4   ;;  %3096 = vmatprep.mubr.msk.f32.mxu0 %vm793_vm3, %v3793_v1  ;;  %v3472_v16 = vpack.c.bf16 %v1271_v7, %v1269_v23 }
 0x13a   : > { %3457 = vmatpush1.bf16.msra.mxu0 %v3456_v38  ;;  %3525 = vmatpush1.bf16.msra.mxu1 %v3468_v32  ;;  %v3482_v38 = vpack.c.bf16 %v1284_v25, %v1282_v30 }
 0x13b   : > { %v377_v37 = vpop.permute.xlu1 %376  ;;  %3459 = vmatprep.subr.bf16.mxu0 %v3458_v20  ;;  %3510 = vmatprep.subr.bf16.mxu1 %v3470_v39  ;;  %v1281_v20 = vld [vmem:[#allocation2 + $0x7e0] sm:$0xff] }
 0x13c   : > { %vm411_vm5 = vcmp.eq.s32.totalorder %v377_v37, %v4020_v10  ;;  %v3484_v42 = vpack.c.bf16 %v1283_v40, %v1281_v20 }
 0x13d   : > { %3711 = vset.pattern.permute.xlu1 %v3791_v31  ;;  %3036 = vmatprep.mubr.msk.f32.mxu1 %vm411_vm5, %v3793_v1 }
 0x13e   : > { %685 = vperm.xlu1 %3711, %v4210_v58   ;;  %3461 = vmatpush1.bf16.msra.mxu0 %v3460_v2 }
 0x13f   : > { %3463 = vmatprep.subr.bf16.mxu0 %v3462_v46  ;;  %3526 = vmatpush1.bf16.msra.mxu1 %v3472_v16 }
 0x140   : > { %v281_v14 = vpop.permute.xlu1 %280  ;;  %3511 = vmatprep.subr.bf16.mxu1 %v3474_v44 }
 0x141   : > { %vm315_vm7 = vcmp.eq.s32.totalorder %v281_v14, %v4020_v10 }
 0x142   : > { %3713 = vset.pattern.permute.xlu1 %v3795_v55  ;;  %3037 = vmatmul.mubr.msk.f32.gmra.mrb[12].mxu1 %vm315_vm7, %v3793_v1 }
 0x143   : > { %946 = vperm.xlu1 %3713, %v3737_v24   ;;  %3038 = vmatprep.mubr.msk.f32.mxu1 %vm412_vm6, %v3793_v1 }
 0x144   : > { %3465 = vmatpush1.bf16.msra.mxu0 %v3464_v53  ;;  %3527 = vmatpush1.bf16.msra.mxu1 %v3476_v6 }
 0x145   : > { %v659_v26 = vpop.permute.xlu1 %658  ;;  %3467 = vmatprep.subr.bf16.mxu0 %v3466_v61  ;;  %3512 = vmatprep.subr.bf16.mxu1 %v3478_v27  ;;  %v3742_v61 = vld [vmem:[%s3890_s16 + $0x40] sm:$0xff] }
 0x146   : > { %vm697_vm8 = vcmp.eq.s32.totalorder %v659_v26, %v4020_v10 }
 0x147   : > { %3714 = vset.pattern.permute.xlu1 %v3794_v29  ;;  %3097 = vmatmul.mubr.msk.f32.gmra.mrb[8].mxu0 %vm697_vm8, %v3793_v1  ;;  %vm320_vm8 = vcmp.eq.s32.totalorder %v4206_v15, %v4020_v10 }
 0x148   : > { %850 = vperm.xlu1 %3714, %v3737_v24   ;;  %3469 = vmatpush1.bf16.msra.mxu0 %v3468_v32 }
 0x149   : > { %3471 = vmatprep.subr.bf16.mxu0 %v3470_v39  ;;  %3528 = vmatpush1.bf16.msra.mxu1 %v3480_v34 }
 0x14a   : > { %v758_v33 = vpop.permute.xlu1 %757  ;;  %3513 = vmatprep.subr.bf16.mxu1 %v3482_v38 }
 0x14b   : > { %vm794_vm10 = vcmp.eq.s32.totalorder %v758_v33, %v4020_v10 }
 0x14c   : > { %3715 = vset.pattern.permute.xlu1 %v3792_v8  ;;  %3098 = vmatprep.mubr.msk.f32.mxu0 %vm794_vm10, %v3793_v1 }
 0x14d   : > { %787 = vperm.xlu1 %3715, %v4247_v4   ;;  %3099 = vmatmul.mubr.msk.f32.gmra.mrb[10].mxu0 %vm698_vm9, %v3793_v1 }
 0x14e   : > { %3473 = vmatpush1.bf16.msra.mxu0 %v3472_v16  ;;  %3529 = vmatpush1.bf16.msra.mxu1 %v3484_v42 }
 0x14f   : > { %v284_v50 = vpop.permute.xlu1 %283  ;;  %3475 = vmatprep.subr.bf16.mxu0 %v3474_v44 }
 0x150   : > { %vm316_vm11 = vcmp.eq.s32.totalorder %v284_v50, %v4020_v10 }
 0x151   : > { %3716 = vset.pattern.permute.xlu1 %v3791_v31  ;;  %3039 = vmatmul.mubr.msk.f32.gmra.mrb[14].mxu1 %vm316_vm11, %v3793_v1  ;;  %v764_v31 = vpop.permute.xlu0 %763 }
 0x152   : > { %691 = vperm.xlu1 %3716, %v4247_v4   ;;  %3477 = vmatpush1.bf16.msra.mxu0 %v3476_v6  ;;  %vm796_vm15 = vcmp.eq.s32.totalorder %v764_v31, %v4020_v10 }
 0x153   : > { %3479 = vmatprep.subr.bf16.mxu0 %v3478_v27 }
 0x154   : > { %v383_v8 = vpop.permute.xlu1 %382 }
 0x155   : > { %vm413_vm13 = vcmp.eq.s32.totalorder %v383_v8, %v4020_v10  ;;  %v773_v2 = vpop.permute.xlu0 %772 }
 0x156   : > { %3717 = vset.pattern.permute.xlu1 %v3794_v29  ;;  %3040 = vmatprep.mubr.msk.f32.mxu1 %vm413_vm13, %v3793_v1  ;;  %vm799_vm11 = vcmp.eq.s32.totalorder %v773_v2, %v4020_v10 }
 0x157   : > { %853 = vperm.xlu1 %3717, %v3738_v63   ;;  %3041 = vmatmul.mubr.msk.f32.gmra.mrb[16].mxu1 %vm317_vm12, %v3793_v1 }
 0x158   : > { %3481 = vmatpush1.bf16.msra.mxu0 %v3480_v34 }
 0x159   : > { %v761_v35 = vpop.permute.xlu1 %760  ;;  %3483 = vmatprep.subr.bf16.mxu0 %v3482_v38  ;;  %v4297_v13 = vpop.permute.xlu0 %781 }
 0x15a   : > { %vm795_vm14 = vcmp.eq.s32.totalorder %v761_v35, %v4020_v10 }
 0x15b   : > { %3718 = vset.pattern.permute.xlu1 %v3795_v55  ;;  %3100 = vmatprep.mubr.msk.f32.mxu0 %vm795_vm14, %v3793_v1  ;;  %vm418_vm14 = vcmp.eq.s32.totalorder %v4175_v12, %v4020_v10 }
 0x15c   : > { %952 = vperm.xlu1 %3718, %v3739_v45   ;;  %3485 = vmatpush1.bf16.msra.mxu0 %v3484_v42 }
 0x15d   : > { %v4306_v36 = vpop.permute.xlu0 %784 }
 0x15e   : > { %v665_v43 = vpop.permute.xlu1 %664 }
 0x15f   : > { %vm699_vm0 = vcmp.eq.s32.totalorder %v665_v43, %v4020_v10 }
 0x160   : > { %3720 = vset.pattern.permute.xlu1 %v3794_v29  ;;  %3101 = vmatmul.mubr.msk.f32.gmra.mrb[12].mxu0 %vm699_vm0, %v3793_v1 }
 0x161   : > { %856 = vperm.xlu1 %3720, %v3739_v45   ;;  %3102 = vmatprep.mubr.msk.f32.mxu0 %vm796_vm15, %v3793_v1  ;;  %v671_v59 = vpop.permute.xlu0 %670 }
 0x162   : > { %vm701_vm5 = vcmp.eq.s32.totalorder %v671_v59, %v4020_v10 }
 0x163   : > { %v386_v46 = vpop.permute.xlu1 %385 }
 0x164   : > { %vm414_vm1 = vcmp.eq.s32.totalorder %v386_v46, %v4020_v10 }
 0x165   : > { %3721 = vset.pattern.permute.xlu1 %v3795_v55  ;;  %3042 = vmatprep.mubr.msk.f32.mxu1 %vm414_vm1, %v3793_v1 }
 0x166   : > { %937 = vperm.xlu1 %3721, %v3740_v47  }
 0x168   : > { %v290_v48 = vpop.permute.xlu1 %289 }
 0x169   : > { %vm318_vm3 = vcmp.eq.s32.totalorder %v290_v48, %v4020_v10 }
 0x16a   : > { %3722 = vset.pattern.permute.xlu1 %v3794_v29  ;;  %3043 = vmatmul.mubr.msk.f32.gmra.mrb[18].mxu1 %vm318_vm3, %v3793_v1 }
 0x16b   : > { %841 = vperm.xlu1 %3722, %v3740_v47   ;;  %3044 = vmatprep.mubr.msk.f32.mxu1 %vm415_vm2, %v3793_v1 }
 0x16d   : > { %v668_v52 = vpop.permute.xlu1 %667 }
 0x16e   : > { %vm700_vm4 = vcmp.eq.s32.totalorder %v668_v52, %v4020_v10 }
 0x16f   : > { %859 = vperm.xlu1 %3722, %v3741_v21   ;;  %3103 = vmatmul.mubr.msk.f32.gmra.mrb[14].mxu0 %vm700_vm4, %v3793_v1  ;;  %vm323_vm4 = vcmp.eq.s32.totalorder %v4213_v5, %v4020_v10 }
 0x172   : > { %v767_v53 = vpop.permute.xlu1 %766 }
 0x173   : > { %vm797_vm6 = vcmp.eq.s32.totalorder %v767_v53, %v4020_v10  ;;  %3723 = vset.pattern.permute.xlu1 %v3795_v55 }
 0x174   : > { %958 = vperm.xlu1 %3723, %v3742_v61   ;;  %3104 = vmatprep.mubr.msk.f32.mxu0 %vm797_vm6, %v3793_v1 }
 0x175   : > { %3105 = vmatmul.mubr.msk.f32.gmra.mrb[16].mxu0 %vm701_vm5, %v3793_v1 }
 0x177   : > { %v293_v54 = vpop.permute.xlu1 %292 }
 0x178   : > { %vm319_vm7 = vcmp.eq.s32.totalorder %v293_v54, %v4020_v10  ;;  %3725 = vset.pattern.permute.xlu1 %v3794_v29 }
 0x179   : > { %862 = vperm.xlu1 %3725, %v3742_v61   ;;  %3045 = vmatmul.mubr.msk.f32.gmra.mrb[20].mxu1 %vm319_vm7, %v3793_v1  ;;  %vm802_vm7 = vcmp.eq.s32.totalorder %v4297_v13, %v4020_v10 }
 0x17c   : > { %v392_v56 = vpop.permute.xlu1 %391 }
 0x17d   : > { %vm416_vm9 = vcmp.eq.s32.totalorder %v392_v56, %v4020_v10  ;;  %3726 = vset.pattern.permute.xlu1 %v3795_v55 }
 0x17e   : > { %943 = vperm.xlu1 %3726, %v3743_v51   ;;  %3046 = vmatprep.mubr.msk.f32.mxu1 %vm416_vm9, %v3793_v1 }
 0x17f   : > { %3047 = vmatmul.mubr.msk.f32.gmra.mrb[22].mxu1 %vm320_vm8, %v3793_v1 }
 0x181   : > { %v770_v57 = vpop.permute.xlu1 %769 }
 0x182   : > { %vm798_vm10 = vcmp.eq.s32.totalorder %v770_v57, %v4020_v10  ;;  %3727 = vset.pattern.permute.xlu1 %v3794_v29 }
 0x183   : > { %847 = vperm.xlu1 %3727, %v3743_v51   ;;  %3106 = vmatprep.mubr.msk.f32.mxu0 %vm798_vm10, %v3793_v1 }
 0x186   : > { %v674_v15 = vpop.permute.xlu1 %673 }
 0x187   : > { %vm702_vm12 = vcmp.eq.s32.totalorder %v674_v15, %v4020_v10  ;;  %865 = vperm.xlu1 %3727, %v4156_v0  }
 0x188   : > { %3107 = vmatmul.mubr.msk.f32.gmra.mrb[18].mxu0 %vm702_vm12, %v3793_v1 }
 0x189   : > { %3108 = vmatprep.mubr.msk.f32.mxu0 %vm799_vm11, %v3793_v1  ;;  %vm803_vm11 = vcmp.eq.s32.totalorder %v4306_v36, %v4020_v10 }
 0x18b   : > { %868 = vperm.xlu1 %3727, %v4191_v41   ;;  %v395_v55 = vpop.permute.xlu1 %394  ;;  %v680_v41 = vpop.permute.xlu0 %679 }
 0x18c   : > { %vm417_vm13 = vcmp.eq.s32.totalorder %v395_v55, %v4020_v10  ;;  %vm704_vm1 = vcmp.eq.s32.totalorder %v680_v41, %v4020_v10 }
 0x18d   : > { %3048 = vmatprep.mubr.msk.f32.mxu1 %vm417_vm13, %v3793_v1 }
 0x18f   : > { %871 = vperm.xlu1 %3727, %v4202_v49  }
 0x190   : > { %v299_v29 = vpop.permute.xlu1 %298 }
 0x191   : > { %vm321_vm15 = vcmp.eq.s32.totalorder %v299_v29, %v4020_v10 }
 0x192   : > { %3049 = vmatmul.mubr.msk.f32.gmra.mrb[24].mxu1 %vm321_vm15, %v3793_v1 }
 0x193   : > { %874 = vperm.xlu1 %3727, %v4229_v62   ;;  %3050 = vmatprep.mubr.msk.f32.mxu1 %vm418_vm14, %v3793_v1 }
 0x195   : > { %v677_v0 = vpop.permute.xlu1 %676 }
 0x196   : > { %vm703_vm0 = vcmp.eq.s32.totalorder %v677_v0, %v4020_v10 }
 0x197   : > { %877 = vperm.xlu1 %3727, %v4210_v58   ;;  %3109 = vmatmul.mubr.msk.f32.gmra.mrb[20].mxu0 %vm703_vm0, %v3793_v1 }
 0x19a   : > { %v776_v49 = vpop.permute.xlu1 %775 }
 0x19b   : > { %vm800_vm2 = vcmp.eq.s32.totalorder %v776_v49, %v4020_v10  ;;  %880 = vperm.xlu1 %3727, %v4169_v60  }
 0x19c   : > { %3110 = vmatprep.mubr.msk.f32.mxu0 %vm800_vm2, %v3793_v1 }
 0x19d   : > { %3111 = vmatmul.mubr.msk.f32.gmra.mrb[22].mxu0 %vm704_vm1, %v3793_v1 }
 0x19f   : > { %883 = vperm.xlu1 %3727, %v4247_v4   ;;  %v302_v12 = vpop.permute.xlu1 %301  ;;  %v689_v4 = vpop.permute.xlu0 %688 }
 0x1a0   : > { %vm322_vm3 = vcmp.eq.s32.totalorder %v302_v12, %v4020_v10  ;;  %vm707_vm13 = vcmp.eq.s32.totalorder %v689_v4, %v4020_v10 }
 0x1a1   : > { %3051 = vmatmul.mubr.msk.f32.gmra.mrb[26].mxu1 %vm322_vm3, %v3793_v1 }
 0x1a3   : > { %v839_v37 = vpop.permute.xlu0 %838 }
 0x1a4   : > { %v401_v58 = vpop.permute.xlu1 %400 }
 0x1a5   : > { %vm419_vm5 = vcmp.eq.s32.totalorder %v401_v58, %v4020_v10 }
 0x1a6   : > { %3052 = vmatprep.mubr.msk.f32.mxu1 %vm419_vm5, %v3793_v1 }
 0x1a7   : > { %3053 = vmatmul.mubr.msk.f32.gmra.mrb[28].mxu1 %vm323_vm4, %v3793_v1  ;;  %v845_v23 = vpop.permute.xlu0 %844  ;;  %vm885_vm4 = vcmp.eq.s32.totalorder %v839_v37, %v4020_v10 }
 0x1a9   : > { %v779_v60 = vpop.permute.xlu1 %778 }
 0x1aa   : > { %vm801_vm6 = vcmp.eq.s32.totalorder %v779_v60, %v4020_v10 }
 0x1ab   : > { %3112 = vmatprep.mubr.msk.f32.mxu0 %vm801_vm6, %v3793_v1  ;;  %v950_v11 = vpop.permute.xlu0 %949 }
 0x1ac   : > { %vm986_vm15 = vcmp.eq.s32.totalorder %v950_v11, %v4020_v10 }
 0x1ae   : > { %v683_v62 = vpop.permute.xlu1 %682 }
 0x1af   : > { %vm705_vm8 = vcmp.eq.s32.totalorder %v683_v62, %v4020_v10  ;;  %v935_v17 = vpop.permute.xlu0 %934 }
 0x1b0   : > { %3113 = vmatmul.mubr.msk.f32.gmra.mrb[24].mxu0 %vm705_vm8, %v3793_v1  ;;  %vm981_vm2 = vcmp.eq.s32.totalorder %v935_v17, %v4020_v10 }
 0x1b1   : > { %3114 = vmatprep.mubr.msk.f32.mxu0 %vm802_vm7, %v3793_v1 }
 0x1b3   : > { %v404_v5 = vpop.permute.xlu1 %403  ;;  %v956_v26 = vpop.permute.xlu0 %955 }
 0x1b4   : > { %vm420_vm9 = vcmp.eq.s32.totalorder %v404_v5, %v4020_v10  ;;  %vm988_vm7 = vcmp.eq.s32.totalorder %v956_v26, %v4020_v10 }
 0x1b5   : > { %3054 = vmatprep.mubr.msk.f32.mxu1 %vm420_vm9, %v3793_v1 }
 0x1b7   : > { %v941_v25 = vpop.permute.xlu0 %940 }
 0x1b8   : > { %v308_v32 = vpop.permute.xlu1 %307 }
 0x1b9   : > { %vm324_vm10 = vcmp.eq.s32.totalorder %v308_v32, %v4020_v10 }
 0x1ba   : > { %3055 = vmatmul.mubr.msk.f32.gmra.mrb[30].mxu1 %vm324_vm10, %v3793_v1  ;;  %vm983_vm10 = vcmp.eq.s32.totalorder %v941_v25, %v4020_v10 }
 0x1bb   : > { %v962_v42 = vpop.permute.xlu0 %961 }
 0x1bd   : > { %v686_v39 = vpop.permute.xlu1 %685 }
 0x1be   : > { %vm706_vm12 = vcmp.eq.s32.totalorder %v686_v39, %v4020_v10 }
 0x1bf   : > { %3115 = vmatmul.mubr.msk.f32.gmra.mrb[26].mxu0 %vm706_vm12, %v3793_v1  ;;  %vm887_vm12 = vcmp.eq.s32.totalorder %v845_v23, %v4020_v10  ;;  %v965_v8 = vpop.permute.xlu0 %964 }
 0x1c0   : > { %3116 = vmatprep.mubr.msk.f32.mxu0 %vm803_vm11, %v3793_v1 }
 0x1c2   : > { %v947_v7 = vpop.permute.xlu1 %946 }
 0x1c3   : > { %vm985_vm14 = vcmp.eq.s32.totalorder %v947_v7, %v4020_v10  ;;  %3117 = vmatmul.mubr.msk.f32.gmra.mrb[28].mxu0 %vm707_vm13, %v3793_v1  ;;  %v968_v45 = vpop.permute.xlu0 %967 }
 0x1c4   : > { %3128 = vmatprep.mubr.msk.f32.mxu1 %vm985_vm14, %v3793_v1 }
 0x1c5   : > { %v4384_v9 = vpop.f32.mrb[0].mxu1 }
 0x1c6   : > { %v4386_v14 = vpop.f32.mrb[1].mxu1 }
 0x1c7   : > { %v851_v16 = vpop.permute.xlu1 %850  ;;  %v971_v47 = vpop.permute.xlu0 %970 }
 0x1c8   : > { %vm889_vm0 = vcmp.eq.s32.totalorder %v851_v16, %v4020_v10 }
 0x1c9   : > { %3129 = vmatmul.mubr.msk.f32.vlgmr.msra.gmra.mrb[32].mxu1 %vm889_vm0, %v3793_v1  ;;  %vm990_vm0 = vcmp.eq.s32.totalorder %v962_v42, %v4020_v10 }
 0x1ca   : > { %3130 = vmatprep.mubr.msk.f32.mxu1 %vm986_vm15, %v3793_v1 }
 0x1cb   : > { %v974_v36 = vpop.permute.xlu0 %973 }
 0x1cc   : > { %v788_v44 = vpop.permute.xlu1 %787 }
 0x1cd   : > { %vm804_vm1 = vcmp.eq.s32.totalorder %v788_v44, %v4020_v10 }
 0x1ce   : > { %3118 = vmatprep.mubr.msk.f32.mxu0 %vm804_vm1, %v3793_v1 }
 0x1cf   : > { %v977_v59 = vpop.permute.xlu0 %976 }
 0x1d1   : > { %v692_v18 = vpop.permute.xlu1 %691 }
 0x1d2   : > { %vm708_vm3 = vcmp.eq.s32.totalorder %v692_v18, %v4020_v10 }
 0x1d3   : > { %3119 = vmatmul.mubr.msk.f32.gmra.mrb[30].mxu0 %vm708_vm3, %v3793_v1  ;;  %v980_v56 = vpop.permute.xlu0 %979 }
 0x1d4   : > { %v4398_v19 = vpop.f32.mrb[2].mxu1  ;;  %3120 = vmatprep.mubr.msk.f32.mxu0 %vm981_vm2, %v3793_v1 }
 0x1d5   : > { %v4401_v22 = vpop.f32.mrb[3].mxu1 }
 0x1d6   : > { %v854_v24 = vpop.permute.xlu1 %853 }
 0x1d7   : > { %vm890_vm5 = vcmp.eq.s32.totalorder %v854_v24, %v4020_v10  ;;  %3121 = vmatmul.mubr.msk.f32.vlgmr.msra.gmra.mrb[0].mxu0 %vm885_vm4, %v3793_v1  ;;  %vm991_vm4 = vcmp.eq.s32.totalorder %v965_v8, %v4020_v10 }
 0x1d8   : > { %3131 = vmatmul.mubr.msk.f32.gmra.mrb[34].mxu1 %vm890_vm5, %v3793_v1 }
 0x1db   : > { %v953_v6 = vpop.permute.xlu1 %952 }
 0x1dc   : > { %vm987_vm6 = vcmp.eq.s32.totalorder %v953_v6, %v4020_v10 }
 0x1dd   : > { %3132 = vmatprep.mubr.msk.f32.mxu1 %vm987_vm6, %v3793_v1  ;;  %vm992_vm6 = vcmp.eq.s32.totalorder %v968_v45, %v4020_v10 }
 0x1e0   : > { %v857_v27 = vpop.permute.xlu1 %856 }
 0x1e1   : > { %vm891_vm8 = vcmp.eq.s32.totalorder %v857_v27, %v4020_v10 }
 0x1e2   : > { %3133 = vmatmul.mubr.msk.f32.gmra.mrb[36].mxu1 %vm891_vm8, %v3793_v1  ;;  %vm993_vm8 = vcmp.eq.s32.totalorder %v971_v47, %v4020_v10 }
 0x1e3   : > { %3134 = vmatprep.mubr.msk.f32.mxu1 %vm988_vm7, %v3793_v1 }
 0x1e5   : > { %v938_v3 = vpop.permute.xlu1 %937  ;;  %v4412_v28 = vpop.f32.mrb[4].mxu1 }
 0x1e6   : > { %vm982_vm9 = vcmp.eq.s32.totalorder %v938_v3, %v4020_v10  ;;  %v4415_v30 = vpop.f32.mrb[5].mxu1 }
 0x1e7   : > { %3122 = vmatprep.mubr.msk.f32.mxu0 %vm982_vm9, %v3793_v1 }
 0x1ea   : > { %v842_v33 = vpop.permute.xlu1 %841 }
 0x1eb   : > { %vm886_vm11 = vcmp.eq.s32.totalorder %v842_v33, %v4020_v10 }
 0x1ec   : > { %3123 = vmatmul.mubr.msk.f32.gmra.mrb[2].mxu0 %vm886_vm11, %v3793_v1 }
 0x1ed   : > { %v4421_v34 = vpop.f32.mrb[6].mxu1  ;;  %3124 = vmatprep.mubr.msk.f32.mxu0 %vm983_vm10, %v3793_v1  ;;  %vm994_vm10 = vcmp.eq.s32.totalorder %v974_v36, %v4020_v10 }
 0x1ee   : > { %v860_v38 = vpop.permute.xlu1 %859  ;;  %v4424_v20 = vpop.f32.mrb[7].mxu1 }
 0x1ef   : > { %vm892_vm13 = vcmp.eq.s32.totalorder %v860_v38, %v4020_v10 }
 0x1f0   : > { %3125 = vmatmul.mubr.msk.f32.gmra.mrb[4].mxu0 %vm887_vm12, %v3793_v1  ;;  %3135 = vmatmul.mubr.msk.f32.gmra.mrb[38].mxu1 %vm892_vm13, %v3793_v1  ;;  %vm995_vm12 = vcmp.eq.s32.totalorder %v977_v59, %v4020_v10 }
 0x1f3   : > { %v959_v40 = vpop.permute.xlu1 %958 }
 0x1f4   : > { %vm989_vm14 = vcmp.eq.s32.totalorder %v959_v40, %v4020_v10 }
 0x1f5   : > { %3136 = vmatprep.mubr.msk.f32.mxu1 %vm989_vm14, %v3793_v1  ;;  %vm996_vm14 = vcmp.eq.s32.totalorder %v980_v56, %v4020_v10 }
 0x1f8   : > { %v863_v50 = vpop.permute.xlu1 %862 }
 0x1f9   : > { %vm893_vm15 = vcmp.eq.s32.totalorder %v863_v50, %v4020_v10 }
 0x1fa   : > { %3137 = vmatmul.mubr.msk.f32.gmra.mrb[40].mxu1 %vm893_vm15, %v3793_v1 }
 0x1fb   : > { %3138 = vmatprep.mubr.msk.f32.mxu1 %vm990_vm0, %v3793_v1  ;;  %vm2521_vm0 = vcmask 130048  }
 0x1fc   : > { %v1375_v63 = vpop.f32.mrb[8].mxu1 }
 0x1fd   : > { %v944_v31 = vpop.permute.xlu1 %943  ;;  %v1377_v35 = vpop.f32.mrb[9].mxu1 }
 0x1fe   : > { %vm984_vm1 = vcmp.eq.s32.totalorder %v944_v31, %v4020_v10 }
 0x1ff   : > { %3126 = vmatprep.mubr.msk.f32.mxu0 %vm984_vm1, %v3793_v1  ;;  %vm2538_vm1 = vcmask 261120  }
 0x202   : > { %v848_v2 = vpop.permute.xlu1 %847  ;;  %v1381_v43 = vpop.f32.mrb[10].mxu1 }
 0x203   : > { %vm888_vm2 = vcmp.eq.s32.totalorder %v848_v2, %v4020_v10  ;;  %v1383_v46 = vpop.f32.mrb[11].mxu1 }
 0x204   : > { %3127 = vmatmul.mubr.msk.f32.gmra.mrb[6].mxu0 %vm888_vm2, %v3793_v1  ;;  %vm2607_vm2 = vcmask 392192  }
 0x206   : > { %v866_v13 = vpop.permute.xlu1 %865 }
 0x207   : > { %vm894_vm3 = vcmp.eq.s32.totalorder %v866_v13, %v4020_v10 }
 0x208   : > { %3139 = vmatmul.mubr.msk.f32.gmra.mrb[42].mxu1 %vm894_vm3, %v3793_v1 }
 0x209   : > { %3140 = vmatprep.mubr.msk.f32.mxu1 %vm991_vm4, %v3793_v1 }
 0x20a   : > { %v869_v48 = vpop.permute.xlu1 %868 }
 0x20b   : > { %vm895_vm5 = vcmp.eq.s32.totalorder %v869_v48, %v4020_v10 }
 0x20c   : > { %3141 = vmatmul.mubr.msk.f32.gmra.mrb[44].mxu1 %vm895_vm5, %v3793_v1 }
 0x20d   : > { %3142 = vmatprep.mubr.msk.f32.mxu1 %vm992_vm6, %v3793_v1 }
 0x20e   : > { %v872_v52 = vpop.permute.xlu1 %871 }
 0x20f   : > { %vm896_vm7 = vcmp.eq.s32.totalorder %v872_v52, %v4020_v10 }
 0x210   : > { %3143 = vmatmul.mubr.msk.f32.gmra.mrb[46].mxu1 %vm896_vm7, %v3793_v1 }
 0x211   : > { %3144 = vmatprep.mubr.msk.f32.mxu1 %vm993_vm8, %v3793_v1 }
 0x212   : > { %v875_v21 = vpop.permute.xlu1 %874 }
 0x213   : > { %vm897_vm9 = vcmp.eq.s32.totalorder %v875_v21, %v4020_v10 }
 0x214   : > { %3145 = vmatmul.mubr.msk.f32.gmra.mrb[48].mxu1 %vm897_vm9, %v3793_v1 }
 0x215   : > { %v1387_v53 = vpop.f32.mrb[12].mxu1  ;;  %3146 = vmatprep.mubr.msk.f32.mxu1 %vm994_vm10, %v3793_v1 }
 0x216   : > { %v878_v61 = vpop.permute.xlu1 %877  ;;  %v1389_v54 = vpop.f32.mrb[13].mxu1 }
 0x217   : > { %vm898_vm11 = vcmp.eq.s32.totalorder %v878_v61, %v4020_v10 }
 0x218   : > { %3147 = vmatmul.mubr.msk.f32.gmra.mrb[50].mxu1 %vm898_vm11, %v3793_v1 }
 0x219   : > { %3148 = vmatprep.mubr.msk.f32.mxu1 %vm995_vm12, %v3793_v1 }
 0x21a   : > { %v881_v51 = vpop.permute.xlu1 %880  ;;  %v1697_v57 = vpop.f32.mrb[8].mxu0 }
 0x21b   : > { %vm899_vm13 = vcmp.eq.s32.totalorder %v881_v51, %v4020_v10  ;;  %v4461_v15 = vadd.f32 %v1697_v57, %v1375_v63  ;;  %v1699_v55 = vpop.f32.mrb[9].mxu0 }
 0x21c   : > { %v4464_v29 = vadd.f32 %v1699_v55, %v1377_v35  ;;  %3149 = vmatmul.mubr.msk.f32.gmra.mrb[52].mxu1 %vm899_vm13, %v3793_v1 }
 0x21d   : > { %3150 = vmatprep.mubr.msk.f32.mxu1 %vm996_vm14, %v3793_v1 }
 0x21e   : > { %v884_v0 = vpop.permute.xlu1 %883 }
 0x21f   : > { %vm900_vm15 = vcmp.eq.s32.totalorder %v884_v0, %v4020_v10 }
 0x220   : > { %3151 = vmatmul.mubr.msk.f32.gmra.mrb[54].mxu1 %vm900_vm15, %v3793_v1  ;;  %v1703_v41 = vpop.f32.mrb[10].mxu0 }
 0x221   : > { %v4470_v49 = vadd.f32 %v1703_v41, %v1381_v43  ;;  %v1705_v12 = vpop.f32.mrb[11].mxu0 }
 0x222   : > { %v4472_v58 = vadd.f32 %v1705_v12, %v1383_v46 }
 0x224   : > { %v1393_v60 = vpop.f32.mrb[14].mxu1 }
 0x225   : > { %v1395_v62 = vpop.f32.mrb[15].mxu1 }
 0x22a   : > { %v1399_v5 = vpop.f32.mrb[16].mxu1 }
 0x22b   : > { %v1401_v4 = vpop.f32.mrb[17].mxu1 }
 0x233   : > { %v1709_v32 = vpop.f32.mrb[12].mxu0 }
 0x234   : > { %v4474_v37 = vadd.f32 %v1709_v32, %v1387_v53  ;;  %v1711_v39 = vpop.f32.mrb[13].mxu0 }
 0x235   : > { %v4476_v23 = vadd.f32 %v1711_v39, %v1389_v54 }
 0x23d   : > { %v1405_v7 = vpop.f32.mrb[18].mxu1 }
 0x23e   : > { %v1407_v10 = vpop.f32.mrb[19].mxu1 }
 0x242   : > { %v1715_v11 = vpop.f32.mrb[14].mxu0 }
 0x243   : > { %v4478_v1 = vadd.f32 %v1715_v11, %v1393_v60  ;;  %v1717_v16 = vpop.f32.mrb[15].mxu0 }
 0x244   : > { %v4480_v44 = vadd.f32 %v1717_v16, %v1395_v62 }
 0x248   : > { %v1721_v17 = vpop.f32.mrb[16].mxu0 }
 0x249   : > { %v4482_v18 = vadd.f32 %v1721_v17, %v1399_v5  ;;  %v1723_v24 = vpop.f32.mrb[17].mxu0 }
 0x24a   : > { %v4484_v6 = vadd.f32 %v1723_v24, %v1401_v4 }
 0x24c   : > { %v1411_v26 = vpop.f32.mrb[20].mxu1 }
 0x24d   : > { %v1413_v27 = vpop.f32.mrb[21].mxu1 }
 0x252   : > { %v1417_v3 = vpop.f32.mrb[22].mxu1 }
 0x253   : > { %v1419_v25 = vpop.f32.mrb[23].mxu1 }
 0x25b   : > { %v1727_v33 = vpop.f32.mrb[18].mxu0 }
 0x25c   : > { %v4486_v38 = vadd.f32 %v1727_v33, %v1405_v7  ;;  %v1729_v40 = vpop.f32.mrb[19].mxu0 }
 0x25d   : > { %v4488_v42 = vadd.f32 %v1729_v40, %v1407_v10 }
 0x265   : > { %v1423_v50 = vpop.f32.mrb[24].mxu1 }
 0x266   : > { %v1425_v8 = vpop.f32.mrb[25].mxu1 }
 0x26a   : > { %v1733_v63 = vpop.f32.mrb[20].mxu0 }
 0x26b   : > { %v4490_v31 = vadd.f32 %v1733_v63, %v1411_v26  ;;  %v1735_v35 = vpop.f32.mrb[21].mxu0 }
 0x26c   : > { %v4492_v45 = vadd.f32 %v1735_v35, %v1413_v27 }
 0x270   : > { %v1739_v2 = vpop.f32.mrb[22].mxu0 }
 0x271   : > { %v4494_v43 = vadd.f32 %v1739_v2, %v1417_v3  ;;  %v1741_v46 = vpop.f32.mrb[23].mxu0 }
 0x272   : > { %v4496_v13 = vadd.f32 %v1741_v46, %v1419_v25 }
 0x274   : > { %v1429_v47 = vpop.f32.mrb[26].mxu1 }
 0x275   : > { %v1431_v48 = vpop.f32.mrb[27].mxu1 }
 0x27a   : > { %v1435_v36 = vpop.f32.mrb[28].mxu1 }
 0x27b   : > { %v1437_v52 = vpop.f32.mrb[29].mxu1 }
 0x283   : > { %v1745_v21 = vpop.f32.mrb[24].mxu0 }
 0x284   : > { %v4498_v59 = vadd.f32 %v1745_v21, %v1423_v50  ;;  %v1747_v53 = vpop.f32.mrb[25].mxu0 }
 0x285   : > { %v4500_v61 = vadd.f32 %v1747_v53, %v1425_v8 }
 0x28d   : > { %v1441_v54 = vpop.f32.mrb[30].mxu1 }
 0x28e   : > { %v1443_v56 = vpop.f32.mrb[31].mxu1 }
 0x292   : > { %v1751_v51 = vpop.f32.mrb[26].mxu0 }
 0x293   : > { %v4502_v57 = vadd.f32 %v1751_v51, %v1429_v47  ;;  %v1753_v55 = vpop.f32.mrb[27].mxu0 }
 0x294   : > { %v4504_v0 = vadd.f32 %v1753_v55, %v1431_v48 }
 0x296   : > { %v1757_v41 = vpop.f32.mrb[28].mxu0 }
 0x297   : > { %v4506_v12 = vadd.f32 %v1757_v41, %v1435_v36  ;;  %v1759_v60 = vpop.f32.mrb[29].mxu0 }
 0x298   : > { %v4508_v62 = vadd.f32 %v1759_v60, %v1437_v52 }
 0x29c   : > { %v1858_v5 = vpop.f32.mrb[32].mxu1 }
 0x29d   : > { %v4511_v4 = vadd.f32 %v4461_v15, %v1858_v5  ;;  %v1860_v32 = vpop.f32.mrb[33].mxu1 }
 0x29e   : > { %v4514_v39 = vadd.f32 %v4464_v29, %v1860_v32 }
 0x29f   : > { %1953 = vrot.lane.b32.xlu0 %v4511_v4, %s3796_s17 }
 0x2a0   : > { %2321 = vrot.lane.b32.xlu1 %v4514_v39, %s3797_s19 }
 0x2a3   : > { %2177 = vrot.lane.b32.xlu0 %v4514_v39, %s3796_s17 }
 0x2a6   : > { %v1763_v7 = vpop.f32.mrb[30].mxu0 }
 0x2a7   : > { %v4522_v10 = vadd.f32 %v1763_v7, %v1441_v54  ;;  %v1765_v15 = vpop.f32.mrb[31].mxu0 }
 0x2a8   : > { %v4524_v11 = vadd.f32 %v1765_v15, %v1443_v56 }
 0x2aa   : > { %v1834_v16 = vpop.f32.mrb[0].mxu0 }
 0x2ab   : > { %v4527_v29 = vadd.f32 %v1834_v16, %v4384_v9  ;;  %v1836_v17 = vpop.f32.mrb[1].mxu0  ;;  %v1864_v24 = vpop.f32.mrb[34].mxu1 }
 0x2ac   : > { %v4530_v26 = vadd.f32 %v1836_v17, %v4386_v14  ;;  %v4533_v27 = vadd.f32 %v4470_v49, %v1864_v24  ;;  %v1866_v3 = vpop.f32.mrb[35].mxu1 }
 0x2ad   : > { %v4536_v25 = vadd.f32 %v4472_v58, %v1866_v3 }
 0x2ae   : > { %1955 = vrot.lane.b32.xlu0 %v4533_v27, %s3796_s17 }
 0x2af   : > { %2179 = vrot.lane.b32.xlu1 %v4536_v25, %s3796_s17 }
 0x2b3   : > { %2323 = vrot.lane.b32.xlu1 %v4536_v25, %s3797_s19 }
 0x2b5   : > { %v1870_v9 = vpop.f32.mrb[36].mxu1 }
 0x2b6   : > { %v4545_v14 = vadd.f32 %v4474_v37, %v1870_v9  ;;  %v1872_v33 = vpop.f32.mrb[37].mxu1 }
 0x2b7   : > { %v4548_v49 = vadd.f32 %v4476_v23, %v1872_v33 }
 0x2b8   : > { %1957 = vrot.lane.b32.xlu0 %v4545_v14, %s3796_s17 }
 0x2b9   : > { %2325 = vrot.lane.b32.xlu1 %v4548_v49, %s3797_s19 }
 0x2bc   : > { %2181 = vrot.lane.b32.xlu0 %v4548_v49, %s3796_s17 }
 0x2bf   : > { %v1840_v58 = vpop.f32.mrb[2].mxu0 }
 0x2c0   : > { %v4557_v40 = vadd.f32 %v1840_v58, %v4398_v19  ;;  %v1842_v50 = vpop.f32.mrb[3].mxu0 }
 0x2c1   : > { %v4560_v37 = vadd.f32 %v1842_v50, %v4401_v22 }
 0x2c3   : > { %v1846_v8 = vpop.f32.mrb[4].mxu0  ;;  %v1876_v23 = vpop.f32.mrb[38].mxu1 }
 0x2c4   : > { %v4563_v63 = vadd.f32 %v1846_v8, %v4412_v28  ;;  %v4566_v35 = vadd.f32 %v4478_v1, %v1876_v23  ;;  %v1848_v2 = vpop.f32.mrb[5].mxu0  ;;  %v1878_v46 = vpop.f32.mrb[39].mxu1 }
 0x2c5   : > { %v4569_v47 = vadd.f32 %v1848_v2, %v4415_v30  ;;  %v4572_v19 = vadd.f32 %v4480_v44, %v1878_v46 }
 0x2c6   : > { %1959 = vrot.lane.b32.xlu0 %v4566_v35, %s3796_s17 }
 0x2c7   : > { %2183 = vrot.lane.b32.xlu1 %v4572_v19, %s3796_s17 }
 0x2cb   : > { %2327 = vrot.lane.b32.xlu1 %v4572_v19, %s3797_s19 }
 0x2cd   : > { %v1882_v22 = vpop.f32.mrb[40].mxu1 }
 0x2ce   : > { %v4581_v28 = vadd.f32 %v4482_v18, %v1882_v22  ;;  %v1884_v1 = vpop.f32.mrb[41].mxu1 }
 0x2cf   : > { %v4584_v30 = vadd.f32 %v4484_v6, %v1884_v1 }
 0x2d0   : > { %1961 = vrot.lane.b32.xlu0 %v4581_v28, %s3796_s17 }
 0x2d1   : > { %2329 = vrot.lane.b32.xlu1 %v4584_v30, %s3797_s19 }
 0x2d4   : > { %2185 = vrot.lane.b32.xlu0 %v4584_v30, %s3796_s17 }
 0x2d7   : > { %v1852_v44 = vpop.f32.mrb[6].mxu0 }
 0x2d8   : > { %v4593_v48 = vadd.f32 %v1852_v44, %v4421_v34  ;;  %v1854_v36 = vpop.f32.mrb[7].mxu0 }
 0x2d9   : > { %v4596_v18 = vadd.f32 %v1854_v36, %v4424_v20 }
 0x2db   : > { %v1888_v52 = vpop.f32.mrb[42].mxu1 }
 0x2dc   : > { %v4599_v6 = vadd.f32 %v4486_v38, %v1888_v52  ;;  %v1890_v21 = vpop.f32.mrb[43].mxu1 }
 0x2dd   : > { %v4602_v53 = vadd.f32 %v4488_v42, %v1890_v21 }
 0x2de   : > { %1963 = vrot.lane.b32.xlu0 %v4599_v6, %s3796_s17 }
 0x2df   : > { %2187 = vrot.lane.b32.xlu1 %v4602_v53, %s3796_s17  ;;  %v1894_v34 = vpop.f32.mrb[44].mxu1 }
 0x2e0   : > { %v4609_v54 = vadd.f32 %v4490_v31, %v1894_v34  ;;  %v1896_v20 = vpop.f32.mrb[45].mxu1 }
 0x2e1   : > { %v4612_v56 = vadd.f32 %v4492_v45, %v1896_v20 }
 0x2e2   : > { %1965 = vrot.lane.b32.xlu0 %v4609_v54, %s3796_s17 }
 0x2e3   : > { %2331 = vrot.lane.b32.xlu1 %v4602_v53, %s3797_s19  ;;  %v1900_v38 = vpop.f32.mrb[46].mxu1 }
 0x2e4   : > { %v4619_v42 = vadd.f32 %v4494_v43, %v1900_v38  ;;  %v1902_v51 = vpop.f32.mrb[47].mxu1 }
 0x2e5   : > { %v4622_v55 = vadd.f32 %v4496_v13, %v1902_v51 }
 0x2e6   : > { %2189 = vrot.lane.b32.xlu0 %v4612_v56, %s3796_s17 }
 0x2e7   : > { %2333 = vrot.lane.b32.xlu1 %v4612_v56, %s3797_s19  ;;  %v1906_v31 = vpop.f32.mrb[48].mxu1 }
 0x2e8   : > { %v4629_v45 = vadd.f32 %v4498_v59, %v1906_v31  ;;  %v1908_v41 = vpop.f32.mrb[49].mxu1 }
 0x2e9   : > { %v4632_v60 = vadd.f32 %v4500_v61, %v1908_v41 }
 0x2ea   : > { %1967 = vrot.lane.b32.xlu0 %v4619_v42, %s3796_s17 }
 0x2eb   : > { %2191 = vrot.lane.b32.xlu1 %v4622_v55, %s3796_s17  ;;  %v1912_v43 = vpop.f32.mrb[50].mxu1 }
 0x2ec   : > { %v4639_v13 = vadd.f32 %v4502_v57, %v1912_v43  ;;  %v1914_v5 = vpop.f32.mrb[51].mxu1 }
 0x2ed   : > { %v4642_v32 = vadd.f32 %v4504_v0, %v1914_v5 }
 0x2ee   : > { %1969 = vrot.lane.b32.xlu0 %v4629_v45, %s3796_s17 }
 0x2ef   : > { %2335 = vrot.lane.b32.xlu1 %v4622_v55, %s3797_s19  ;;  %v1918_v59 = vpop.f32.mrb[52].mxu1 }
 0x2f0   : > { %v4649_v61 = vadd.f32 %v4506_v12, %v1918_v59  ;;  %v1920_v7 = vpop.f32.mrb[53].mxu1 }
 0x2f1   : > { %v4652_v15 = vadd.f32 %v4508_v62, %v1920_v7 }
 0x2f2   : > { %2193 = vrot.lane.b32.xlu0 %v4632_v60, %s3796_s17 }
 0x2f3   : > { %2337 = vrot.lane.b32.xlu1 %v4632_v60, %s3797_s19  ;;  %v1924_v57 = vpop.f32.mrb[54].mxu1 }
 0x2f4   : > { %v4659_v0 = vadd.f32 %v4522_v10, %v1924_v57  ;;  %v1926_v16 = vpop.f32.mrb[55].mxu1 }
 0x2f5   : > { %v4662_v17 = vadd.f32 %v4524_v11, %v1926_v16 }
 0x2f6   : > { %1971 = vrot.lane.b32.xlu0 %v4639_v13, %s3796_s17 }
 0x2f7   : > { %2195 = vrot.lane.b32.xlu1 %v4642_v32, %s3796_s17 }
 0x2fa   : > { %1973 = vrot.lane.b32.xlu0 %v4649_v61, %s3796_s17 }
 0x2fb   : > { %2339 = vrot.lane.b32.xlu1 %v4642_v32, %s3797_s19 }
 0x2fe   : > { %2197 = vrot.lane.b32.xlu0 %v4652_v15, %s3796_s17 }
 0x2ff   : > { %2199 = vrot.lane.b32.xlu1 %v4662_v17, %s3796_s17 }
 0x302   : > { %2341 = vrot.lane.b32.xlu0 %v4652_v15, %s3797_s19 }
 0x303   : > { %2343 = vrot.lane.b32.xlu1 %v4662_v17, %s3797_s19 }
 0x306   : > { %1975 = vrot.lane.b32.xlu0 %v4659_v0, %s3796_s17 }
 0x307   : > { %2313 = vrot.lane.b32.xlu1 %v4530_v26, %s3797_s19 }
 0x30a   : > { %1945 = vrot.lane.b32.xlu0 %v4527_v29, %s3796_s17 }
 0x30b   : > { %1947 = vrot.lane.b32.xlu1 %v4557_v40, %s3796_s17 }
 0x30e   : > { %2169 = vrot.lane.b32.xlu0 %v4530_v26, %s3796_s17 }
 0x30f   : > { %2171 = vrot.lane.b32.xlu1 %v4560_v37, %s3796_s17 }
 0x311   : > { %v1954_v12 = vpop.permute.xlu0 %1953 }
 0x312   : > { %1949 = vrot.lane.b32.xlu0 %v4563_v63, %s3796_s17  ;;  %v4705_v62 = vmax.f32 %v4511_v4, %v1954_v12  ;;  %v4714_v3 = vpop.permute.xlu1 %2321 }
 0x313   : > { %2315 = vrot.lane.b32.xlu1 %v4560_v37, %s3797_s19 }
 0x315   : > { %v2178_v10 = vpop.permute.xlu0 %2177 }
 0x316   : > { %2173 = vrot.lane.b32.xlu0 %v4569_v47, %s3796_s17  ;;  %v4712_v11 = vmax.f32 %v4514_v39, %v2178_v10 }
 0x317   : > { %2317 = vrot.lane.b32.xlu1 %v4569_v47, %s3797_s19 }
 0x31a   : > { %1951 = vrot.lane.b32.xlu0 %v4593_v48, %s3796_s17 }
 0x31b   : > { %2175 = vrot.lane.b32.xlu1 %v4596_v18, %s3796_s17 }
 0x31e   : > { %2033 = vrot.lane.b32.xlu0 %v4705_v62, %s3798_s20 }
 0x31f   : > { %2319 = vrot.lane.b32.xlu1 %v4596_v18, %s3797_s19 }
 0x320   : > { %v1956_v24 = vpop.permute.xlu0 %1955 }
 0x321   : > { %v4721_v4 = vmax.f32 %v4533_v27, %v1956_v24  ;;  %v2180_v9 = vpop.permute.xlu1 %2179 }
 0x322   : > { %2257 = vrot.lane.b32.xlu0 %v4712_v11, %s3798_s20  ;;  %v4728_v39 = vmax.f32 %v4536_v25, %v2180_v9 }
 0x323   : > { %2097 = vrot.lane.b32.xlu1 %v4705_v62, %s3797_s19 }
 0x325   : > { %v4744_v25 = vpop.permute.xlu1 %2323 }
 0x326   : > { %2035 = vrot.lane.b32.xlu0 %v4721_v4, %s3798_s20 }
 0x327   : > { %2099 = vrot.lane.b32.xlu1 %v4721_v4, %s3797_s19 }
 0x32a   : > { %v1958_v33 = vpop.permute.xlu0 %1957 }
 0x32b   : > { %v4731_v58 = vmax.f32 %v4545_v14, %v1958_v33  ;;  %2259 = vrot.lane.b32.xlu1 %v4728_v39, %s3798_s20  ;;  %v4746_v14 = vpop.permute.xlu1 %2325 }
 0x32d   : > { %2037 = vrot.lane.b32.xlu0 %v4731_v58, %s3798_s20 }
 0x32e   : > { %v2182_v27 = vpop.permute.xlu0 %2181 }
 0x32f   : > { %v4738_v50 = vmax.f32 %v4548_v49, %v2182_v27  ;;  %2101 = vrot.lane.b32.xlu1 %v4731_v58, %s3797_s19 }
 0x331   : > { %2261 = vrot.lane.b32.xlu0 %v4738_v50, %s3798_s20 }
 0x338   : > { %v1960_v8 = vpop.permute.xlu0 %1959 }
 0x339   : > { %v4749_v23 = vmax.f32 %v4566_v35, %v1960_v8  ;;  %v2184_v2 = vpop.permute.xlu1 %2183 }
 0x33a   : > { %v4756_v49 = vmax.f32 %v4572_v19, %v2184_v2 }
 0x33b   : > { %2103 = vrot.lane.b32.xlu1 %v4749_v23, %s3797_s19  ;;  %2039 = vrot.lane.b32.xlu0 %v4749_v23, %s3798_s20 }
 0x33d   : > { %v4770_v44 = vpop.permute.xlu1 %2327 }
 0x33f   : > { %2263 = vrot.lane.b32.xlu1 %v4756_v49, %s3798_s20 }
 0x342   : > { %v1962_v46 = vpop.permute.xlu0 %1961 }
 0x343   : > { %v4761_v22 = vmax.f32 %v4581_v28, %v1962_v46  ;;  %v4774_v19 = vpop.permute.xlu1 %2329 }
 0x345   : > { %2105 = vrot.lane.b32.xlu1 %v4761_v22, %s3797_s19  ;;  %2041 = vrot.lane.b32.xlu0 %v4761_v22, %s3798_s20 }
 0x346   : > { %v2186_v35 = vpop.permute.xlu0 %2185 }
 0x347   : > { %v4768_v1 = vmax.f32 %v4584_v30, %v2186_v35 }
 0x349   : > { %2265 = vrot.lane.b32.xlu0 %v4768_v1, %s3798_s20 }
 0x350   : > { %v1964_v36 = vpop.permute.xlu0 %1963 }
 0x351   : > { %v4777_v28 = vmax.f32 %v4599_v6, %v1964_v36  ;;  %v2188_v52 = vpop.permute.xlu1 %2187 }
 0x352   : > { %v4784_v21 = vmax.f32 %v4602_v53, %v2188_v52 }
 0x353   : > { %2107 = vrot.lane.b32.xlu1 %v4777_v28, %s3797_s19  ;;  %2043 = vrot.lane.b32.xlu0 %v4777_v28, %s3798_s20 }
 0x354   : > { %v1966_v30 = vpop.permute.xlu0 %1965 }
 0x355   : > { %v4787_v34 = vmax.f32 %v4609_v54, %v1966_v30  ;;  %v4789_v20 = vpop.permute.xlu1 %2331 }
 0x357   : > { %2267 = vrot.lane.b32.xlu1 %v4784_v21, %s3798_s20  ;;  %2045 = vrot.lane.b32.xlu0 %v4787_v34, %s3798_s20 }
 0x358   : > { %v2190_v6 = vpop.permute.xlu0 %2189 }
 0x359   : > { %v4796_v38 = vmax.f32 %v4612_v56, %v2190_v6  ;;  %v4798_v51 = vpop.permute.xlu1 %2333 }
 0x35b   : > { %2269 = vrot.lane.b32.xlu0 %v4796_v38, %s3798_s20 }
 0x35c   : > { %v1968_v53 = vpop.permute.xlu0 %1967 }
 0x35d   : > { %v2192_v54 = vpop.permute.xlu1 %2191 }
 0x35e   : > { %v4803_v31 = vmax.f32 %v4622_v55, %v2192_v54 }
 0x360   : > { %2271 = vrot.lane.b32.xlu1 %v4803_v31, %s3798_s20  ;;  %v1970_v41 = vpop.permute.xlu0 %1969 }
 0x361   : > { %v4807_v43 = vpop.permute.xlu1 %2335 }
 0x364   : > { %v2194_v5 = vpop.permute.xlu0 %2193 }
 0x365   : > { %v4810_v56 = vmax.f32 %v4632_v60, %v2194_v5  ;;  %v4812_v59 = vpop.permute.xlu1 %2337 }
 0x367   : > { %2273 = vrot.lane.b32.xlu0 %v4810_v56, %s3798_s20 }
 0x368   : > { %v1972_v7 = vpop.permute.xlu0 %1971 }
 0x369   : > { %v2196_v57 = vpop.permute.xlu1 %2195 }
 0x36a   : > { %v4817_v55 = vmax.f32 %v4642_v32, %v2196_v57 }
 0x36c   : > { %2275 = vrot.lane.b32.xlu1 %v4817_v55, %s3798_s20  ;;  %v4821_v16 = vpop.permute.xlu0 %1973 }
 0x36d   : > { %v4823_v12 = vpop.permute.xlu1 %2339 }
 0x370   : > { %v2198_v10 = vpop.permute.xlu0 %2197 }
 0x371   : > { %v4826_v60 = vmax.f32 %v4652_v15, %v2198_v10  ;;  %v2200_v24 = vpop.permute.xlu1 %2199 }
 0x372   : > { %v4829_v9 = vmax.f32 %v4662_v17, %v2200_v24  ;;  %v4889_v24 = vmax.f32 %v4619_v42, %v1968_v53  ;;  %v4908_v42 = vmax.f32 %v4629_v45, %v1970_v41 }
 0x373   : > { %2277 = vrot.lane.b32.xlu0 %v4826_v60, %s3798_s20 }
 0x374   : > { %2279 = vrot.lane.b32.xlu1 %v4829_v9, %s3798_s20  ;;  %v4835_v32 = vpop.permute.xlu0 %2341 }
 0x375   : > { %v4837_v33 = vpop.permute.xlu1 %2343 }
 0x378   : > { %v4839_v27 = vpop.permute.xlu0 %1975 }
 0x379   : > { %v4841_v8 = vpop.permute.xlu1 %2313 }
 0x37c   : > { %v1946_v15 = vpop.permute.xlu0 %1945 }
 0x37d   : > { %v4844_v2 = vmax.f32 %v4527_v29, %v1946_v15  ;;  %v1948_v17 = vpop.permute.xlu1 %1947 }
 0x37e   : > { %v4847_v46 = vmax.f32 %v4557_v40, %v1948_v17 }
 0x37f   : > { %2025 = vrot.lane.b32.xlu0 %v4844_v2, %s3798_s20 }
 0x380   : > { %2027 = vrot.lane.b32.xlu1 %v4847_v46, %s3798_s20  ;;  %v2170_v35 = vpop.permute.xlu0 %2169 }
 0x381   : > { %v2172_v36 = vpop.permute.xlu1 %2171  ;;  %v4858_v52 = vmax.f32 %v4530_v26, %v2170_v35 }
 0x382   : > { %v4863_v30 = vmax.f32 %v4560_v37, %v2172_v36 }
 0x383   : > { %2089 = vrot.lane.b32.xlu0 %v4844_v2, %s3797_s19 }
 0x384   : > { %2091 = vrot.lane.b32.xlu1 %v4847_v46, %s3797_s19  ;;  %v1950_v29 = vpop.permute.xlu0 %1949 }
 0x385   : > { %v4860_v40 = vpop.permute.xlu1 %2315  ;;  %v4870_v54 = vmax.f32 %v4563_v63, %v1950_v29 }
 0x387   : > { %2249 = vrot.lane.b32.xlu0 %v4858_v52, %s3798_s20 }
 0x388   : > { %2251 = vrot.lane.b32.xlu1 %v4863_v30, %s3798_s20  ;;  %v2174_v6 = vpop.permute.xlu0 %2173 }
 0x389   : > { %v4872_v5 = vpop.permute.xlu1 %2317  ;;  %v4879_v37 = vmax.f32 %v4569_v47, %v2174_v6 }
 0x38b   : > { %2029 = vrot.lane.b32.xlu0 %v4870_v54, %s3798_s20 }
 0x38c   : > { %2093 = vrot.lane.b32.xlu1 %v4870_v54, %s3797_s19  ;;  %v1952_v26 = vpop.permute.xlu0 %1951 }
 0x38d   : > { %v4882_v57 = vmax.f32 %v4593_v48, %v1952_v26  ;;  %v2176_v10 = vpop.permute.xlu1 %2175  ;;  %v4918_v26 = vmax.f32 %v4639_v13, %v1972_v7 }
 0x38e   : > { %v4894_v17 = vmax.f32 %v4596_v18, %v2176_v10 }
 0x38f   : > { %2253 = vrot.lane.b32.xlu0 %v4879_v37, %s3798_s20 }
 0x390   : > { %2095 = vrot.lane.b32.xlu1 %v4882_v57, %s3797_s19  ;;  %v2034_v63 = vpop.permute.xlu0 %2033 }
 0x391   : > { %v4891_v15 = vpop.permute.xlu1 %2319  ;;  %v2077_v47 = vmax.f32 %v4705_v62, %v2034_v63 }
 0x393   : > { %2047 = vrot.lane.b32.xlu0 %v4889_v24, %s3798_s20 }
 0x394   : > { %2255 = vrot.lane.b32.xlu1 %v4894_v17, %s3798_s20  ;;  %v2258_v48 = vpop.permute.xlu0 %2257 }
 0x395   : > { %v2098_v35 = vpop.permute.xlu1 %2097  ;;  %v2301_v63 = vmax.f32 %v4705_v62, %v2258_v48 }
 0x396   : > { %v4901_v36 = vmax.f32 %v2077_v47, %v2098_v35  ;;  %v2381_v47 = vmax.f32 %v4712_v11, %v2258_v48 }
 0x397   : > { %2031 = vrot.lane.b32.xlu0 %v4882_v57, %s3798_s20 }
 0x398   : > { %2109 = vrot.lane.b32.xlu1 %v4787_v34, %s3797_s19  ;;  %v2036_v18 = vpop.permute.xlu0 %2035 }
 0x399   : > { %v2078_v53 = vmax.f32 %v4721_v4, %v2036_v18  ;;  %v2100_v29 = vpop.permute.xlu1 %2099  ;;  %v2365_v18 = vmax.f32 %v2301_v63, %v4714_v3 }
 0x39b   : > { %v4911_v6 = vmax.f32 %v2078_v53, %v2100_v29  ;;  %2049 = vrot.lane.b32.xlu0 %v4908_v42, %s3798_s20 }
 0x39c   : > { %2111 = vrot.lane.b32.xlu1 %v4889_v24, %s3797_s19 }
 0x39d   : > { %v2260_v10 = vpop.permute.xlu1 %2259 }
 0x39e   : > { %v2302_v13 = vmax.f32 %v4721_v4, %v2260_v10  ;;  %v2382_v53 = vmax.f32 %v4728_v39, %v2260_v10 }
 0x39f   : > { %2051 = vrot.lane.b32.xlu0 %v4918_v26, %s3798_s20  ;;  %v2038_v45 = vpop.permute.xlu0 %2037 }
 0x3a0   : > { %v2079_v41 = vmax.f32 %v4731_v58, %v2038_v45  ;;  %2113 = vrot.lane.b32.xlu1 %v4908_v42, %s3797_s19  ;;  %v2366_v29 = vmax.f32 %v2302_v13, %v4744_v25 }
 0x3a1   : > { %v2102_v35 = vpop.permute.xlu1 %2101 }
 0x3a2   : > { %v4929_v7 = vmax.f32 %v2079_v41, %v2102_v35 }
 0x3a3   : > { %2481 = vrot.lane.b32.xlu0 %v2381_v47, %s3796_s17  ;;  %v2262_v62 = vpop.permute.xlu0 %2261 }
 0x3a4   : > { %2417 = vrot.lane.b32.xlu1 %v2365_v18, %s3799_s21  ;;  %v2303_v45 = vmax.f32 %v4731_v58, %v2262_v62  ;;  %v2383_v11 = vmax.f32 %v4738_v50, %v2262_v62 }
 0x3a6   : > { %v2367_v3 = vmax.f32 %v2303_v45, %v4746_v14 }
 0x3a7   : > { %2483 = vrot.lane.b32.xlu0 %v2382_v53, %s3796_s17 }
 0x3a8   : > { %2419 = vrot.lane.b32.xlu1 %v2366_v29, %s3799_s21 }
 0x3ab   : > { %2485 = vrot.lane.b32.xlu0 %v2383_v11, %s3796_s17 }
 0x3ac   : > { %2421 = vrot.lane.b32.xlu1 %v2367_v3, %s3799_s21 }
 0x3ad   : > { %v2104_v4 = vpop.permute.xlu1 %2103  ;;  %v2040_v48 = vpop.permute.xlu0 %2039 }
 0x3ae   : > { %v2080_v39 = vmax.f32 %v4749_v23, %v2040_v48 }
 0x3b0   : > { %v4943_v10 = vmax.f32 %v2080_v39, %v2104_v4  ;;  %v2594_v39 = vld [vmem:[%s5227_s3] sm:$0xff] }
 0x3b1   : > { %v2264_v25 = vpop.permute.xlu1 %2263 }
 0x3b2   : > { %v2304_v58 = vmax.f32 %v4749_v23, %v2264_v25  ;;  %v2384_v63 = vmax.f32 %v4756_v49, %v2264_v25  ;;  %v2597_v25 = vld [vmem:[%s5227_s3 + $0x18] sm:$0xff] }
 0x3b4   : > { %v2368_v41 = vmax.f32 %v2304_v58, %v4770_v44  ;;  %2487 = vrot.lane.b32.xlu0 %v2384_v63, %s3796_s17 }
 0x3b6   : > { %2423 = vrot.lane.b32.xlu1 %v2368_v41, %s3799_s21 }
 0x3b7   : > { %v2042_v50 = vpop.permute.xlu0 %2041  ;;  %v2106_v47 = vpop.permute.xlu1 %2105 }
 0x3b8   : > { %v2081_v14 = vmax.f32 %v4761_v22, %v2042_v50 }
 0x3ba   : > { %v4951_v35 = vmax.f32 %v2081_v14, %v2106_v47 }
 0x3bb   : > { %v2266_v18 = vpop.permute.xlu0 %2265 }
 0x3bc   : > { %v2305_v13 = vmax.f32 %v4761_v22, %v2266_v18  ;;  %v2385_v62 = vmax.f32 %v4768_v1, %v2266_v18 }
 0x3be   : > { %v2369_v23 = vmax.f32 %v2305_v13, %v4774_v19  ;;  %2489 = vrot.lane.b32.xlu0 %v2385_v62, %s3796_s17 }
 0x3c0   : > { %2425 = vrot.lane.b32.xlu1 %v2369_v23, %s3799_s21 }
 0x3c5   : > { %v2108_v49 = vpop.permute.xlu1 %2107  ;;  %v2044_v44 = vpop.permute.xlu0 %2043 }
 0x3c6   : > { %v2082_v53 = vmax.f32 %v4777_v28, %v2044_v44  ;;  %v2598_v44 = vld [vmem:[%s5227_s3 + $0x20] sm:$0xff] }
 0x3c8   : > { %v4959_v29 = vmax.f32 %v2082_v53, %v2108_v49  ;;  %v2599_v53 = vld [vmem:[%s5227_s3 + $0x28] sm:$0xff] }
 0x3c9   : > { %v2268_v45 = vpop.permute.xlu1 %2267  ;;  %v4961_v11 = vpop.permute.xlu0 %2045 }
 0x3ca   : > { %v2306_v3 = vmax.f32 %v4777_v28, %v2268_v45  ;;  %v2386_v22 = vmax.f32 %v4784_v21, %v2268_v45  ;;  %v2595_v28 = vld [vmem:[%s5227_s3 + $0x8] sm:$0xff]  ;;  %v2596_v21 = vld [vmem:[%s5227_s3 + $0x10] sm:$0xff] }
 0x3cb   : > { %v3490_v58 = vpack.c.bf16 %v2597_v25, %v2596_v21 }
 0x3cc   : > { %v2370_v1 = vmax.f32 %v2306_v3, %v4789_v20  ;;  %2491 = vrot.lane.b32.xlu0 %v2386_v22, %s3796_s17  ;;  %v3486_v20 = vpack.c.bf16 %v2595_v28, %v2594_v39  ;;  %v3494_v22 = vpack.c.bf16 %v2599_v53, %v2598_v44 }
 0x3cd   : > { %v2270_v19 = vpop.permute.xlu0 %2269 }
 0x3ce   : > { %v2307_v4 = vmax.f32 %v4787_v34, %v2270_v19  ;;  %v2387_v48 = vmax.f32 %v4796_v38, %v2270_v19  ;;  %2427 = vrot.lane.b32.xlu1 %v2370_v1, %s3799_s21  ;;  %3487 = vmatprep.subr.bf16.mxu1 %v3486_v20 }
 0x3cf   : > { %3489 = vmatpush3.bf16.msra.mxu1 %v3486_v20 }
 0x3d0   : > { %v2371_v38 = vmax.f32 %v2307_v4, %v4798_v51  ;;  %2493 = vrot.lane.b32.xlu0 %v2387_v48, %s3796_s17  ;;  %3491 = vmatprep.subr.bf16.mxu1 %v3490_v58 }
 0x3d2   : > { %v2272_v63 = vpop.permute.xlu1 %2271  ;;  %2429 = vrot.lane.b32.xlu1 %v2371_v38, %s3799_s21 }
 0x3d3   : > { %v2308_v41 = vmax.f32 %v4889_v24, %v2272_v63  ;;  %v2388_v50 = vmax.f32 %v4803_v31, %v2272_v63  ;;  %3493 = vmatpush3.bf16.msra.mxu1 %v3490_v58 }
 0x3d4   : > { %3495 = vmatprep.subr.bf16.mxu1 %v3494_v22 }
 0x3d5   : > { %v2372_v14 = vmax.f32 %v2308_v41, %v4807_v43  ;;  %2495 = vrot.lane.b32.xlu0 %v2388_v50, %s3796_s17 }
 0x3d7   : > { %2431 = vrot.lane.b32.xlu1 %v2372_v14, %s3799_s21  ;;  %3497 = vmatpush3.bf16.msra.mxu1 %v3494_v22 }
 0x3d9   : > { %v4990_v51 = vpop.permute.xlu0 %2273 }
 0x3de   : > { %v4992_v47 = vpop.permute.xlu1 %2275 }
 0x3df   : > { %v2310_v44 = vmax.f32 %v4918_v26, %v4992_v47 }
 0x3e5   : > { %v4994_v18 = vpop.permute.xlu0 %2277 }
 0x3e6   : > { %v4996_v13 = vpop.permute.xlu1 %2279 }
 0x3f1   : > { %v2026_v62 = vpop.permute.xlu0 %2025 }
 0x3f2   : > { %v2028_v23 = vpop.permute.xlu1 %2027  ;;  %v2073_v31 = vmax.f32 %v4844_v2, %v2026_v62 }
 0x3f3   : > { %v2074_v49 = vmax.f32 %v4847_v46, %v2028_v23 }
 0x3f5   : > { %v2090_v43 = vpop.permute.xlu0 %2089 }
 0x3f6   : > { %v5006_v45 = vmax.f32 %v2073_v31, %v2090_v43  ;;  %v2092_v3 = vpop.permute.xlu1 %2091  ;;  %v5040_v31 = vmax.f32 %v4649_v61, %v4821_v16  ;;  %v5052_v43 = vmax.f32 %v4659_v0, %v4839_v27  ;;  %v2389_v0 = vmax.f32 %v4810_v56, %v4990_v51 }
 0x3f7   : > { %v5008_v1 = vmax.f32 %v2074_v49, %v2092_v3  ;;  %v2374_v3 = vmax.f32 %v2310_v44, %v4823_v12 }
 0x3f8   : > { %v2312_v12 = vmax.f32 %v5052_v43, %v4996_v13 }
 0x3f9   : > { %v2250_v19 = vpop.permute.xlu0 %2249 }
 0x3fa   : > { %v2297_v4 = vmax.f32 %v4844_v2, %v2250_v19  ;;  %v2377_v48 = vmax.f32 %v4858_v52, %v2250_v19  ;;  %v2252_v39 = vpop.permute.xlu1 %2251 }
 0x3fb   : > { %v2298_v21 = vmax.f32 %v4847_v46, %v2252_v39  ;;  %v2378_v25 = vmax.f32 %v4863_v30, %v2252_v39 }
 0x3fc   : > { %v2361_v28 = vmax.f32 %v2297_v4, %v4841_v8  ;;  %2473 = vrot.lane.b32.xlu0 %v2377_v48, %s3796_s17 }
 0x3fd   : > { %v2030_v20 = vpop.permute.xlu0 %2029  ;;  %v2362_v63 = vmax.f32 %v2298_v21, %v4860_v40 }
 0x3fe   : > { %v2075_v38 = vmax.f32 %v4870_v54, %v2030_v20  ;;  %v2094_v58 = vpop.permute.xlu1 %2093  ;;  %2409 = vrot.lane.b32.xlu1 %v2361_v28, %s3799_s21 }
 0x400   : > { %v5019_v2 = vmax.f32 %v2075_v38, %v2094_v58  ;;  %2475 = vrot.lane.b32.xlu0 %v2378_v25, %s3796_s17 }
 0x401   : > { %v2254_v52 = vpop.permute.xlu0 %2253 }
 0x402   : > { %v2299_v8 = vmax.f32 %v4870_v54, %v2254_v52  ;;  %v2379_v46 = vmax.f32 %v4879_v37, %v2254_v52  ;;  %v5024_v41 = vpop.permute.xlu1 %2095  ;;  %2411 = vrot.lane.b32.xlu1 %v2362_v63, %s3799_s21  ;;  %v2083_v54 = vmax.f32 %v4787_v34, %v4961_v11 }
 0x404   : > { %v2363_v30 = vmax.f32 %v2299_v8, %v4872_v5  ;;  %2477 = vrot.lane.b32.xlu0 %v2379_v46, %s3796_s17  ;;  %v5108_v46 = vld [vmem:[%s5226_s2] ss:$0 sm:$0xff] }
 0x405   : > { %v2048_v50 = vpop.permute.xlu0 %2047 }
 0x406   : > { %v2256_v14 = vpop.permute.xlu1 %2255  ;;  %2413 = vrot.lane.b32.xlu1 %v2363_v30, %s3799_s21  ;;  %v2084_v34 = vmax.f32 %v4889_v24, %v2048_v50 }
 0x407   : > { %v2300_v40 = vmax.f32 %v4882_v57, %v2256_v14  ;;  %v2380_v62 = vmax.f32 %v4894_v17, %v2256_v14  ;;  %v2309_v17 = vmax.f32 %v4908_v42, %v4990_v51  ;;  %v2376_v51 = vmax.f32 %v2312_v12, %v4837_v33 }
 0x409   : > { %v2364_v37 = vmax.f32 %v2300_v40, %v4891_v15  ;;  %2479 = vrot.lane.b32.xlu0 %v2380_v62, %s3796_s17  ;;  %v5036_v23 = vpop.permute.xlu0 %2031  ;;  %v2373_v16 = vmax.f32 %v2309_v17, %v4812_v59  ;;  %v2390_v59 = vmax.f32 %v4817_v55, %v4992_v47  ;;  %v2391_v55 = vmax.f32 %v4826_v60, %v4994_v18 }
 0x40a   : > { %v2110_v5 = vpop.permute.xlu1 %2109  ;;  %v2076_v17 = vmax.f32 %v4882_v57, %v5036_v23 }
 0x40b   : > { %v5042_v49 = vmax.f32 %v2083_v54, %v2110_v5  ;;  %2415 = vrot.lane.b32.xlu1 %v2364_v37, %s3799_s21 }
 0x40d   : > { %2053 = vrot.lane.b32.xlu0 %v5040_v31, %s3798_s20  ;;  %v2050_v15 = vpop.permute.xlu0 %2049 }
 0x40e   : > { %v2112_v11 = vpop.permute.xlu1 %2111  ;;  %v2085_v24 = vmax.f32 %v4908_v42, %v2050_v15  ;;  %v2311_v42 = vmax.f32 %v5040_v31, %v4994_v18 }
 0x40f   : > { %v5054_v61 = vmax.f32 %v2084_v34, %v2112_v11  ;;  %2115 = vrot.lane.b32.xlu1 %v4918_v26, %s3797_s19 }
 0x410   : > { %v2375_v56 = vmax.f32 %v2311_v42, %v4835_v32  ;;  %v2392_v32 = vmax.f32 %v4829_v9, %v4996_v13 }
 0x411   : > { %2055 = vrot.lane.b32.xlu0 %v5052_v43, %s3798_s20  ;;  %v5093_v47 = vpop.permute.xlu0 %2051 }
 0x412   : > { %v2114_v53 = vpop.permute.xlu1 %2113 }
 0x413   : > { %v5066_v27 = vmax.f32 %v2085_v24, %v2114_v53  ;;  %2433 = vrot.lane.b32.xlu1 %v2373_v16, %s3799_s21  ;;  %v2140_v53 = vmax.f32 %v2076_v17, %v5024_v41 }
 0x415   : > { %2497 = vrot.lane.b32.xlu0 %v2389_v0, %s3796_s17  ;;  %v2482_v22 = vpop.permute.xlu0 %2481 }
 0x416   : > { %v2418_v19 = vpop.permute.xlu1 %2417 }
 0x417   : > { %2435 = vrot.lane.b32.xlu1 %v2374_v3, %s3799_s21  ;;  %v2526_v15 = vsel %vm2521_vm0, %v4901_v36, %v2418_v19 }
 0x418   : > { %v2543_v0 = vsel %vm2538_vm1, %v2526_v15, %v2482_v22 }
 0x419   : > { %2499 = vrot.lane.b32.xlu0 %v2390_v59, %s3796_s17  ;;  %v2484_v4 = vpop.permute.xlu0 %2483  ;;  %v2566_v59 = vadd.f32 %v5108_v46, %v2543_v0 }
 0x41a   : > { %v2420_v60 = vpop.permute.xlu1 %2419 }
 0x41b   : > { %2117 = vrot.lane.b32.xlu1 %v5040_v31, %s3797_s19  ;;  %v2527_v57 = vsel %vm2521_vm0, %v4911_v6, %v2420_v60  ;;  %v2582_v19 = vmax.f32 %v2566_v59, 0.0 }
 0x41c   : > { %v2544_v42 = vsel %vm2538_vm1, %v2527_v57, %v2484_v4 }
 0x41d   : > { %2437 = vrot.lane.b32.xlu0 %v2375_v56, %s3799_s21  ;;  %v2486_v18 = vpop.permute.xlu0 %2485 }
 0x41e   : > { %v2422_v48 = vpop.permute.xlu1 %2421 }
 0x41f   : > { %2119 = vrot.lane.b32.xlu1 %v5052_v43, %s3797_s19  ;;  %v2528_v36 = vsel %vm2521_vm0, %v4929_v7, %v2422_v48 }
 0x420   : > { %v2545_v12 = vsel %vm2538_vm1, %v2528_v36, %v2486_v18 }
 0x421   : > { %2501 = vrot.lane.b32.xlu0 %v2391_v55, %s3796_s17  ;;  %v2568_v4 = vadd.f32 %v5108_v46, %v2545_v12 }
 0x423   : > { %2439 = vrot.lane.b32.xlu1 %v2376_v51, %s3799_s21 }
 0x426   : > { %v2488_v39 = vpop.permute.xlu0 %2487 }
 0x427   : > { %2503 = vrot.lane.b32.xlu1 %v2392_v32, %s3796_s17  ;;  %v2567_v32 = vadd.f32 %v5108_v46, %v2544_v42  ;;  %s5203_s17 = scalar_lea.vmem %s5229_s5, %s2893_s13 }
 0x428   : > { %v2424_v28 = vpop.permute.xlu1 %2423 }
 0x429   : > { %v2529_v6 = vsel %vm2521_vm0, %v4943_v10, %v2424_v28 }
 0x42a   : > { %v2546_v60 = vsel %vm2538_vm1, %v2529_v6, %v2488_v39 }
 0x430   : > { %v2490_v33 = vpop.permute.xlu0 %2489 }
 0x432   : > { %v2426_v21 = vpop.permute.xlu1 %2425 }
 0x433   : > { %v2530_v55 = vsel %vm2521_vm0, %v4951_v35, %v2426_v21  ;;  %v2583_v21 = vmax.f32 %v2567_v32, 0.0 }
 0x434   : > { %v2547_v18 = vsel %vm2538_vm1, %v2530_v55, %v2490_v33 }
 0x435   : > { %v2570_v39 = vadd.f32 %v5108_v46, %v2547_v18 }
 0x43e   : > { %v5095_v20 = vpop.permute.xlu0 %2491 }
 0x440   : > { %v2428_v25 = vpop.permute.xlu1 %2427 }
 0x441   : > { %v2531_v10 = vsel %vm2521_vm0, %v4959_v29, %v2428_v25  ;;  %v2086_v29 = vmax.f32 %v4918_v26, %v5093_v47  ;;  %v2586_v26 = vmax.f32 %v2570_v39, 0.0 }
 0x442   : > { %v5097_v38 = vpop.permute.xlu0 %2493  ;;  %v2548_v33 = vsel %vm2538_vm1, %v2531_v10, %v5095_v20 }
 0x444   : > { %v2430_v9 = vpop.permute.xlu1 %2429 }
 0x445   : > { %v2532_v35 = vsel %vm2521_vm0, %v5042_v49, %v2430_v9 }
 0x446   : > { %v2549_v25 = vsel %vm2538_vm1, %v2532_v35, %v5097_v38 }
 0x447   : > { %v5099_v13 = vpop.permute.xlu0 %2495  ;;  %v2572_v47 = vadd.f32 %v5108_v46, %v2549_v25 }
 0x449   : > { %v5101_v58 = vpop.permute.xlu1 %2431 }
 0x44a   : > { %v2533_v49 = vsel %vm2521_vm0, %v5054_v61, %v5101_v58 }
 0x44b   : > { %v2550_v38 = vsel %vm2538_vm1, %v2533_v49, %v5099_v13 }
 0x46e   : > { %v2474_v63 = vpop.permute.xlu0 %2473 }
 0x470   : > { %v2410_v52 = vpop.permute.xlu1 %2409 }
 0x471   : > { %v2522_v8 = vsel %vm2521_vm0, %v5006_v45, %v2410_v52  ;;  %v2584_v52 = vmax.f32 %v2568_v4, 0.0 }
 0x472   : > { %v2539_v30 = vsel %vm2538_vm1, %v2522_v8, %v2474_v63  ;;  %v2476_v50 = vpop.permute.xlu0 %2475  ;;  %v2569_v63 = vadd.f32 %v5108_v46, %v2546_v60 }
 0x473   : > { %v2562_v14 = vadd.f32 %v5108_v46, %v2539_v30 }
 0x474   : > { %v2412_v40 = vpop.permute.xlu1 %2411  ;;  %v2585_v20 = vmax.f32 %v2569_v63, 0.0 }
 0x475   : > { %v2578_v62 = vmax.f32 %v2562_v14, 0.0  ;;  %v2523_v54 = vsel %vm2521_vm0, %v5008_v1, %v2412_v40 }
 0x476   : > { %v2540_v37 = vsel %vm2538_vm1, %v2523_v54, %v2476_v50  ;;  %v2478_v5 = vpop.permute.xlu0 %2477  ;;  %v2571_v50 = vadd.f32 %v5108_v46, %v2548_v33 }
 0x477   : > { %v2563_v45 = vadd.f32 %v5108_v46, %v2540_v37  ;;  %3206 = vmatprep.mubr.msk.f32.mxu1 %vm2607_vm2, %v2578_v62  ;;  %v2573_v37 = vadd.f32 %v5108_v46, %v2550_v38 }
 0x478   : > { %v2414_v34 = vpop.permute.xlu1 %2413  ;;  %v2587_v54 = vmax.f32 %v2571_v50, 0.0 }
 0x479   : > { %v2579_v11 = vmax.f32 %v2563_v45, 0.0  ;;  %v2524_v16 = vsel %vm2521_vm0, %v5019_v2, %v2414_v34 }
 0x47a   : > { %v2541_v1 = vsel %vm2538_vm1, %v2524_v16, %v2478_v5  ;;  %v2588_v5 = vmax.f32 %v2572_v47, 0.0 }
 0x47b   : > { %v2564_v44 = vadd.f32 %v5108_v46, %v2541_v1  ;;  %3207 = vmatmul.mubr.msk.f32.vlgmr.msra.gmra.mrb[56].mxu1 %vm2607_vm2, %v2579_v11  ;;  %v2480_v24 = vpop.permute.xlu0 %2479  ;;  %v2589_v11 = vmax.f32 %v2573_v37, 0.0 }
 0x47d   : > { %v2580_v23 = vmax.f32 %v2564_v44, 0.0  ;;  %v2416_v3 = vpop.permute.xlu1 %2415 }
 0x47e   : > { %v2525_v2 = vsel %vm2521_vm0, %v2140_v53, %v2416_v3 }
 0x47f   : > { %v2542_v56 = vsel %vm2538_vm1, %v2525_v2, %v2480_v24  ;;  %3209 = vmatprep.mubr.msk.f32.mxu1 %vm2607_vm2, %v2580_v23  ;;  %v2054_v41 = vpop.permute.xlu0 %2053 }
 0x480   : > { %v2565_v7 = vadd.f32 %v5108_v46, %v2542_v56 }
 0x481   : > { %v2116_v51 = vpop.permute.xlu1 %2115 }
 0x482   : > { %v2581_v22 = vmax.f32 %v2565_v7, 0.0  ;;  %v2150_v14 = vmax.f32 %v2086_v29, %v2116_v51 }
 0x483   : > { %v2056_v48 = vpop.permute.xlu0 %2055 }
 0x484   : > { %3210 = vmatmul.mubr.msk.f32.gmra.mrb[58].mxu1 %vm2607_vm2, %v2581_v22  ;;  %v2088_v53 = vmax.f32 %v5052_v43, %v2056_v48 }
 0x485   : > { %v2434_v28 = vpop.permute.xlu1 %2433  ;;  %3212 = vmatprep.mubr.msk.f32.mxu1 %vm2607_vm2, %v2582_v19 }
 0x486   : > { %v2534_v9 = vsel %vm2521_vm0, %v5066_v27, %v2434_v28  ;;  %v2087_v27 = vmax.f32 %v5040_v31, %v2054_v41  ;;  %v3153_v41 = vld [vmem:[%s5228_s4] ss:$0 sm:$0xff] }
 0x487   : > { %v2498_v8 = vpop.permute.xlu0 %2497 }
 0x488   : > { %3213 = vmatmul.mubr.msk.f32.gmra.mrb[60].mxu1 %vm2607_vm2, %v2583_v21  ;;  %v2551_v61 = vsel %vm2538_vm1, %v2534_v9, %v2498_v8 }
 0x489   : > { %v2436_v30 = vpop.permute.xlu1 %2435  ;;  %3215 = vmatprep.mubr.msk.f32.mxu1 %vm2607_vm2, %v2584_v52  ;;  %v2574_v45 = vadd.f32 %v5108_v46, %v2551_v61 }
 0x48a   : > { %v2535_v58 = vsel %vm2521_vm0, %v2150_v14, %v2436_v30 }
 0x48b   : > { %v2500_v40 = vpop.permute.xlu0 %2499  ;;  %v2590_v16 = vmax.f32 %v2574_v45, 0.0 }
 0x48c   : > { %3216 = vmatmul.mubr.msk.f32.gmra.mrb[62].mxu1 %vm2607_vm2, %v2585_v20  ;;  %v2552_v13 = vsel %vm2538_vm1, %v2535_v58, %v2500_v40 }
 0x48d   : > { %v2118_v62 = vpop.permute.xlu1 %2117  ;;  %3218 = vmatprep.mubr.msk.f32.mxu1 %vm2607_vm2, %v2586_v26  ;;  %v2575_v31 = vadd.f32 %v5108_v46, %v2552_v13 }
 0x48e   : > { %v2151_v17 = vmax.f32 %v2087_v27, %v2118_v62 }
 0x48f   : > { %v2438_v34 = vpop.permute.xlu0 %2437  ;;  %v2591_v36 = vmax.f32 %v2575_v31, 0.0 }
 0x490   : > { %3219 = vmatmul.mubr.msk.f32.gmra.mrb[64].mxu1 %vm2607_vm2, %v2587_v54  ;;  %v2536_v1 = vsel %vm2521_vm0, %v2151_v17, %v2438_v34 }
 0x491   : > { %v2120_v15 = vpop.permute.xlu1 %2119  ;;  %3221 = vmatprep.mubr.msk.f32.mxu1 %vm2607_vm2, %v2588_v5 }
 0x492   : > { %v2152_v23 = vmax.f32 %v2088_v53, %v2120_v15 }
 0x493   : > { %v2502_v44 = vpop.permute.xlu0 %2501 }
 0x494   : > { %v2553_v24 = vsel %vm2538_vm1, %v2536_v1, %v2502_v44  ;;  %3222 = vmatmul.mubr.msk.f32.gmra.mrb[66].mxu1 %vm2607_vm2, %v2589_v11 }
 0x495   : > { %v2576_v0 = vadd.f32 %v5108_v46, %v2553_v24  ;;  %v2440_v57 = vpop.permute.xlu1 %2439  ;;  %3224 = vmatprep.mubr.msk.f32.mxu1 %vm2607_vm2, %v2590_v16 }
 0x496   : > { %v2537_v2 = vsel %vm2521_vm0, %v2152_v23, %v2440_v57 }
 0x497   : > { %v2592_v3 = vmax.f32 %v2576_v0, 0.0 }
 0x498   : > { %3225 = vmatmul.mubr.msk.f32.gmra.mrb[68].mxu1 %vm2607_vm2, %v2591_v36 }
 0x499   : > { %v2504_v59 = vpop.permute.xlu1 %2503  ;;  %3227 = vmatprep.mubr.msk.f32.mxu1 %vm2607_vm2, %v2592_v3 }
 0x49a   : > { %v2554_v42 = vsel %vm2538_vm1, %v2537_v2, %v2504_v59 }
 0x49b   : > { %v2577_v43 = vadd.f32 %v5108_v46, %v2554_v42 }
 0x49d   : > { %v2593_v56 = vmax.f32 %v2577_v43, 0.0 }
 0x49f   : > { %3228 = vmatmul.mubr.msk.f32.gmra.mrb[70].mxu1 %vm2607_vm2, %v2593_v56 }
 0x54e   : > { %v3208_v12 = vpop.f32.mrb[56].mxu1 }
 0x54f   : > { %v2728_v46 = vadd.f32 %v3208_v12, %v3153_v41  ;;  %v2722_v6 = vpop.f32.mrb[57].mxu1 }
 0x550   : > { %v2723_v7 = vadd.f32 %v3153_v41, %v2722_v6 }
 0x551   : > { %2802 = vst [vmem:[%s5203_s17 + $0x8] sm:$0xff] %v2728_v46 }
 0x552   : > { %2801 = vst [vmem:[%s5203_s17] sm:$0xff] %v2723_v7 }
 0x557   : > { %v3211_v55 = vpop.f32.mrb[58].mxu1 }
 0x558   : > { %v2738_v51 = vadd.f32 %v3211_v55, %v3153_v41  ;;  %v2732_v32 = vpop.f32.mrb[59].mxu1 }
 0x559   : > { %v2733_v22 = vadd.f32 %v3153_v41, %v2732_v32 }
 0x55a   : > { %2804 = vst [vmem:[%s5203_s17 + $0x18] sm:$0xff] %v2738_v51 }
 0x55b   : > { %2803 = vst [vmem:[%s5203_s17 + $0x10] sm:$0xff] %v2733_v22  ;;  %v3214_v19 = vpop.f32.mrb[60].mxu1 }
 0x55c   : > { %v2748_v4 = vadd.f32 %v3214_v19, %v3153_v41  ;;  %v2742_v60 = vpop.f32.mrb[61].mxu1 }
 0x55d   : > { %v2743_v48 = vadd.f32 %v3153_v41, %v2742_v60 }
 0x55e   : > { %2806 = vst [vmem:[%s5203_s17 + $0x28] sm:$0xff] %v2748_v4 }
 0x55f   : > { %2805 = vst [vmem:[%s5203_s17 + $0x20] sm:$0xff] %v2743_v48  ;;  %v3217_v18 = vpop.f32.mrb[62].mxu1 }
 0x560   : > { %v2758_v10 = vadd.f32 %v3217_v18, %v3153_v41  ;;  %v2752_v35 = vpop.f32.mrb[63].mxu1 }
 0x561   : > { %v2753_v28 = vadd.f32 %v3153_v41, %v2752_v35 }
 0x562   : > { %2808 = vst [vmem:[%s5203_s17 + $0x38] sm:$0xff] %v2758_v10 }
 0x563   : > { %2807 = vst [vmem:[%s5203_s17 + $0x30] sm:$0xff] %v2753_v28  ;;  %v3220_v21 = vpop.f32.mrb[64].mxu1 }
 0x564   : > { %v2768_v63 = vadd.f32 %v3220_v21, %v3153_v41  ;;  %v2762_v52 = vpop.f32.mrb[65].mxu1 }
 0x565   : > { %v2763_v39 = vadd.f32 %v3153_v41, %v2762_v52 }
 0x566   : > { %2810 = vst [vmem:[%s5203_s17 + $0x48] sm:$0xff] %v2768_v63 }
 0x567   : > { %2809 = vst [vmem:[%s5203_s17 + $0x40] sm:$0xff] %v2763_v39  ;;  %v3223_v33 = vpop.f32.mrb[66].mxu1 }
 0x568   : > { %v2778_v8 = vadd.f32 %v3223_v33, %v3153_v41  ;;  %v2772_v29 = vpop.f32.mrb[67].mxu1 }
 0x569   : > { %v2773_v25 = vadd.f32 %v3153_v41, %v2772_v29 }
 0x56a   : > { %2812 = vst [vmem:[%s5203_s17 + $0x58] sm:$0xff] %v2778_v8 }
 0x56b   : > { %2811 = vst [vmem:[%s5203_s17 + $0x50] sm:$0xff] %v2773_v25  ;;  %v3226_v49 = vpop.f32.mrb[68].mxu1 }
 0x56c   : > { %v2788_v9 = vadd.f32 %v3226_v49, %v3153_v41  ;;  %v2782_v30 = vpop.f32.mrb[69].mxu1 }
 0x56d   : > { %v2783_v20 = vadd.f32 %v3153_v41, %v2782_v30 }
 0x56e   : > { %2814 = vst [vmem:[%s5203_s17 + $0x68] sm:$0xff] %v2788_v9 }
 0x56f   : > { %2813 = vst [vmem:[%s5203_s17 + $0x60] sm:$0xff] %v2783_v20 }
 0x572   : > { %v3229_v50 = vpop.f32.mrb[70].mxu1 }
 0x573   : > { %v2798_v14 = vadd.f32 %v3229_v50, %v3153_v41  ;;  %v2792_v26 = vpop.f32.mrb[71].mxu1 }
 0x574   : > { %v2793_v47 = vadd.f32 %v3153_v41, %v2792_v26 }
 0x575   : > { %2816 = vst [vmem:[%s5203_s17 + $0x78] sm:$0xff] %v2798_v14 }
 0x576   : > { %2815 = vst [vmem:[%s5203_s17 + $0x70] sm:$0xff] %v2793_v47 }
 0x577 PF: > { %s16_s18 = sadd.s32 1, %s3782_s18  }
 0x578   : > { %p13_p3 = scmp.ge.s32.totalorder %s16_s18, 4  }
 0x57a   :  { %15 = sbr.rel (!%p13_p3) target bundleno = 1 (0x1), region = 75 }
 0x581   :  { %2839 = vsyncpa [#allocation3], 1 }
 0x582   :  { %2841 = vsyncpa [#allocation3 + $0x1], 1 }

</bundles_post_ra>
